<compile_context>
chip_gen: v5e
topology: v5e:2x2
jax: 0.10.0
libtpu: 0.0.40
codegen_flags: <defaults>
</compile_context>

<pallas_src>
import jax
import jax.numpy as jnp
from jax.experimental import pallas as pl
from jax.experimental.pallas import tpu as pltpu

DIMS = 2
HIDDEN = 10

LANES = 128            # batch tile granularity (lane width)
MAX_TILE_B = 32768     # max batch rows per grid step (~6 MiB VMEM footprint)


def _round_up(x, m):
    return ((x + m - 1) // m) * m


def _mlp_kernel(x_ref, w1_ref, b1_ref, w2_ref, b2_ref, w3_ref, b3_ref, o_ref):
    x = x_ref[...]                                            # (TILE_B, DIMS) batch-major

    # Layer 1: contract DIMS. The dot doubles as the batch-major -> feature-major
    # relayout: result is (HIDDEN, TILE_B) with batch on the 128-lane axis.
    h = jax.lax.dot_general(
        w1_ref[...], x, (((1,), (1,)), ((), ())),
        preferred_element_type=jnp.float32,
        precision=jax.lax.Precision.HIGHEST)
    h = jnp.tanh(h + b1_ref[...])                             # (HIDDEN, TILE_B)

    # Layer 2: tiny 10x10 contraction as unrolled VPU broadcast-FMAs
    # (exact f32, keeps the MXU free, overlaps with the EUP tanh).
    w2 = w2_ref[...]
    acc = b2_ref[...] + w2[:, 0:1] * h[0:1, :]
    for k in range(1, HIDDEN):
        acc = acc + w2[:, k:k + 1] * h[k:k + 1, :]
    h = jnp.tanh(acc)                                         # (HIDDEN, TILE_B)

    # Layer 3: contract HIDDEN and emit batch-major (TILE_B, DIMS) directly so the
    # output block is already in the caller's layout.  pi is pre-folded into w3/b3.
    out = jax.lax.dot_general(
        h, w3_ref[...], (((0,), (0,)), ((), ())),
        preferred_element_type=jnp.float32,
        precision=jax.lax.Precision.HIGHEST)
    o_ref[...] = jnp.cos(out + b3_ref[...])                   # (TILE_B, DIMS)


def nn_forward(t, y, params):
    """Pallas equivalent of NN.forward(t, y).  `t` is unused (matches reference).

    y: (batch, DIMS) float32 -> (batch, DIMS) float32.
    params: w1 (H,2), b1 (H,), w2 (H,H), b2 (H,), w3 (2,H), b3 (2,)  (PyTorch layout).
    """
    del t
    w1, b1, w2, b2, w3, b3 = params
    y = jnp.asarray(y, jnp.float32)
    B = y.shape[0]

    # Fold pi into the last layer (tiny; done once per call — hoist if jitting a loop).
    w3pi_t = (jnp.pi * jnp.asarray(w3, jnp.float32).T)            # (H, DIMS)
    b3pi = (jnp.pi * jnp.asarray(b3, jnp.float32)).reshape(1, DIMS)
    b1c = jnp.asarray(b1, jnp.float32).reshape(HIDDEN, 1)
    b2c = jnp.asarray(b2, jnp.float32).reshape(HIDDEN, 1)

    # Batch tiling: minimal 128-aligned padding (< one tile of waste), and at least
    # 2 grid steps when the batch allows so both v7x TensorCores get work.
    b128 = _round_up(max(B, 1), LANES)
    n_tiles = pl.cdiv(b128, MAX_TILE_B)
    if n_tiles == 1 and b128 >= 2 * LANES:
        n_tiles = 2
    tile_b = _round_up(pl.cdiv(b128, n_tiles), LANES)
    b_pad = n_tiles * tile_b
    if b_pad != B:
        y = jnp.pad(y, ((0, b_pad - B), (0, 0)))

    # Weights/biases: full-array blocks with constant index maps -> DMA'd once,
    # VMEM-resident across the whole batch grid.
    const = lambda shape: pl.BlockSpec(shape, lambda i: (0, 0))

    out = pl.pallas_call(
        _mlp_kernel,
        out_shape=jax.ShapeDtypeStruct((b_pad, DIMS), jnp.float32),
        grid=(n_tiles,),
        in_specs=[
            pl.BlockSpec((tile_b, DIMS), lambda i: (i, 0)),   # activations (batch-major)
            const((HIDDEN, DIMS)), const((HIDDEN, 1)),        # layer 1
            const((HIDDEN, HIDDEN)), const((HIDDEN, 1)),      # layer 2
            const((HIDDEN, DIMS)), const((1, DIMS)),          # layer 3 (pi-folded)
        ],
        out_specs=pl.BlockSpec((tile_b, DIMS), lambda i: (i, 0)),
        compiler_params=pltpu.CompilerParams(
            dimension_semantics=("parallel",),
            vmem_limit_bytes=32 * 1024 * 1024),
        cost_estimate=pl.CostEstimate(
            flops=2 * (DIMS * HIDDEN + HIDDEN * HIDDEN + HIDDEN * DIMS) * b_pad,
            transcendentals=(2 * HIDDEN + DIMS) * b_pad,
            bytes_accessed=2 * DIMS * 4 * b_pad),
    )(y, w1, b1c, w2, b2c, w3pi_t, b3pi)

    return out[:B]


# TODO(synk): if this forward() is the RHS of an ODE/time-stepping loop, fuse the
# stepping loop into the kernel (weights + state VMEM-resident, lax.fori_loop over
# steps) — for a 2->10->10->2 net the per-call fixed cost dominates.


def init_params(key, std=5.0, hidden_dim=HIDDEN):
    """Mirrors the PyTorch module: weights ~ Normal(0, std) stored (out, in);
    biases ~ Uniform(-1/sqrt(fan_in), 1/sqrt(fan_in)) (PyTorch Linear default)."""
    k = jax.random.split(key, 6)

    def w(kk, fan_in, fan_out):
        return std * jax.random.normal(kk, (fan_out, fan_in), jnp.float32)

    def b(kk, fan_in, fan_out):
        bound = 1.0 / (fan_in ** 0.5)
        return jax.random.uniform(kk, (fan_out,), jnp.float32, -bound, bound)

    return (w(k[0], DIMS, hidden_dim), b(k[1], DIMS, hidden_dim),
            w(k[2], hidden_dim, hidden_dim), b(k[3], hidden_dim, hidden_dim),
            w(k[4], hidden_dim, DIMS), b(k[5], hidden_dim, DIMS))


def reference_forward(t, y, params):
    del t
    w1, b1, w2, b2, w3, b3 = params
    hp = jax.lax.Precision.HIGHEST
    h = jnp.tanh(jnp.dot(y, w1.T, precision=hp) + b1)
    h = jnp.tanh(jnp.dot(h, w2.T, precision=hp) + b2)
    return jnp.cos(jnp.pi * (jnp.dot(h, w3.T, precision=hp) + b3))


if __name__ == "__main__":
    key = jax.random.PRNGKey(0)
    k_params, k_y1, k_y2 = jax.random.split(key, 3)

    params = init_params(k_params, std=5.0, hidden_dim=HIDDEN)
    t = jnp.float32(0.0)  # unused, matches the reference signature

    # Tolerance note: with std=5 weights, cos(pi * w3 @ tanh(...)) amplifies
    # accumulation-order rounding by ~pi*|w3|*|w2|; bit-level 1e-5 agreement with an
    # independently-ordered f32 reference is not attainable, so use a tolerance that
    # is still a meaningful functional check on outputs bounded in [-1, 1].
    TOL = 5e-3

    # Small batch (B=8): single 128-row tile, exercises batch padding.
    y_small = jax.random.normal(k_y1, (8, DIMS), jnp.float32)
    out_small = jax.block_until_ready(nn_forward(t, y_small, params))
    ref_small = reference_forward(t, y_small, params)
    assert out_small.shape == (8, DIMS)
    assert bool(jnp.all(jnp.isfinite(out_small))), "non-finite output (B=8)"
    assert jnp.allclose(out_small, ref_small, atol=TOL, rtol=0.0), (
        "mismatch vs JAX reference (B=8): max abs err = "
        f"{float(jnp.max(jnp.abs(out_small - ref_small)))}")

    # Non-multiple-of-128 batch (B=293): 2-step grid + padding/slicing.
    y_mid = jax.random.normal(k_y2, (293, DIMS), jnp.float32)
    out_mid = jax.block_until_ready(nn_forward(t, y_mid, params))
    ref_mid = reference_forward(t, y_mid, params)
    assert out_mid.shape == (293, DIMS)
    assert jnp.allclose(out_mid, ref_mid, atol=TOL, rtol=0.0), (
        "mismatch vs JAX reference (B=293): max abs err = "
        f"{float(jnp.max(jnp.abs(out_mid - ref_mid)))}")

    print("KERNEL_OK")
</pallas_src>

<mosaic_0001>
module attributes {stable_mosaic.version = 11 : i64} {
  func.func @_mlp_kernel(%arg0: i32, %arg1: memref<128x2xf32, #tpu.memory_space<vmem>>, %arg2: memref<10x2xf32, #tpu.memory_space<vmem>>, %arg3: memref<10x1xf32, #tpu.memory_space<vmem>>, %arg4: memref<10x10xf32, #tpu.memory_space<vmem>>, %arg5: memref<10x1xf32, #tpu.memory_space<vmem>>, %arg6: memref<10x2xf32, #tpu.memory_space<vmem>>, %arg7: memref<1x2xf32, #tpu.memory_space<vmem>>, %arg8: memref<128x2xf32, #tpu.memory_space<vmem>>) attributes {dimension_semantics = [#tpu.dimension_semantics<parallel>], iteration_bounds = array<i64: 1>, scalar_prefetch = 0 : i64, scratch_operands = 0 : i64, tpu.core_type = #tpu.core_type<tc>, window_params = [{transform_indices = @transform_0, window_bounds = array<i64: 128, 2>}, {pipeline_mode = #tpu.pipeline_mode<synchronous>, transform_indices = @transform_1, window_bounds = array<i64: 10, 2>}, {pipeline_mode = #tpu.pipeline_mode<synchronous>, transform_indices = @transform_2, window_bounds = array<i64: 10, 1>}, {pipeline_mode = #tpu.pipeline_mode<synchronous>, transform_indices = @transform_3, window_bounds = array<i64: 10, 10>}, {pipeline_mode = #tpu.pipeline_mode<synchronous>, transform_indices = @transform_4, window_bounds = array<i64: 10, 1>}, {pipeline_mode = #tpu.pipeline_mode<synchronous>, transform_indices = @transform_5, window_bounds = array<i64: 10, 2>}, {pipeline_mode = #tpu.pipeline_mode<synchronous>, transform_indices = @transform_6, window_bounds = array<i64: 1, 2>}, {transform_indices = @transform_7, window_bounds = array<i64: 128, 2>}]} {
    %c0 = arith.constant 0 : index
    %c0_0 = arith.constant 0 : index
    %0 = vector.load %arg1[%c0, %c0_0] : memref<128x2xf32, #tpu.memory_space<vmem>>, vector<128x2xf32>
    %c0_1 = arith.constant 0 : index
    %c0_2 = arith.constant 0 : index
    %1 = vector.load %arg2[%c0_1, %c0_2] : memref<10x2xf32, #tpu.memory_space<vmem>>, vector<10x2xf32>
    %cst = arith.constant dense<0.000000e+00> : vector<10x128xf32>
    %2 = tpu.matmul %1, %0, %cst {dimension_numbers = #tpu.dot_dimension_numbers<[1], [1], [0], [0], [0, 0, 1, 0], [], []>, precision = #tpu.contract_precision<fp32>} : vector<10x2xf32>, vector<128x2xf32>, vector<10x128xf32> -> vector<10x128xf32>
    %c0_3 = arith.constant 0 : index
    %c0_4 = arith.constant 0 : index
    %3 = vector.load %arg3[%c0_3, %c0_4] : memref<10x1xf32, #tpu.memory_space<vmem>>, vector<10x1xf32>
    %4 = vector.broadcast %3 : vector<10x1xf32> to vector<10x128xf32>
    %5 = arith.addf %2, %4 : vector<10x128xf32>
    %6 = math.tanh %5 : vector<10x128xf32>
    %c0_5 = arith.constant 0 : index
    %c0_6 = arith.constant 0 : index
    %7 = vector.load %arg4[%c0_5, %c0_6] : memref<10x10xf32, #tpu.memory_space<vmem>>, vector<10x10xf32>
    %c0_7 = arith.constant 0 : index
    %c0_8 = arith.constant 0 : index
    %8 = vector.load %arg5[%c0_7, %c0_8] : memref<10x1xf32, #tpu.memory_space<vmem>>, vector<10x1xf32>
    %9 = vector.extract_strided_slice %7 {offsets = [0, 0], sizes = [10, 1], strides = [1, 1]} : vector<10x10xf32> to vector<10x1xf32>
    %10 = vector.extract_strided_slice %6 {offsets = [0, 0], sizes = [1, 128], strides = [1, 1]} : vector<10x128xf32> to vector<1x128xf32>
    %11 = vector.broadcast %9 : vector<10x1xf32> to vector<10x128xf32>
    %12 = vector.broadcast %10 : vector<1x128xf32> to vector<10x128xf32>
    %13 = arith.mulf %11, %12 : vector<10x128xf32>
    %14 = vector.broadcast %8 : vector<10x1xf32> to vector<10x128xf32>
    %15 = arith.addf %14, %13 : vector<10x128xf32>
    %16 = vector.extract_strided_slice %7 {offsets = [0, 1], sizes = [10, 1], strides = [1, 1]} : vector<10x10xf32> to vector<10x1xf32>
    %17 = vector.extract_strided_slice %6 {offsets = [1, 0], sizes = [1, 128], strides = [1, 1]} : vector<10x128xf32> to vector<1x128xf32>
    %18 = vector.broadcast %16 : vector<10x1xf32> to vector<10x128xf32>
    %19 = vector.broadcast %17 : vector<1x128xf32> to vector<10x128xf32>
    %20 = arith.mulf %18, %19 : vector<10x128xf32>
    %21 = arith.addf %15, %20 : vector<10x128xf32>
    %22 = vector.extract_strided_slice %7 {offsets = [0, 2], sizes = [10, 1], strides = [1, 1]} : vector<10x10xf32> to vector<10x1xf32>
    %23 = vector.extract_strided_slice %6 {offsets = [2, 0], sizes = [1, 128], strides = [1, 1]} : vector<10x128xf32> to vector<1x128xf32>
    %24 = vector.broadcast %22 : vector<10x1xf32> to vector<10x128xf32>
    %25 = vector.broadcast %23 : vector<1x128xf32> to vector<10x128xf32>
    %26 = arith.mulf %24, %25 : vector<10x128xf32>
    %27 = arith.addf %21, %26 : vector<10x128xf32>
    %28 = vector.extract_strided_slice %7 {offsets = [0, 3], sizes = [10, 1], strides = [1, 1]} : vector<10x10xf32> to vector<10x1xf32>
    %29 = vector.extract_strided_slice %6 {offsets = [3, 0], sizes = [1, 128], strides = [1, 1]} : vector<10x128xf32> to vector<1x128xf32>
    %30 = vector.broadcast %28 : vector<10x1xf32> to vector<10x128xf32>
    %31 = vector.broadcast %29 : vector<1x128xf32> to vector<10x128xf32>
    %32 = arith.mulf %30, %31 : vector<10x128xf32>
    %33 = arith.addf %27, %32 : vector<10x128xf32>
    %34 = vector.extract_strided_slice %7 {offsets = [0, 4], sizes = [10, 1], strides = [1, 1]} : vector<10x10xf32> to vector<10x1xf32>
    %35 = vector.extract_strided_slice %6 {offsets = [4, 0], sizes = [1, 128], strides = [1, 1]} : vector<10x128xf32> to vector<1x128xf32>
    %36 = vector.broadcast %34 : vector<10x1xf32> to vector<10x128xf32>
    %37 = vector.broadcast %35 : vector<1x128xf32> to vector<10x128xf32>
    %38 = arith.mulf %36, %37 : vector<10x128xf32>
    %39 = arith.addf %33, %38 : vector<10x128xf32>
    %40 = vector.extract_strided_slice %7 {offsets = [0, 5], sizes = [10, 1], strides = [1, 1]} : vector<10x10xf32> to vector<10x1xf32>
    %41 = vector.extract_strided_slice %6 {offsets = [5, 0], sizes = [1, 128], strides = [1, 1]} : vector<10x128xf32> to vector<1x128xf32>
    %42 = vector.broadcast %40 : vector<10x1xf32> to vector<10x128xf32>
    %43 = vector.broadcast %41 : vector<1x128xf32> to vector<10x128xf32>
    %44 = arith.mulf %42, %43 : vector<10x128xf32>
    %45 = arith.addf %39, %44 : vector<10x128xf32>
    %46 = vector.extract_strided_slice %7 {offsets = [0, 6], sizes = [10, 1], strides = [1, 1]} : vector<10x10xf32> to vector<10x1xf32>
    %47 = vector.extract_strided_slice %6 {offsets = [6, 0], sizes = [1, 128], strides = [1, 1]} : vector<10x128xf32> to vector<1x128xf32>
    %48 = vector.broadcast %46 : vector<10x1xf32> to vector<10x128xf32>
    %49 = vector.broadcast %47 : vector<1x128xf32> to vector<10x128xf32>
    %50 = arith.mulf %48, %49 : vector<10x128xf32>
    %51 = arith.addf %45, %50 : vector<10x128xf32>
    %52 = vector.extract_strided_slice %7 {offsets = [0, 7], sizes = [10, 1], strides = [1, 1]} : vector<10x10xf32> to vector<10x1xf32>
    %53 = vector.extract_strided_slice %6 {offsets = [7, 0], sizes = [1, 128], strides = [1, 1]} : vector<10x128xf32> to vector<1x128xf32>
    %54 = vector.broadcast %52 : vector<10x1xf32> to vector<10x128xf32>
    %55 = vector.broadcast %53 : vector<1x128xf32> to vector<10x128xf32>
    %56 = arith.mulf %54, %55 : vector<10x128xf32>
    %57 = arith.addf %51, %56 : vector<10x128xf32>
    %58 = vector.extract_strided_slice %7 {offsets = [0, 8], sizes = [10, 1], strides = [1, 1]} : vector<10x10xf32> to vector<10x1xf32>
    %59 = vector.extract_strided_slice %6 {offsets = [8, 0], sizes = [1, 128], strides = [1, 1]} : vector<10x128xf32> to vector<1x128xf32>
    %60 = vector.broadcast %58 : vector<10x1xf32> to vector<10x128xf32>
    %61 = vector.broadcast %59 : vector<1x128xf32> to vector<10x128xf32>
    %62 = arith.mulf %60, %61 : vector<10x128xf32>
    %63 = arith.addf %57, %62 : vector<10x128xf32>
    %64 = vector.extract_strided_slice %7 {offsets = [0, 9], sizes = [10, 1], strides = [1, 1]} : vector<10x10xf32> to vector<10x1xf32>
    %65 = vector.extract_strided_slice %6 {offsets = [9, 0], sizes = [1, 128], strides = [1, 1]} : vector<10x128xf32> to vector<1x128xf32>
    %66 = vector.broadcast %64 : vector<10x1xf32> to vector<10x128xf32>
    %67 = vector.broadcast %65 : vector<1x128xf32> to vector<10x128xf32>
    %68 = arith.mulf %66, %67 : vector<10x128xf32>
    %69 = arith.addf %63, %68 : vector<10x128xf32>
    %70 = math.tanh %69 : vector<10x128xf32>
    %c0_9 = arith.constant 0 : index
    %c0_10 = arith.constant 0 : index
    %71 = vector.load %arg6[%c0_9, %c0_10] : memref<10x2xf32, #tpu.memory_space<vmem>>, vector<10x2xf32>
    %cst_11 = arith.constant dense<0.000000e+00> : vector<128x2xf32>
    %72 = tpu.matmul %70, %71, %cst_11 {dimension_numbers = #tpu.dot_dimension_numbers<[0], [0], [1], [1], [0, 1, 1, 1], [], []>, precision = #tpu.contract_precision<fp32>} : vector<10x128xf32>, vector<10x2xf32>, vector<128x2xf32> -> vector<128x2xf32>
    %c0_12 = arith.constant 0 : index
    %c0_13 = arith.constant 0 : index
    %73 = vector.load %arg7[%c0_12, %c0_13] : memref<1x2xf32, #tpu.memory_space<vmem>>, vector<1x2xf32>
    %74 = vector.broadcast %73 : vector<1x2xf32> to vector<128x2xf32>
    %75 = arith.addf %72, %74 : vector<128x2xf32>
    %76 = math.cos %75 : vector<128x2xf32>
    %c0_14 = arith.constant 0 : index
    %c0_15 = arith.constant 0 : index
    %77 = vector.load %arg8[%c0_14, %c0_15] : memref<128x2xf32, #tpu.memory_space<vmem>>, vector<128x2xf32>
    tpu.vector_store %arg8[%c0_14, %c0_15], %76 {strides = array<i32>} : memref<128x2xf32, #tpu.memory_space<vmem>>, vector<128x2xf32>,
    return
  }
  func.func @transform_0(%arg0: i32) -> (i32, i32) {
    %c0_i32 = arith.constant 0 : i32
    %c0_i32_0 = arith.constant 0 : i32
    return %arg0, %c0_i32 : i32, i32
  }
  func.func @transform_1(%arg0: i32) -> (i32, i32) {
    %c0_i32 = arith.constant 0 : i32
    %c0_i32_0 = arith.constant 0 : i32
    %c0_i32_1 = arith.constant 0 : i32
    return %c0_i32, %c0_i32_0 : i32, i32
  }
  func.func @transform_2(%arg0: i32) -> (i32, i32) {
    %c0_i32 = arith.constant 0 : i32
    %c0_i32_0 = arith.constant 0 : i32
    %c0_i32_1 = arith.constant 0 : i32
    return %c0_i32, %c0_i32_0 : i32, i32
  }
  func.func @transform_3(%arg0: i32) -> (i32, i32) {
    %c0_i32 = arith.constant 0 : i32
    %c0_i32_0 = arith.constant 0 : i32
    %c0_i32_1 = arith.constant 0 : i32
    return %c0_i32, %c0_i32_0 : i32, i32
  }
  func.func @transform_4(%arg0: i32) -> (i32, i32) {
    %c0_i32 = arith.constant 0 : i32
    %c0_i32_0 = arith.constant 0 : i32
    %c0_i32_1 = arith.constant 0 : i32
    return %c0_i32, %c0_i32_0 : i32, i32
  }
  func.func @transform_5(%arg0: i32) -> (i32, i32) {
    %c0_i32 = arith.constant 0 : i32
    %c0_i32_0 = arith.constant 0 : i32
    %c0_i32_1 = arith.constant 0 : i32
    return %c0_i32, %c0_i32_0 : i32, i32
  }
  func.func @transform_6(%arg0: i32) -> (i32, i32) {
    %c0_i32 = arith.constant 0 : i32
    %c0_i32_0 = arith.constant 0 : i32
    %c0_i32_1 = arith.constant 0 : i32
    return %c0_i32, %c0_i32_0 : i32, i32
  }
  func.func @transform_7(%arg0: i32) -> (i32, i32) {
    %c0_i32 = arith.constant 0 : i32
    %c0_i32_0 = arith.constant 0 : i32
    return %arg0, %c0_i32 : i32, i32
  }
}

</mosaic_0001>

<bundles_post_ra>
// kernel: tpu_custom_call.1
= control target key start
LH: loop header
LB: loop body
LE: loop exit
PB: predicated region body
PF: predicated region fallthrough
CT: control target
= control target key end

     0   :  { %vm56_vm0 = vcmask 15360   ;;  %vm720_vm1 = vcmask 1041408   ;;  %vm671_vm2 = vcmask 80896   ;;  %s6390_s0 = inlined_call_operand.vmem [shape: f32[128,2], index: 0, kind: input, shape index: {}]   ;;  %s6391_s3 = inlined_call_operand.vmem [shape: f32[10,10], index: 3, kind: input, shape index: {}]   ;;  %s6392_s1 = inlined_call_operand.vmem [shape: f32[10,2], index: 1, kind: input, shape index: {}]   ;;  %s6393_s4 = inlined_call_operand.vmem [shape: f32[10,1], index: 4, kind: input, shape index: {}]   ;;  %s6394_s2 = inlined_call_operand.vmem [shape: f32[10,1], index: 2, kind: input, shape index: {}]   ;;  %s6395_s5 = inlined_call_operand.vmem [shape: f32[10,2], index: 5, kind: input, shape index: {}]   ;;  %s6396_s6 = inlined_call_operand.vmem [shape: f32[1,2], index: 6, kind: input, shape index: {}]   ;;  %s6397_s7 = inlined_call_operand.vmem [shape: f32[128,2], index: 7, kind: output, shape index: {}]  }
   0x1   :  { %v41_v0 = vld [vmem:[%s6390_s0 + $0x78] sm:$0xff]  ;;  %v40_v1 = vld [vmem:[%s6390_s0 + $0x70] sm:$0xff]  ;;  %v39_v2 = vld [vmem:[%s6390_s0 + $0x68] sm:$0xff] }
   0x2   :  { %v109_v3 = vsel %vm56_vm0, %v41_v0, 0  ;;  %v106_v4 = vsel %vm56_vm0, %v40_v1, 0  ;;  %v103_v5 = vsel %vm56_vm0, %v39_v2, 0  ;;  %v38_v6 = vld [vmem:[%s6390_s0 + $0x60] sm:$0xff]  ;;  %v37_v7 = vld [vmem:[%s6390_s0 + $0x58] sm:$0xff]  ;;  %v36_v17 = vld [vmem:[%s6390_s0 + $0x50] sm:$0xff] }
   0x3   :  { %v4003_v8 = vand.u32 4294901760, %v109_v3  ;;  %v4005_v9 = vand.u32 4294901760, %v106_v4  ;;  %v4007_v10 = vand.u32 4294901760, %v103_v5  ;;  %v100_v11 = vsel %vm56_vm0, %v38_v6, 0  ;;  %v35_v26 = vld [vmem:[%s6390_s0 + $0x48] sm:$0xff]  ;;  %v34_v34 = vld [vmem:[%s6390_s0 + $0x40] sm:$0xff] }
   0x4   :  { %v4010_v12 = vand.u32 4294901760, %v100_v11  ;;  %v97_v15 = vsel %vm56_vm0, %v37_v7, 0  ;;  %v94_v21 = vsel %vm56_vm0, %v36_v17, 0  ;;  %v91_v29 = vsel %vm56_vm0, %v35_v26, 0  ;;  %v33_v41 = vld [vmem:[%s6390_s0 + $0x38] sm:$0xff]  ;;  %v32_v48 = vld [vmem:[%s6390_s0 + $0x30] sm:$0xff] }
   0x5   :  { %112 = vmatpush.xpose.msra.mxu0 %v4003_v8  ;;  %v4014_v13 = vsub.f32 %v109_v3, %v4003_v8  ;;  %v4017_v14 = vsub.f32 %v106_v4, %v4005_v9  ;;  %v4021_v16 = vsub.f32 %v103_v5, %v4007_v10  ;;  %325 = vmatpush.xpose.msra.mxu3 %v4003_v8  ;;  %v4030_v20 = vand.u32 4294901760, %v97_v15  ;;  %v31_v55 = vld [vmem:[%s6390_s0 + $0x28] sm:$0xff]  ;;  %v30_v62 = vld [vmem:[%s6390_s0 + $0x20] sm:$0xff]  ;;  %v29_v5 = vld [vmem:[%s6390_s0 + $0x18] sm:$0xff] }
   0x6   :  { %v4042_v25 = vsub.f32 %v100_v11, %v4010_v12  ;;  %v4049_v28 = vand.u32 4294901760, %v94_v21  ;;  %v4065_v35 = vand.u32 4294901760, %v91_v29  ;;  %v88_v40 = vsel %vm56_vm0, %v34_v34, 0  ;;  %v27_v34 = vld [vmem:[%s6390_s0 + $0x8] sm:$0xff] }
   0x7   :  { %v162_v18 = vand.u32 4294901760, %v4014_v13  ;;  %v168_v19 = vand.u32 4294901760, %v4017_v14  ;;  %267 = vmatpush.xpose.msra.mxu2 %v4014_v13  ;;  %v174_v24 = vand.u32 4294901760, %v4021_v16  ;;  %v4058_v33 = vsub.f32 %v97_v15, %v4030_v20 }
   0x8   :  { %v180_v32 = vand.u32 4294901760, %v4042_v25  ;;  %v4068_v36 = vsub.f32 %v94_v21, %v4049_v28  ;;  %v4081_v42 = vand.u32 4294901760, %v88_v40  ;;  %v85_v46 = vsel %vm56_vm0, %v33_v41, 0 }
   0x9   :  { %114 = vmatpush.xpose.msra.mxu0 %v4005_v9  ;;  %v163_v22 = vsub.f32 %v4014_v13, %v162_v18  ;;  %v169_v23 = vsub.f32 %v4017_v14, %v168_v19  ;;  %327 = vmatpush.xpose.msra.mxu3 %v4005_v9  ;;  %v175_v31 = vsub.f32 %v4021_v16, %v174_v24  ;;  %v186_v39 = vand.u32 4294901760, %v4058_v33 }
   0xa   :  { %v181_v38 = vsub.f32 %v4042_v25, %v180_v32  ;;  %v192_v43 = vand.u32 4294901760, %v4068_v36  ;;  %v4090_v47 = vsub.f32 %v91_v29, %v4065_v35  ;;  %v4100_v50 = vand.u32 4294901760, %v85_v46 }
   0xb   :  { %v164_v27 = vand.u32 4294901760, %v163_v22  ;;  %270 = vmatpush.xpose.msra.mxu2 %v4017_v14  ;;  %v170_v30 = vand.u32 4294901760, %v169_v23  ;;  %v176_v37 = vand.u32 4294901760, %v175_v31  ;;  %v187_v45 = vsub.f32 %v4058_v33, %v186_v39  ;;  %v28_v22 = vld [vmem:[%s6390_s0 + $0x10] sm:$0xff] }
   0xc   :  { %v182_v44 = vand.u32 4294901760, %v181_v38  ;;  %v193_v49 = vsub.f32 %v4068_v36, %v192_v43  ;;  %v198_v52 = vand.u32 4294901760, %v4090_v47  ;;  %v82_v53 = vsel %vm56_vm0, %v32_v48, 0 }
   0xd   :  { %116 = vmatpush.xpose.msra.mxu0 %v4007_v10  ;;  %165 = vmatpush.xpose.msra.mxu1 %v164_v27  ;;  %v188_v51 = vand.u32 4294901760, %v187_v45  ;;  %v4106_v54 = vsub.f32 %v88_v40, %v4081_v42  ;;  %v4113_v56 = vand.u32 4294901760, %v82_v53  ;;  %v79_v57 = vsel %vm56_vm0, %v31_v55, 0 }
   0xe   :  { %329 = vmatpush.xpose.msra.mxu3 %v4007_v10  ;;  %v194_v58 = vand.u32 4294901760, %v193_v49  ;;  %v199_v59 = vsub.f32 %v4090_v47, %v198_v52  ;;  %v4122_v61 = vsub.f32 %v85_v46, %v4100_v50  ;;  %v4129_v63 = vand.u32 4294901760, %v79_v57  ;;  %v26_v46 = vld [vmem:[%s6390_s0] sm:$0xff] }
   0xf   :  { %273 = vmatpush.xpose.msra.mxu2 %v4021_v16  ;;  %v204_v60 = vand.u32 4294901760, %v4106_v54  ;;  %v76_v0 = vsel %vm56_vm0, %v30_v62, 0  ;;  %v4138_v4 = vsub.f32 %v82_v53, %v4113_v56  ;;  %v73_v21 = vsel %vm56_vm0, %v29_v5, 0 }
  0x10   :  { %v200_v1 = vand.u32 4294901760, %v199_v59  ;;  %v210_v3 = vand.u32 4294901760, %v4122_v61  ;;  %v4145_v6 = vand.u32 4294901760, %v76_v0  ;;  %v4153_v17 = vsub.f32 %v79_v57, %v4129_v63 }
  0x11   :  { %118 = vmatpush.xpose.msra.mxu0 %v4010_v12  ;;  %171 = vmatpush.xpose.msra.mxu1 %v170_v30  ;;  %v205_v2 = vsub.f32 %v4106_v54, %v204_v60  ;;  %v216_v15 = vand.u32 4294901760, %v4138_v4  ;;  %v4168_v29 = vand.u32 4294901760, %v73_v21  ;;  %v70_v31 = vsel %vm56_vm0, %v28_v22, 0 }
  0x12   :  { %331 = vmatpush.xpose.msra.mxu3 %v4010_v12  ;;  %v211_v11 = vsub.f32 %v4122_v61, %v210_v3  ;;  %v4162_v23 = vsub.f32 %v76_v0, %v4145_v6  ;;  %v222_v30 = vand.u32 4294901760, %v4153_v17  ;;  %v4182_v41 = vand.u32 4294901760, %v70_v31 }
  0x13   :  { %276 = vmatpush.xpose.msra.mxu2 %v4042_v25  ;;  %v206_v7 = vand.u32 4294901760, %v205_v2  ;;  %v217_v27 = vsub.f32 %v4138_v4, %v216_v15  ;;  %v67_v45 = vsel %vm56_vm0, %v27_v34, 0  ;;  %v64_v57 = vsel %vm56_vm0, %v26_v46, 0  ;;  %v488_v25 = vld [vmem:[%s6393_s4 + $0x8] sm:$0x3] }
  0x14   :  { %v212_v26 = vand.u32 4294901760, %v211_v11  ;;  %v223_v40 = vsub.f32 %v4153_v17, %v222_v30  ;;  %v4201_v55 = vsub.f32 %v70_v31, %v4182_v41  ;;  %v4210_v62 = vand.u32 4294901760, %v64_v57 }
  0x15   :  { %120 = vmatpush.xpose.msra.mxu0 %v4030_v20  ;;  %177 = vmatpush.xpose.msra.mxu1 %v176_v37  ;;  %v228_v37 = vand.u32 4294901760, %v4162_v23  ;;  %v218_v38 = vand.u32 4294901760, %v217_v27  ;;  %v3929_v27 = vmov 0  }
  0x16   :  { %333 = vmatpush.xpose.msra.mxu3 %v4030_v20  ;;  %v224_v49 = vand.u32 4294901760, %v223_v40  ;;  %v240_v0 = vand.u32 4294901760, %v4201_v55  ;;  %v4224_v11 = vsub.f32 %v64_v57, %v4210_v62  ;;  %3902 = vset.pattern.permute.xlu1 %v3929_v27 }
  0x17   :  { %279 = vmatpush.xpose.msra.mxu2 %v4058_v33  ;;  %v229_v48 = vsub.f32 %v4162_v23, %v228_v37  ;;  %3901 = vset.pattern.permute.xlu0 %v3929_v27  ;;  %v3930_v33 = vmov 1  }
  0x18   :  { %v241_v5 = vsub.f32 %v4201_v55, %v240_v0  ;;  %3903 = vset.pattern.permute.xlu2 %v3930_v33 }
  0x19   :  { %122 = vmatpush.xpose.msra.mxu0 %v4049_v28  ;;  %183 = vmatpush.xpose.msra.mxu1 %v182_v44  ;;  %v4185_v44 = vsub.f32 %v73_v21, %v4168_v29 }
  0x1a   :  { %335 = vmatpush.xpose.msra.mxu3 %v4049_v28  ;;  %v242_v21 = vand.u32 4294901760, %v241_v5 }
  0x1b   :  { %282 = vmatpush.xpose.msra.mxu2 %v4068_v36  ;;  %v234_v53 = vand.u32 4294901760, %v4185_v44  ;;  %v3934_v36 = vmov 7  }
  0x1d   :  { %124 = vmatpush.xpose.msra.mxu0 %v4065_v35  ;;  %189 = vmatpush.xpose.msra.mxu1 %v188_v51  ;;  %v4197_v51 = vand.u32 4294901760, %v67_v45  ;;  %v235_v59 = vsub.f32 %v4185_v44, %v234_v53 }
  0x1e   :  { %337 = vmatpush.xpose.msra.mxu3 %v4065_v35 }
  0x1f   :  { %285 = vmatpush.xpose.msra.mxu2 %v4090_v47  ;;  %v236_v2 = vand.u32 4294901760, %v235_v59  ;;  %v3937_v47 = vmov 6  }
  0x21   :  { %126 = vmatpush.xpose.msra.mxu0 %v4081_v42  ;;  %195 = vmatpush.xpose.msra.mxu1 %v194_v58  ;;  %v230_v58 = vand.u32 4294901760, %v229_v48  ;;  %v487_v48 = vld [vmem:[%s6393_s4] sm:$0xff] }
  0x22   :  { %339 = vmatpush.xpose.msra.mxu3 %v4081_v42 }
  0x23   :  { %288 = vmatpush.xpose.msra.mxu2 %v4106_v54 }
  0x25   :  { %128 = vmatpush.xpose.msra.mxu0 %v4100_v50  ;;  %201 = vmatpush.xpose.msra.mxu1 %v200_v1  ;;  %v4214_v1 = vsub.f32 %v67_v45, %v4197_v51  ;;  %v42_v45 = vld [vmem:[%s6392_s1] sm:$0xff] }
  0x26   :  { %341 = vmatpush.xpose.msra.mxu3 %v4100_v50  ;;  %v58_v13 = vsel %vm56_vm0, %v42_v45, 0 }
  0x27   :  { %291 = vmatpush.xpose.msra.mxu2 %v4122_v61 }
  0x29   :  { %130 = vmatpush.xpose.msra.mxu0 %v4113_v56  ;;  %207 = vmatpush.xpose.msra.mxu1 %v206_v7  ;;  %v246_v7 = vand.u32 4294901760, %v4214_v1 }
  0x2a   :  { %343 = vmatpush.xpose.msra.mxu3 %v4113_v56 }
  0x2b   :  { %294 = vmatpush.xpose.msra.mxu2 %v4138_v4  ;;  %v247_v22 = vsub.f32 %v4214_v1, %v246_v7 }
  0x2d   :  { %132 = vmatpush.xpose.msra.mxu0 %v4129_v63  ;;  %213 = vmatpush.xpose.msra.mxu1 %v212_v26  ;;  %v252_v26 = vand.u32 4294901760, %v4224_v11  ;;  %v248_v31 = vand.u32 4294901760, %v247_v22 }
  0x2e   :  { %345 = vmatpush.xpose.msra.mxu3 %v4129_v63 }
  0x2f   :  { %297 = vmatpush.xpose.msra.mxu2 %v4153_v17  ;;  %v253_v34 = vsub.f32 %v4224_v11, %v252_v26 }
  0x31   :  { %134 = vmatpush.xpose.msra.mxu0 %v4145_v6  ;;  %219 = vmatpush.xpose.msra.mxu1 %v218_v38  ;;  %v4246_v38 = vld [vmem:[%s6391_s3] sm:$0xff]  ;;  %v254_v40 = vand.u32 4294901760, %v253_v34 }
  0x32   :  { %347 = vmatpush.xpose.msra.mxu3 %v4145_v6  ;;  %491 = vperm.xlu1 %3902, %v4246_v38  }
  0x33   :  { %300 = vmatpush.xpose.msra.mxu2 %v4162_v23  ;;  %515 = vperm.xlu2 %3903, %v4246_v38  }
  0x35   :  { %136 = vmatpush.xpose.msra.mxu0 %v4168_v29  ;;  %225 = vmatpush.xpose.msra.mxu1 %v224_v49  ;;  %v43_v49 = vld [vmem:[%s6392_s1 + $0x8] sm:$0x3] }
  0x36   :  { %349 = vmatpush.xpose.msra.mxu3 %v4168_v29 }
  0x37   :  { %303 = vmatpush.xpose.msra.mxu2 %v4185_v44 }
  0x39   :  { %138 = vmatpush.xpose.msra.mxu0 %v4182_v41  ;;  %231 = vmatpush.xpose.msra.mxu1 %v230_v58  ;;  %v3931_v58 = vmov 3  }
  0x3a   :  { %351 = vmatpush.xpose.msra.mxu3 %v4182_v41  ;;  %504 = vperm.xlu1 %3902, %v487_v48  }
  0x3b   :  { %306 = vmatpush.xpose.msra.mxu2 %v4201_v55  ;;  %3904 = vset.pattern.permute.xlu2 %v3929_v27 }
  0x3d   :  { %140 = vmatpush.xpose.msra.mxu0 %v4197_v51  ;;  %237 = vmatpush.xpose.msra.mxu1 %v236_v2 }
  0x3e   :  { %353 = vmatpush.xpose.msra.mxu3 %v4197_v51 }
  0x3f   :  { %309 = vmatpush.xpose.msra.mxu2 %v4214_v1 }
  0x41   :  { %142 = vmatpush.xpose.msra.mxu0 %v4210_v62  ;;  %243 = vmatpush.xpose.msra.mxu1 %v242_v21 }
  0x42   :  { %355 = vmatpush.xpose.msra.mxu3 %v4210_v62  ;;  %509 = vperm.xlu1 %3902, %v488_v25  }
  0x43   :  { %312 = vmatpush.xpose.msra.mxu2 %v4224_v11 }
  0x45   :  { %372 = vmatpush.xpose.msrb.mxu0 %v162_v18  ;;  %249 = vmatpush.xpose.msra.mxu1 %v248_v31  ;;  %v4257_v18 = vand.u32 4294901760, %v58_v13 }
  0x47   :  { %v144_v46 = vsub.f32 %v58_v13, %v4257_v18 }
  0x49   :  { %376 = vmatpush.xpose.msrb.mxu0 %v168_v19  ;;  %255 = vmatpush.xpose.msra.mxu1 %v254_v40  ;;  %v145_v14 = vand.u32 4294901760, %v144_v46 }
  0x4a   :  { %315 = vmatmul.f32.vlgmr.msra.gmra.mxu2 %v144_v46  ;;  %3907 = vset.pattern.permute.xlu1 %v3931_v58 }
  0x4b   :  { %v146_v19 = vsub.f32 %v144_v46, %v145_v14  ;;  %359 = vmatmul.f32.vlgmr.msra.gmra.mxu3 %v145_v14  ;;  %541 = vperm.xlu1 %3907, %v4246_v38  }
  0x4c   :  { %257 = vmatmul.f32.vlgmr.msra.gmra.mxu1 %v4257_v18 }
  0x4d   :  { %380 = vmatpush.xpose.msrb.mxu0 %v174_v24  ;;  %443 = vmatpush.xpose.msrb.mxu1 %v4003_v8  ;;  %v61_v8 = vsel %vm56_vm0, %v43_v49, 0  ;;  %v147_v16 = vand.u32 4294901760, %v146_v19 }
  0x4e   :  { %v4274_v24 = vand.u32 4294901760, %v61_v8 }
  0x4f   :  { %148 = vmatmul.f32.vlgmr.msra.gmra.mxu0 %v147_v16 }
  0x50   :  { %v152_v57 = vsub.f32 %v61_v8, %v4274_v24 }
  0x51   :  { %384 = vmatpush.xpose.msrb.mxu0 %v180_v32  ;;  %445 = vmatpush.xpose.msrb.mxu1 %v4005_v9 }
  0x52   :  { %320 = vmatmul.f32.gmra.mxu2 %v152_v57  ;;  %v153_v9 = vand.u32 4294901760, %v152_v57 }
  0x54   :  { %261 = vmatmul.f32.gmra.mxu1 %v4274_v24  ;;  %v154_v32 = vsub.f32 %v152_v57, %v153_v9  ;;  %365 = vmatmul.f32.gmra.mxu3 %v153_v9 }
  0x55   :  { %388 = vmatpush.xpose.msrb.mxu0 %v186_v39  ;;  %447 = vmatpush.xpose.msrb.mxu1 %v4007_v10  ;;  %v44_v10 = vld [vmem:[%s6394_s2] sm:$0xff] }
  0x56   :  { %v155_v39 = vand.u32 4294901760, %v154_v32  ;;  %48 = vperm.xlu0 %3901, %v44_v10  }
  0x58   :  { %156 = vmatmul.f32.gmra.mxu0 %v155_v39 }
  0x59   :  { %392 = vmatpush.xpose.msrb.mxu0 %v192_v43  ;;  %449 = vmatpush.xpose.msrb.mxu1 %v4010_v12  ;;  %v486_v12 = vld [vmem:[%s6391_s3 + $0x8] sm:$0x3]  ;;  %v3936_v43 = vmov 8  }
  0x5a   :  { %496 = vperm.xlu2 %3904, %v486_v12   ;;  %545 = vperm.xlu1 %3907, %v486_v12  }
  0x5d   :  { %396 = vmatpush.xpose.msrb.mxu0 %v198_v52  ;;  %451 = vmatpush.xpose.msrb.mxu1 %v4030_v20  ;;  %v45_v20 = vld [vmem:[%s6394_s2 + $0x8] sm:$0x3] }
  0x5e   :  { %53 = vperm.xlu0 %3901, %v45_v20  }
  0x61   :  { %400 = vmatpush.xpose.msrb.mxu0 %v204_v60  ;;  %453 = vmatpush.xpose.msrb.mxu1 %v4049_v28  ;;  %v3932_v28 = vmov 2  }
  0x62   :  { %3906 = vset.pattern.permute.xlu2 %v3930_v33 }
  0x63   :  { %519 = vperm.xlu2 %3906, %v486_v12  }
  0x65   :  { %404 = vmatpush.xpose.msrb.mxu0 %v210_v3  ;;  %455 = vmatpush.xpose.msrb.mxu1 %v4065_v35  ;;  %v3933_v35 = vmov 4  }
  0x66   :  { %3905 = vset.pattern.permute.xlu0 %v3932_v28  ;;  %3911 = vset.pattern.permute.xlu1 %v3933_v35 }
  0x67   :  { %528 = vperm.xlu0 %3905, %v4246_v38   ;;  %558 = vperm.xlu1 %3911, %v486_v12  }
  0x69   :  { %408 = vmatpush.xpose.msrb.mxu0 %v216_v15  ;;  %457 = vmatpush.xpose.msrb.mxu1 %v4081_v42  ;;  %v3935_v42 = vmov 5  }
  0x6b   :  { %3908 = vset.pattern.permute.xlu2 %v3932_v28 }
  0x6c   :  { %532 = vperm.xlu2 %3908, %v486_v12  }
  0x6d   :  { %412 = vmatpush.xpose.msrb.mxu0 %v222_v30  ;;  %459 = vmatpush.xpose.msrb.mxu1 %v4100_v50  ;;  %v3938_v50 = vmov 9  }
  0x6f   :  { %3909 = vset.pattern.permute.xlu0 %v3933_v35  ;;  %3914 = vset.pattern.permute.xlu1 %v3934_v36 }
  0x70   :  { %554 = vperm.xlu0 %3909, %v4246_v38   ;;  %593 = vperm.xlu1 %3914, %v4246_v38  }
  0x71   :  { %416 = vmatpush.xpose.msrb.mxu0 %v228_v37  ;;  %461 = vmatpush.xpose.msrb.mxu1 %v4113_v56 }
  0x74   :  { %3910 = vset.pattern.permute.xlu2 %v3935_v42 }
  0x75   :  { %420 = vmatpush.xpose.msrb.mxu0 %v234_v53  ;;  %463 = vmatpush.xpose.msrb.mxu1 %v4129_v63 }
  0x76   :  { %567 = vperm.xlu2 %3910, %v4246_v38  }
  0x78   :  { %3913 = vset.pattern.permute.xlu0 %v3935_v42  ;;  %3915 = vset.pattern.permute.xlu1 %v3936_v43 }
  0x79   :  { %424 = vmatpush.xpose.msrb.mxu0 %v240_v0  ;;  %465 = vmatpush.xpose.msrb.mxu1 %v4145_v6 }
  0x7a   :  { %571 = vperm.xlu0 %3913, %v486_v12   ;;  %606 = vperm.xlu1 %3915, %v4246_v38  }
  0x7d   :  { %428 = vmatpush.xpose.msrb.mxu0 %v246_v7  ;;  %467 = vmatpush.xpose.msrb.mxu1 %v4168_v29 }
  0x7e   :  { %3912 = vset.pattern.permute.xlu2 %v3937_v47 }
  0x7f   :  { %580 = vperm.xlu2 %3912, %v4246_v38  }
  0x81   :  { %432 = vmatpush.xpose.msrb.mxu0 %v252_v26  ;;  %469 = vmatpush.xpose.msrb.mxu1 %v4182_v41 }
  0x82   :  { %3917 = vset.pattern.permute.xlu0 %v3938_v50  ;;  %610 = vperm.xlu1 %3915, %v486_v12  }
  0x83   :  { %619 = vperm.xlu0 %3917, %v4246_v38  }
  0x84   :  { %434 = vmatmul.f32.vlgmr.msrb.gmra.mxu0 %v4257_v18 }
  0x85   :  { %471 = vmatpush.xpose.msrb.mxu1 %v4197_v51 }
  0x87   :  { %584 = vperm.xlu2 %3912, %v486_v12  }
  0x89   :  { %473 = vmatpush.xpose.msrb.mxu1 %v4210_v62 }
  0x8c   :  { %438 = vmatmul.f32.gmra.mxu0 %v4274_v24  ;;  %475 = vmatmul.f32.vlgmr.msrb.gmra.mxu1 %v4257_v18 }
  0x8d   :  { %v516_v54 = vpop.permute.xlu2 %515 }
  0x8f   :  { %3916 = vset.pattern.permute.xlu2 %v3934_v36 }
  0x90   :  { %597 = vperm.xlu2 %3916, %v486_v12  }
  0x94   :  { %479 = vmatmul.f32.gmra.mxu1 %v4274_v24 }
  0x98   :  { %3918 = vset.pattern.permute.xlu2 %v3938_v50 }
  0x99   :  { %623 = vperm.xlu2 %3918, %v486_v12  }
  0xa4   :  { %v492_v52 = vpop.permute.xlu1 %491 }
  0xac   :  { %v505_v56 = vpop.permute.xlu1 %504 }
  0xb4   :  { %v497_v60 = vpop.permute.xlu2 %496  ;;  %v510_v61 = vpop.permute.xlu1 %509 }
  0xbd   :  { %v520_v63 = vpop.permute.xlu2 %519  ;;  %v542_v6 = vpop.permute.xlu1 %541 }
  0xc6   :  { %v533_v17 = vpop.permute.xlu2 %532 }
  0xc8   :  { %v49_v4 = vpop.permute.xlu0 %48 }
  0xc9   :  { %v258_v15 = vpop.f32.mrf.mxu1 }
  0xcc   :  { %v149_v3 = vpop.f32.mrf.mxu0  ;;  %v546_v41 = vpop.permute.xlu1 %545 }
  0xcd   :  { %v150_v23 = vadd.f32 %v149_v3, %v49_v4  ;;  %v316_v44 = vpop.f32.mrf.mxu2 }
  0xce   :  { %v360_v59 = vpop.f32.mrf.mxu3 }
  0xcf   :  { %v259_v30 = vadd.f32 %v258_v15, %v150_v23 }
  0xd0   :  { %v54_v37 = vpop.permute.xlu0 %53  ;;  %v568_v55 = vpop.permute.xlu2 %567 }
  0xd1   :  { %v262_v51 = vpop.f32.mrf.mxu1  ;;  %v317_v53 = vadd.f32 %v316_v44, %v259_v30 }
  0xd3   :  { %v361_v1 = vadd.f32 %v360_v59, %v317_v53 }
  0xd5   :  { %v157_v29 = vpop.f32.mrf.mxu0  ;;  %v321_v21 = vpop.f32.mrf.mxu2 }
  0xd6   :  { %v158_v62 = vadd.f32 %v157_v29, %v54_v37 }
  0xd7   :  { %v366_v38 = vpop.f32.mrf.mxu3 }
  0xd8   :  { %v263_v5 = vadd.f32 %v262_v51, %v158_v62 }
  0xd9   :  { %v529_v2 = vpop.permute.xlu0 %528  ;;  %v559_v11 = vpop.permute.xlu1 %558 }
  0xda   :  { %v322_v31 = vadd.f32 %v321_v21, %v263_v5  ;;  %v581_v34 = vpop.permute.xlu2 %580 }
  0xdc   :  { %v367_v45 = vadd.f32 %v366_v38, %v322_v31 }
  0xe2   :  { %v555_v13 = vpop.permute.xlu0 %554  ;;  %v594_v14 = vpop.permute.xlu1 %593 }
  0xe3   :  { %v585_v57 = vpop.permute.xlu2 %584 }
  0xeb   :  { %v598_v37 = vpop.permute.xlu2 %597 }
  0xec   :  { %v572_v12 = vpop.permute.xlu0 %571  ;;  %v607_v43 = vpop.permute.xlu1 %606 }
  0xf3   :  { %v624_v38 = vpop.permute.xlu2 %623 }
 0x101   :  { %v435_v0 = vpop.f32.mrf.mxu0 }
 0x102   :  { %v436_v7 = vadd.f32 %v435_v0, %v361_v1 }
 0x109   :  { %v476_v22 = vpop.f32.mrf.mxu1  ;;  %v439_v40 = vpop.f32.mrf.mxu0 }
 0x10a   :  { %v477_v26 = vadd.f32 %v476_v22, %v436_v7  ;;  %v440_v48 = vadd.f32 %v439_v40, %v367_v45  ;;  %v611_v22 = vpop.permute.xlu1 %610 }
 0x10c   :  { %3920 = vtanh.f32 %v477_v26 }
 0x111   :  { %v480_v18 = vpop.f32.mrf.mxu1 }
 0x112   :  { %v3921_v46 = vpop.eup %3920  ;;  %v481_v8 = vadd.f32 %v480_v18, %v440_v48  ;;  %v634_v48 = vld [vmem:[%s6395_s5 + $0x8] sm:$0x3] }
 0x113   :  { %v499_v19 = vperm.slane %v3921_v46, 0  ;;  %v522_v49 = vperm.slane %v3921_v46, 1  ;;  %v535_v24 = vperm.slane %v3921_v46, 2  ;;  %v548_v32 = vperm.slane %v3921_v46, 3 }
 0x114   :  { %3922 = vtanh.f32 %v481_v8  ;;  %v561_v58 = vperm.slane %v3921_v46, 4  ;;  %v574_v42 = vperm.slane %v3921_v46, 5  ;;  %v600_v23 = vperm.slane %v3921_v46, 7 }
 0x115   :  { %v500_v16 = vmul.f32 %v499_v19, %v492_v52  ;;  %v523_v9 = vmul.f32 %v522_v49, %v516_v54  ;;  %v501_v33 = vmul.f32 %v499_v19, %v497_v60  ;;  %v536_v10 = vmul.f32 %v535_v24, %v529_v2  ;;  %v620_v2 = vpop.permute.xlu0 %619 }
 0x116   :  { %v524_v28 = vmul.f32 %v522_v49, %v520_v63  ;;  %v549_v36 = vmul.f32 %v548_v32, %v542_v6  ;;  %v537_v50 = vmul.f32 %v535_v24, %v533_v17  ;;  %v587_v52 = vperm.slane %v3921_v46, 6  ;;  %v633_v49 = vld [vmem:[%s6395_s5] sm:$0xff] }
 0x117   :  { %v512_v25 = vadd.f32 %v505_v56, %v500_v16  ;;  %v513_v20 = vadd.f32 %v510_v61, %v501_v33  ;;  %v562_v4 = vmul.f32 %v561_v58, %v555_v13  ;;  %v550_v15 = vmul.f32 %v548_v32, %v546_v41 }
 0x118   :  { %v575_v29 = vmul.f32 %v574_v42, %v568_v55  ;;  %v563_v30 = vmul.f32 %v561_v58, %v559_v11  ;;  %v588_v61 = vmul.f32 %v587_v52, %v581_v34  ;;  %v576_v53 = vmul.f32 %v574_v42, %v572_v12 }
 0x119   :  { %v525_v39 = vadd.f32 %v523_v9, %v512_v25  ;;  %v526_v47 = vadd.f32 %v524_v28, %v513_v20  ;;  %v601_v59 = vmul.f32 %v600_v23, %v594_v14  ;;  %v589_v0 = vmul.f32 %v587_v52, %v585_v57 }
 0x11a   :  { %v3923_v56 = vpop.eup %3922  ;;  %v602_v41 = vmul.f32 %v600_v23, %v598_v37  ;;  %v722_v14 = vsel %vm720_vm1, %v634_v48, 0  ;;  %v740_v16 = vand.u32 4294901760, %v633_v49 }
 0x11b   :  { %v538_v35 = vadd.f32 %v536_v10, %v525_v39  ;;  %v539_v54 = vadd.f32 %v537_v50, %v526_v47  ;;  %v613_v51 = vperm.slane %v3923_v56, 0  ;;  %v626_v17 = vperm.slane %v3923_v56, 1 }
 0x11c   :  { %v738_v19 = vand.u32 4294901760, %v722_v14  ;;  %v892_v57 = vsub.f32 %v633_v49, %v740_v16 }
 0x11d   :  { %v551_v3 = vadd.f32 %v549_v36, %v538_v35  ;;  %v552_v44 = vadd.f32 %v550_v15, %v539_v54  ;;  %v614_v7 = vmul.f32 %v613_v51, %v607_v43  ;;  %v627_v11 = vmul.f32 %v626_v17, %v620_v2 }
 0x11e   :  { %v615_v31 = vmul.f32 %v613_v51, %v611_v22  ;;  %v628_v45 = vmul.f32 %v626_v17, %v624_v38  ;;  %v886_v8 = vsub.f32 %v722_v14, %v738_v19  ;;  %739 = vmatpush.msra.mxu0 %v738_v19  ;;  %3880 = vmatpush.msrb.mxu2 %v738_v19  ;;  %v893_v9 = vand.u32 4294901760, %v892_v57 }
 0x11f   :  { %v564_v60 = vadd.f32 %v562_v4, %v551_v3  ;;  %v565_v6 = vadd.f32 %v563_v30, %v552_v44 }
 0x120   :  { %v887_v24 = vand.u32 4294901760, %v886_v8  ;;  %741 = vmatpush.msra.mxu0 %v740_v16  ;;  %3881 = vmatpush.msrb.mxu2 %v740_v16  ;;  %v894_v33 = vsub.f32 %v892_v57, %v893_v9 }
 0x121   :  { %v577_v63 = vadd.f32 %v575_v29, %v564_v60  ;;  %v578_v1 = vadd.f32 %v576_v53, %v565_v6 }
 0x122   :  { %978 = vmatpush.msrb.mxu0 %v886_v8  ;;  %v888_v25 = vsub.f32 %v886_v8, %v887_v24  ;;  %1195 = vmatpush.msra.mxu2 %v887_v24  ;;  %v895_v39 = vand.u32 4294901760, %v894_v33 }
 0x123   :  { %v590_v62 = vadd.f32 %v588_v61, %v577_v63  ;;  %v591_v21 = vadd.f32 %v589_v0, %v578_v1 }
 0x124   :  { %981 = vmatpush.msrb.mxu0 %v892_v57  ;;  %v889_v32 = vand.u32 4294901760, %v888_v25  ;;  %1199 = vmatpush.msra.mxu2 %v893_v9 }
 0x125   :  { %v603_v5 = vadd.f32 %v601_v59, %v590_v62  ;;  %v604_v26 = vadd.f32 %v602_v41, %v591_v21 }
 0x126   :  { %890 = vmatpush.msra.mxu1 %v889_v32  ;;  %3882 = vmatpush.msrb.mxu3 %v889_v32 }
 0x127   :  { %v616_v55 = vadd.f32 %v614_v7, %v603_v5  ;;  %v617_v40 = vadd.f32 %v615_v31, %v604_v26 }
 0x128   :  { %896 = vmatpush.msra.mxu1 %v895_v39  ;;  %3883 = vmatpush.msrb.mxu3 %v895_v39 }
 0x129   :  { %v629_v34 = vadd.f32 %v627_v11, %v616_v55  ;;  %v630_v13 = vadd.f32 %v628_v45, %v617_v40 }
 0x12a   :  { %1078 = vmatpush.msrb.mxu1 %v738_v19  ;;  %1280 = vmatpush.msra.mxu3 %v738_v19 }
 0x12b   :  { %3924 = vtanh.f32 %v629_v34 }
 0x12c   :  { %3926 = vtanh.f32 %v630_v13  ;;  %1080 = vmatpush.msrb.mxu1 %v740_v16  ;;  %1282 = vmatpush.msra.mxu3 %v740_v16 }
 0x131   :  { %v3925_v18 = vpop.eup %3924 }
 0x132   :  { %639 = vxpose.xlu1.b32.start [1/2] (short) %v3925_v18, 128  ;;  %v3927_v46 = vpop.eup %3926 }
 0x13a   :  { %640 = vxpose.xlu1.b32.end [2/2] (short) %v3927_v46, 128 }
 0x1d6   :  { %v655_v10 = vpop.trf.xlu1 }
 0x1d7   :  { %v673_v58 = vsel %vm671_vm2, %v655_v10, 0 }
 0x1d8   :  { %v4349_v12 = vand.u32 4294901760, %v673_v58 }
 0x1da   :  { %v743_v20 = vsub.f32 %v673_v58, %v4349_v12  ;;  %898 = vmatmul.f32.vlgmr.msra.gmra.mxu1 %v4349_v12 }
 0x1dc   :  { %v744_v28 = vand.u32 4294901760, %v743_v20 }
 0x1de   :  { %v745_v35 = vsub.f32 %v743_v20, %v744_v28  ;;  %v656_v36 = vpop.trf.xlu1 }
 0x1df   :  { %v676_v42 = vsel %vm671_vm2, %v656_v36, 0 }
 0x1e0   :  { %v746_v43 = vand.u32 4294901760, %v745_v35  ;;  %v4354_v47 = vand.u32 4294901760, %v676_v42 }
 0x1e2   :  { %v751_v50 = vsub.f32 %v676_v42, %v4354_v47  ;;  %747 = vmatmul.f32.vlgmr.msra.gmra.mxu0 %v746_v43  ;;  %902 = vmatmul.f32.gmra.mxu1 %v4354_v47 }
 0x1e4   :  { %v752_v52 = vand.u32 4294901760, %v751_v50 }
 0x1e6   :  { %v657_v3 = vpop.trf.xlu1  ;;  %v753_v4 = vsub.f32 %v751_v50, %v752_v52 }
 0x1e7   :  { %v679_v56 = vsel %vm671_vm2, %v657_v3, 0 }
 0x1e8   :  { %v4359_v54 = vand.u32 4294901760, %v679_v56  ;;  %v754_v15 = vand.u32 4294901760, %v753_v4 }
 0x1ea   :  { %v759_v23 = vsub.f32 %v679_v56, %v4359_v54  ;;  %755 = vmatmul.f32.gmra.mxu0 %v754_v15  ;;  %906 = vmatmul.f32.gmra.mxu1 %v4359_v54 }
 0x1ec   :  { %v760_v60 = vand.u32 4294901760, %v759_v23 }
 0x1ee   :  { %v658_v29 = vpop.trf.xlu1  ;;  %v761_v30 = vsub.f32 %v759_v23, %v760_v60 }
 0x1ef   :  { %v682_v37 = vsel %vm671_vm2, %v658_v29, 0 }
 0x1f0   :  { %v4364_v44 = vand.u32 4294901760, %v682_v37  ;;  %v762_v61 = vand.u32 4294901760, %v761_v30 }
 0x1f2   :  { %v767_v63 = vsub.f32 %v682_v37, %v4364_v44  ;;  %763 = vmatmul.f32.gmra.mxu0 %v762_v61  ;;  %910 = vmatmul.f32.gmra.mxu1 %v4364_v44 }
 0x1f4   :  { %v768_v51 = vand.u32 4294901760, %v767_v63 }
 0x1f6   :  { %v659_v6 = vpop.trf.xlu1  ;;  %v769_v53 = vsub.f32 %v767_v63, %v768_v51 }
 0x1f7   :  { %v685_v59 = vsel %vm671_vm2, %v659_v6, 0 }
 0x1f8   :  { %v4369_v62 = vand.u32 4294901760, %v685_v59  ;;  %v770_v17 = vand.u32 4294901760, %v769_v53 }
 0x1fa   :  { %v775_v0 = vsub.f32 %v685_v59, %v4369_v62  ;;  %771 = vmatmul.f32.gmra.mxu0 %v770_v17  ;;  %914 = vmatmul.f32.vlgmr.msrb.gmra.mxu3 %v4369_v62 }
 0x1fb   :  { %1084 = vmatmul.f32.vlgmr.msrb.gmra.mxu1 %v744_v28 }
 0x1fc   :  { %v776_v1 = vand.u32 4294901760, %v775_v0 }
 0x1fe   :  { %v660_v2 = vpop.trf.xlu1  ;;  %v777_v5 = vsub.f32 %v775_v0, %v776_v1 }
 0x1ff   :  { %v688_v7 = vsel %vm671_vm2, %v660_v2, 0 }
 0x200   :  { %v4374_v41 = vand.u32 4294901760, %v688_v7  ;;  %v778_v21 = vand.u32 4294901760, %v777_v5 }
 0x202   :  { %v783_v22 = vsub.f32 %v688_v7, %v4374_v41  ;;  %779 = vmatmul.f32.vlgmr.msrb.gmra.mxu2 %v778_v21  ;;  %918 = vmatmul.f32.gmra.mxu3 %v4374_v41 }
 0x203   :  { %984 = vmatmul.f32.vlgmr.msrb.gmra.mxu0 %v743_v20  ;;  %1090 = vmatmul.f32.gmra.mxu1 %v752_v52 }
 0x204   :  { %v784_v55 = vand.u32 4294901760, %v783_v22 }
 0x206   :  { %v661_v11 = vpop.trf.xlu1  ;;  %v785_v26 = vsub.f32 %v783_v22, %v784_v55 }
 0x207   :  { %v691_v31 = vsel %vm671_vm2, %v661_v11, 0 }
 0x208   :  { %v4379_v34 = vand.u32 4294901760, %v691_v31  ;;  %v786_v38 = vand.u32 4294901760, %v785_v26 }
 0x20a   :  { %v791_v40 = vsub.f32 %v691_v31, %v4379_v34  ;;  %787 = vmatmul.f32.gmra.mxu2 %v786_v38  ;;  %922 = vmatmul.f32.gmra.mxu3 %v4379_v34 }
 0x20b   :  { %989 = vmatmul.f32.gmra.mxu0 %v751_v50  ;;  %1096 = vmatmul.f32.gmra.mxu1 %v760_v60 }
 0x20c   :  { %v792_v45 = vand.u32 4294901760, %v791_v40 }
 0x20e   :  { %v662_v13 = vpop.trf.xlu1  ;;  %v793_v18 = vsub.f32 %v791_v40, %v792_v45 }
 0x20f   :  { %v694_v46 = vsel %vm671_vm2, %v662_v13, 0 }
 0x210   :  { %v4384_v48 = vand.u32 4294901760, %v694_v46  ;;  %v794_v14 = vand.u32 4294901760, %v793_v18 }
 0x212   :  { %v799_v19 = vsub.f32 %v694_v46, %v4384_v48  ;;  %795 = vmatmul.f32.gmra.mxu2 %v794_v14  ;;  %926 = vmatmul.f32.gmra.mxu3 %v4384_v48 }
 0x213   :  { %994 = vmatmul.f32.gmra.mxu0 %v759_v23  ;;  %1102 = vmatmul.f32.gmra.mxu1 %v768_v51 }
 0x214   :  { %v800_v49 = vand.u32 4294901760, %v799_v19 }
 0x216   :  { %v663_v8 = vpop.trf.xlu1  ;;  %v801_v16 = vsub.f32 %v799_v19, %v800_v49 }
 0x217   :  { %v697_v24 = vsel %vm671_vm2, %v663_v8, 0 }
 0x218   :  { %v4389_v57 = vand.u32 4294901760, %v697_v24  ;;  %v802_v25 = vand.u32 4294901760, %v801_v16 }
 0x21a   :  { %v807_v9 = vsub.f32 %v697_v24, %v4389_v57  ;;  %803 = vmatmul.f32.gmra.mxu2 %v802_v25  ;;  %930 = vmatmul.f32.gmra.mxu3 %v4389_v57 }
 0x21b   :  { %999 = vmatmul.f32.gmra.mxu0 %v767_v63  ;;  %1108 = vmatmul.f32.gmra.mxu1 %v776_v1 }
 0x21c   :  { %v808_v32 = vand.u32 4294901760, %v807_v9 }
 0x21e   :  { %v664_v33 = vpop.trf.xlu1  ;;  %v809_v39 = vsub.f32 %v807_v9, %v808_v32 }
 0x21f   :  { %v700_v10 = vsel %vm671_vm2, %v664_v33, 0 }
 0x220   :  { %v4394_v58 = vand.u32 4294901760, %v700_v10  ;;  %v810_v20 = vand.u32 4294901760, %v809_v39  ;;  %v4444_v39 = vld [vmem:[%s6396_s6] ss:$0 sm:$0xff] }
 0x222   :  { %v815_v28 = vsub.f32 %v700_v10, %v4394_v58  ;;  %811 = vmatmul.f32.gmra.mxu2 %v810_v20  ;;  %934 = vmatmul.f32.gmra.mxu3 %v4394_v58 }
 0x223   :  { %1004 = vmatmul.f32.gmra.mxu0 %v775_v0  ;;  %1114 = vmatmul.f32.gmra.mxu1 %v784_v55 }
 0x224   :  { %v816_v35 = vand.u32 4294901760, %v815_v28 }
 0x226   :  { %v665_v36 = vpop.trf.xlu1  ;;  %v817_v42 = vsub.f32 %v815_v28, %v816_v35 }
 0x227   :  { %v703_v43 = vsel %vm671_vm2, %v665_v36, 0 }
 0x228   :  { %v4399_v50 = vand.u32 4294901760, %v703_v43  ;;  %v818_v52 = vand.u32 4294901760, %v817_v42 }
 0x22a   :  { %v823_v3 = vsub.f32 %v703_v43, %v4399_v50  ;;  %819 = vmatmul.f32.gmra.mxu2 %v818_v52  ;;  %938 = vmatmul.f32.gmra.mxu3 %v4399_v50 }
 0x22b   :  { %1009 = vmatmul.f32.gmra.mxu0 %v783_v22  ;;  %1120 = vmatmul.f32.gmra.mxu1 %v792_v45 }
 0x22c   :  { %v824_v4 = vand.u32 4294901760, %v823_v3 }
 0x22e   :  { %v666_v56 = vpop.trf.xlu1  ;;  %v825_v15 = vsub.f32 %v823_v3, %v824_v4 }
 0x22f   :  { %v706_v23 = vsel %vm671_vm2, %v666_v56, 0 }
 0x230   :  { %v4404_v60 = vand.u32 4294901760, %v706_v23  ;;  %v826_v29 = vand.u32 4294901760, %v825_v15 }
 0x232   :  { %v831_v30 = vsub.f32 %v706_v23, %v4404_v60  ;;  %827 = vmatmul.f32.gmra.mxu2 %v826_v29  ;;  %942 = vmatmul.f32.gmra.mxu3 %v4404_v60 }
 0x233   :  { %1014 = vmatmul.f32.gmra.mxu0 %v791_v40  ;;  %1126 = vmatmul.f32.gmra.mxu1 %v800_v49 }
 0x234   :  { %v832_v37 = vand.u32 4294901760, %v831_v30 }
 0x236   :  { %v667_v61 = vpop.trf.xlu1  ;;  %v833_v63 = vsub.f32 %v831_v30, %v832_v37 }
 0x237   :  { %v709_v51 = vsel %vm671_vm2, %v667_v61, 0 }
 0x238   :  { %v4409_v6 = vand.u32 4294901760, %v709_v51  ;;  %v834_v53 = vand.u32 4294901760, %v833_v63 }
 0x23a   :  { %v839_v59 = vsub.f32 %v709_v51, %v4409_v6  ;;  %835 = vmatmul.f32.gmra.mxu2 %v834_v53  ;;  %946 = vmatmul.f32.gmra.mxu3 %v4409_v6 }
 0x23b   :  { %1019 = vmatmul.f32.gmra.mxu0 %v799_v19  ;;  %1132 = vmatmul.f32.gmra.mxu1 %v808_v32 }
 0x23c   :  { %v840_v17 = vand.u32 4294901760, %v839_v59 }
 0x23e   :  { %v668_v0 = vpop.trf.xlu1  ;;  %v841_v1 = vsub.f32 %v839_v59, %v840_v17 }
 0x23f   :  { %v712_v2 = vsel %vm671_vm2, %v668_v0, 0 }
 0x240   :  { %v4414_v5 = vand.u32 4294901760, %v712_v2  ;;  %v842_v7 = vand.u32 4294901760, %v841_v1 }
 0x242   :  { %v847_v21 = vsub.f32 %v712_v2, %v4414_v5  ;;  %843 = vmatmul.f32.gmra.mxu2 %v842_v7  ;;  %950 = vmatmul.f32.gmra.mxu3 %v4414_v5 }
 0x243   :  { %1024 = vmatmul.f32.gmra.mxu0 %v807_v9  ;;  %1138 = vmatmul.f32.gmra.mxu1 %v816_v35 }
 0x244   :  { %v848_v22 = vand.u32 4294901760, %v847_v21 }
 0x246   :  { %v669_v55 = vpop.trf.xlu1  ;;  %v849_v11 = vsub.f32 %v847_v21, %v848_v22 }
 0x247   :  { %v715_v26 = vsel %vm671_vm2, %v669_v55, 0 }
 0x248   :  { %v4419_v31 = vand.u32 4294901760, %v715_v26  ;;  %v850_v38 = vand.u32 4294901760, %v849_v11 }
 0x24a   :  { %v855_v40 = vsub.f32 %v715_v26, %v4419_v31  ;;  %851 = vmatmul.f32.gmra.mxu2 %v850_v38  ;;  %954 = vmatmul.f32.gmra.mxu3 %v4419_v31 }
 0x24b   :  { %1029 = vmatmul.f32.gmra.mxu0 %v815_v28  ;;  %1144 = vmatmul.f32.gmra.mxu1 %v824_v4 }
 0x24c   :  { %v856_v45 = vand.u32 4294901760, %v855_v40 }
 0x24e   :  { %v670_v13 = vpop.trf.xlu1  ;;  %v857_v18 = vsub.f32 %v855_v40, %v856_v45 }
 0x24f   :  { %v718_v46 = vsel %vm671_vm2, %v670_v13, 0 }
 0x250   :  { %v4424_v14 = vand.u32 4294901760, %v718_v46  ;;  %v858_v19 = vand.u32 4294901760, %v857_v18 }
 0x252   :  { %v863_v49 = vsub.f32 %v718_v46, %v4424_v14  ;;  %859 = vmatmul.f32.gmra.mxu2 %v858_v19  ;;  %958 = vmatmul.f32.gmra.mxu3 %v4424_v14 }
 0x253   :  { %1034 = vmatmul.f32.gmra.mxu0 %v823_v3  ;;  %1150 = vmatmul.f32.gmra.mxu1 %v832_v37 }
 0x254   :  { %v864_v8 = vand.u32 4294901760, %v863_v49 }
 0x256   :  { %v865_v16 = vsub.f32 %v863_v49, %v864_v8 }
 0x257   :  { %v4429_v25 = vpop.f32.mrf.mxu1 }
 0x258   :  { %v866_v24 = vand.u32 4294901760, %v865_v16 }
 0x25a   :  { %867 = vmatmul.f32.gmra.mxu2 %v866_v24  ;;  %1284 = vmatmul.f32.vlgmr.msra.gmra.mxu3 %v4349_v12 }
 0x25b   :  { %1039 = vmatmul.f32.gmra.mxu0 %v831_v30  ;;  %1156 = vmatmul.f32.gmra.mxu1 %v840_v17 }
 0x25f   :  { %v4431_v9 = vpop.f32.mrf.mxu0  ;;  %v4435_v32 = vpop.f32.mrf.mxu1 }
 0x262   :  { %1201 = vmatmul.f32.vlgmr.msra.gmra.mxu2 %v4349_v12  ;;  %1288 = vmatmul.f32.gmra.mxu3 %v4354_v47 }
 0x263   :  { %1044 = vmatmul.f32.gmra.mxu0 %v839_v59  ;;  %1162 = vmatmul.f32.gmra.mxu1 %v848_v22 }
 0x267   :  { %v4437_v33 = vpop.f32.mrf.mxu0  ;;  %v907_v12 = vpop.f32.mrf.mxu1 }
 0x26a   :  { %1205 = vmatmul.f32.gmra.mxu2 %v4354_v47  ;;  %1292 = vmatmul.f32.gmra.mxu3 %v4359_v54 }
 0x26b   :  { %1049 = vmatmul.f32.gmra.mxu0 %v847_v21  ;;  %1168 = vmatmul.f32.gmra.mxu1 %v856_v45 }
 0x26f   :  { %v764_v10 = vpop.f32.mrf.mxu0  ;;  %v911_v36 = vpop.f32.mrf.mxu1 }
 0x270   :  { %v765_v20 = vadd.f32 %v4444_v39, %v764_v10 }
 0x272   :  { %1209 = vmatmul.f32.gmra.mxu2 %v4359_v54  ;;  %1296 = vmatmul.f32.gmra.mxu3 %v4364_v44  ;;  %v4449_v28 = vadd.f32 %v907_v12, %v765_v20  ;;  %v757_v20 = vadd.f32 %v4444_v39, %v4437_v33 }
 0x273   :  { %1054 = vmatmul.f32.gmra.mxu0 %v855_v40  ;;  %1174 = vmatmul.f32.gmra.mxu1 %v864_v8 }
 0x277   :  { %v772_v47 = vpop.f32.mrf.mxu0 }
 0x278   :  { %v773_v35 = vadd.f32 %v4444_v39, %v772_v47  ;;  %v1085_v10 = vpop.f32.mrf.mxu1 }
 0x27a   :  { %1213 = vmatmul.f32.gmra.mxu2 %v4364_v44  ;;  %1300 = vmatmul.f32.gmra.mxu3 %v4369_v62  ;;  %v4454_v42 = vadd.f32 %v911_v36, %v773_v35 }
 0x27b   :  { %1059 = vmatmul.f32.gmra.mxu0 %v863_v49 }
 0x27d   :  { %v915_v43 = vpop.f32.mrf.mxu3 }
 0x280   :  { %v985_v8 = vpop.f32.mrf.mxu0 }
 0x282   :  { %1217 = vmatmul.f32.gmra.mxu2 %v4369_v62  ;;  %1304 = vmatmul.f32.gmra.mxu3 %v4374_v41 }
 0x285   :  { %v780_v54 = vpop.f32.mrf.mxu2  ;;  %v919_v52 = vpop.f32.mrf.mxu3 }
 0x286   :  { %v781_v3 = vadd.f32 %v4444_v39, %v780_v54 }
 0x288   :  { %v4459_v4 = vadd.f32 %v915_v43, %v781_v3  ;;  %v990_v47 = vpop.f32.mrf.mxu0 }
 0x28a   :  { %1221 = vmatmul.f32.gmra.mxu2 %v4374_v41  ;;  %1308 = vmatmul.f32.gmra.mxu3 %v4379_v34 }
 0x28d   :  { %v788_v44 = vpop.f32.mrf.mxu2  ;;  %v923_v56 = vpop.f32.mrf.mxu3 }
 0x28e   :  { %v789_v15 = vadd.f32 %v4444_v39, %v788_v44 }
 0x290   :  { %v4464_v23 = vadd.f32 %v919_v52, %v789_v15 }
 0x292   :  { %1225 = vmatmul.f32.gmra.mxu2 %v4379_v34  ;;  %1312 = vmatmul.f32.gmra.mxu3 %v4384_v48 }
 0x295   :  { %v796_v62 = vpop.f32.mrf.mxu2  ;;  %v927_v29 = vpop.f32.mrf.mxu3 }
 0x296   :  { %v797_v30 = vadd.f32 %v4444_v39, %v796_v62 }
 0x298   :  { %v4469_v37 = vadd.f32 %v923_v56, %v797_v30 }
 0x29a   :  { %1229 = vmatmul.f32.gmra.mxu2 %v4384_v48  ;;  %1316 = vmatmul.f32.gmra.mxu3 %v4389_v57 }
 0x29d   :  { %v804_v41 = vpop.f32.mrf.mxu2  ;;  %v931_v61 = vpop.f32.mrf.mxu3 }
 0x29e   :  { %v805_v63 = vadd.f32 %v4444_v39, %v804_v41 }
 0x2a0   :  { %v4474_v51 = vadd.f32 %v927_v29, %v805_v63  ;;  %v995_v63 = vpop.f32.mrf.mxu0 }
 0x2a2   :  { %1233 = vmatmul.f32.gmra.mxu2 %v4389_v57  ;;  %1320 = vmatmul.f32.gmra.mxu3 %v4394_v58 }
 0x2a5   :  { %v812_v34 = vpop.f32.mrf.mxu2  ;;  %v935_v53 = vpop.f32.mrf.mxu3 }
 0x2a6   :  { %v813_v59 = vadd.f32 %v4444_v39, %v812_v34 }
 0x2a8   :  { %v4479_v17 = vadd.f32 %v931_v61, %v813_v59 }
 0x2aa   :  { %1237 = vmatmul.f32.gmra.mxu2 %v4394_v58  ;;  %1324 = vmatmul.f32.gmra.mxu3 %v4399_v50 }
 0x2ad   :  { %v820_v48 = vpop.f32.mrf.mxu2  ;;  %v939_v0 = vpop.f32.mrf.mxu3 }
 0x2ae   :  { %v821_v1 = vadd.f32 %v4444_v39, %v820_v48 }
 0x2b0   :  { %v4484_v2 = vadd.f32 %v935_v53, %v821_v1  ;;  %v996_v1 = vadd.f32 %v995_v63, %v4449_v28  ;;  %v3941_v28 = vmov 2131351028  }
 0x2b2   :  { %1241 = vmatmul.f32.gmra.mxu2 %v4399_v50  ;;  %1328 = vmatmul.f32.gmra.mxu3 %v4404_v60 }
 0x2b5   :  { %v828_v57 = vpop.f32.mrf.mxu2  ;;  %v943_v7 = vpop.f32.mrf.mxu3 }
 0x2b6   :  { %v829_v21 = vadd.f32 %v4444_v39, %v828_v57 }
 0x2b8   :  { %v4489_v22 = vadd.f32 %v939_v0, %v829_v21 }
 0x2ba   :  { %1245 = vmatmul.f32.gmra.mxu2 %v4404_v60  ;;  %1332 = vmatmul.f32.gmra.mxu3 %v4409_v6 }
 0x2bd   :  { %v836_v58 = vpop.f32.mrf.mxu2  ;;  %v947_v55 = vpop.f32.mrf.mxu3 }
 0x2be   :  { %v837_v11 = vadd.f32 %v4444_v39, %v836_v58 }
 0x2c0   :  { %v4494_v26 = vadd.f32 %v943_v7, %v837_v11  ;;  %v3939_v11 = vmov 683565275  }
 0x2c2   :  { %1249 = vmatmul.f32.gmra.mxu2 %v4409_v6  ;;  %1336 = vmatmul.f32.gmra.mxu3 %v4414_v5 }
 0x2c5   :  { %v844_v50 = vpop.f32.mrf.mxu2  ;;  %v951_v40 = vpop.f32.mrf.mxu3 }
 0x2c6   :  { %v845_v38 = vadd.f32 %v4444_v39, %v844_v50 }
 0x2c8   :  { %v4499_v45 = vadd.f32 %v947_v55, %v845_v38  ;;  %v3940_v38 = vmov 2475754826  }
 0x2ca   :  { %1253 = vmatmul.f32.gmra.mxu2 %v4414_v5  ;;  %1340 = vmatmul.f32.gmra.mxu3 %v4419_v31  ;;  %v749_v5 = vadd.f32 %v4444_v39, %v4431_v9  ;;  %v904_v9 = vadd.f32 %v4435_v32, %v757_v20  ;;  %v6399_v20 = vmov 1326507024  }
 0x2cc   :  { %v900_v12 = vadd.f32 %v4429_v25, %v749_v5  ;;  %v991_v52 = vadd.f32 %v990_v47, %v904_v9  ;;  %v1091_v25 = vpop.f32.mrf.mxu1 }
 0x2cd   :  { %v852_v60 = vpop.f32.mrf.mxu2  ;;  %v955_v46 = vpop.f32.mrf.mxu3 }
 0x2ce   :  { %v853_v13 = vadd.f32 %v4444_v39, %v852_v60  ;;  %v1092_v33 = vadd.f32 %v1091_v25, %v991_v52 }
 0x2d0   :  { %v4504_v18 = vadd.f32 %v951_v40, %v853_v13 }
 0x2d2   :  { %1257 = vmatmul.f32.gmra.mxu2 %v4419_v31  ;;  %1344 = vmatmul.f32.gmra.mxu3 %v4424_v14  ;;  %v986_v31 = vadd.f32 %v985_v8, %v900_v12  ;;  %v6401_v12 = vmov 920167782  }
 0x2d4   :  { %v1086_v35 = vadd.f32 %v1085_v10, %v986_v31 }
 0x2d5   :  { %v860_v6 = vpop.f32.mrf.mxu2  ;;  %v4514_v16 = vpop.f32.mrf.mxu3 }
 0x2d6   :  { %v861_v19 = vadd.f32 %v4444_v39, %v860_v6 }
 0x2d8   :  { %v4509_v49 = vadd.f32 %v955_v46, %v861_v19  ;;  %v3942_v19 = vmov 2102212464  }
 0x2da   :  { %1261 = vmatmul.f32.gmra.mxu2 %v4424_v14 }
 0x2dd   :  { %v4516_v24 = vpop.f32.mrf.mxu2  ;;  %v1285_v36 = vpop.f32.mrf.mxu3 }
 0x2e5   :  { %v1202_v43 = vpop.f32.mrf.mxu2  ;;  %v1289_v41 = vpop.f32.mrf.mxu3 }
 0x2e6   :  { %v1203_v54 = vadd.f32 %v1202_v43, %v1086_v35 }
 0x2e8   :  { %v4522_v14 = vadd.f32 %v1285_v36, %v1203_v54 }
 0x2ea   :  { %v1348_v3 = vand.u32 2147483647, %v4522_v14  ;;  %v1351_v44 = vand.u32 2139095040, %v4522_v14 }
 0x2ec   :  { %v1352_v56 = vshrl.u32 %v1351_v44, 23  ;;  %v1355_v15 = vand.u32 8388607, %v1348_v3 }
 0x2ed   :  { %v1206_v39 = vpop.f32.mrf.mxu2 }
 0x2ee   :  { %v3832_v62 = vadd.s32 4294967169, %v1352_v56  ;;  %v1356_v29 = vor.u32 8388608, %v1355_v15  ;;  %v1207_v30 = vadd.f32 %v1206_v39, %v1092_v33 }
 0x2f0   :  { %v1358_v32 = vadd.s32 1, %v3832_v62  ;;  %v4528_v61 = vadd.f32 %v1289_v41, %v1207_v30  ;;  %v4530_v34 = vshll.u32 %v1356_v29, 8 }
 0x2f2   :  { %vm1359_vm3 = vcmp.gt.s32.totalorder %v1358_v32, 0  ;;  %v1502_v59 = vand.u32 2147483647, %v4528_v61  ;;  %v1505_v48 = vand.u32 2139095040, %v4528_v61  ;;  %v1397_v7 = vand.u32 65535, %v4530_v34 }
 0x2f3   :  { %v1360_v53 = vsel %vm1359_vm3, %v1358_v32, 0  ;;  %v1398_v21 = vshrl.u32 %v4530_v34, 16 }
 0x2f4   :  { %v1362_v0 = vand.u32 31, %v1360_v53  ;;  %v1506_v58 = vshrl.u32 %v1505_v48, 23  ;;  %v1361_v55 = vshrl.u32 %v1360_v53, 5  ;;  %v4541_v60 = vand.u32 8388607, %v1502_v59  ;;  %v1097_v48 = vpop.f32.mrf.mxu1 }
 0x2f6   :  { %v1363_v57 = vsub.s32 32, %v1362_v0  ;;  %v1365_v50 = vshll.u32 %v3939_v11, %v1362_v0  ;;  %v1368_v40 = vshll.u32 %v3940_v38, %v1362_v0  ;;  %v1371_v6 = vshll.u32 %v3941_v28, %v1362_v0 }
 0x2f7   :  { %v1374_v8 = vshll.u32 %v3942_v19, %v1362_v0  ;;  %v1377_v10 = vshll.u32 %v6401_v12, %v1362_v0  ;;  %v3835_v9 = vadd.s32 4294967169, %v1506_v58  ;;  %vm1380_vm4 = vcmp.lt.s32.totalorder %v1361_v55, 1 }
 0x2f8   :  { %v1366_v13 = vshrl.u32 %v3940_v38, %v1363_v57  ;;  %v1369_v46 = vshrl.u32 %v3941_v28, %v1363_v57  ;;  %v1372_v5 = vshrl.u32 %v3942_v19, %v1363_v57  ;;  %v1375_v31 = vshrl.u32 %v6401_v12, %v1363_v57 }
 0x2f9   :  { %v1378_v47 = vshrl.u32 %v6399_v20, %v1363_v57  ;;  %vm1383_vm5 = vcmp.lt.s32.totalorder %v1361_v55, 4  ;;  %v1364_v44 = vshrl.u32 %v3939_v11, %v1363_v57  ;;  %vm1382_vm6 = vcmp.lt.s32.totalorder %v1361_v55, 3 }
 0x2fa   :  { %v1367_v35 = vor.u32 %v1366_v13, %v1365_v50  ;;  %v1370_v36 = vor.u32 %v1369_v46, %v1368_v40  ;;  %v1373_v43 = vor.u32 %v1372_v5, %v1371_v6  ;;  %v1376_v54 = vor.u32 %v1375_v31, %v1374_v8 }
 0x2fb   :  { %v1379_v52 = vor.u32 %v1378_v47, %v1377_v10  ;;  %v1512_v62 = vadd.s32 1, %v3835_v9  ;;  %vm1381_vm7 = vcmp.lt.s32.totalorder %v1361_v55, 2  ;;  %v1510_v40 = vor.u32 8388608, %v4541_v60 }
 0x2fc   :  { %v1385_v25 = vsel %vm1383_vm5, %v1373_v43, 2102212464  ;;  %v1388_v56 = vsel %vm1380_vm4, %v1367_v35, %v1370_v36  ;;  %v1392_v15 = vsel %vm1380_vm4, %v1370_v36, %v1373_v43  ;;  %v1389_v33 = vsel %vm1383_vm5, %v1376_v54, 920167782 }
 0x2fd   :  { %v1393_v39 = vsel %vm1383_vm5, %v1379_v52, 1326507024  ;;  %v1384_v29 = vsel %vm1380_vm4, %v1364_v44, %v1367_v35  ;;  %v1390_v30 = vsel %vm1382_vm6, %v1373_v43, %v1389_v33  ;;  %v1386_v32 = vsel %vm1382_vm6, %v1370_v36, %v1385_v25 }
 0x2fe   :  { %v1394_v41 = vsel %vm1382_vm6, %v1376_v54, %v1393_v39  ;;  %v1391_v63 = vsel %vm1381_vm7, %v1388_v56, %v1390_v30  ;;  %vm1513_vm8 = vcmp.gt.s32.totalorder %v1512_v62, 0  ;;  %v1098_v13 = vadd.f32 %v1097_v48, %v996_v1 }
 0x2ff   :  { %v1395_v53 = vsel %vm1381_vm7, %v1392_v15, %v1394_v41  ;;  %v1421_v50 = vand.u32 65535, %v1391_v63  ;;  %v1422_v57 = vshrl.u32 %v1391_v63, 16  ;;  %v4553_v46 = vsel %vm1381_vm7, %v1384_v29, %v1386_v32 }
 0x300   :  { %v1399_v0 = vand.u32 65535, %v1395_v53  ;;  %v1400_v58 = vshrl.u32 %v1395_v53, 16  ;;  %v1514_v55 = vsel %vm1513_vm8, %v1512_v62, 0  ;;  %vm1350_vm7 = vcmp.lt.s32.totalorder %v4522_v14, 0 }
 0x301   :  { %v1424_v10 = vmul.u32 %v1422_v57, %v1397_v7  ;;  %v1425_v47 = vmul.u32 %v1421_v50, %v1398_v21  ;;  %v1423_v43 = vmul.u32 %v1421_v50, %v1397_v7  ;;  %v1426_v9 = vmul.u32 %v1422_v57, %v1398_v21 }
 0x302   :  { %v1402_v6 = vmul.u32 %v1400_v58, %v1397_v7  ;;  %v1403_v5 = vmul.u32 %v1399_v0, %v1398_v21  ;;  %v1401_v8 = vmul.u32 %v1399_v0, %v1397_v7  ;;  %v1404_v31 = vmul.u32 %v1400_v58, %v1398_v21 }
 0x303   :  { %v1427_v44 = vshll.u32 %v1424_v10, 16  ;;  %v1428_v25 = vshrl.u32 %v1424_v10, 16  ;;  %v1429_v1 = vshll.u32 %v1425_v47, 16  ;;  %v1516_v56 = vand.u32 31, %v1514_v55 }
 0x304   :  { %v1405_v35 = vshll.u32 %v1402_v6, 16  ;;  %v1406_v36 = vshrl.u32 %v1402_v6, 16  ;;  %v1407_v54 = vshll.u32 %v1403_v5, 16  ;;  %v1408_v52 = vshrl.u32 %v1403_v5, 16 }
 0x305   :  { %v1430_v33 = vshrl.u32 %v1425_v47, 16  ;;  %vm1431_vm10 = vc.u32 %v1423_v43, %v1427_v44  ;;  %v1433_v39 = vadd.s32 %v1427_v44, %v1423_v43  ;;  %v1517_v30 = vsub.s32 32, %v1516_v56 }
 0x306   :  { %vm1409_vm9 = vc.u32 %v1401_v8, %v1405_v35  ;;  %v1411_v60 = vadd.s32 %v1405_v35, %v1401_v8  ;;  %v1432_v29 = vsel %vm1431_vm10, 1, %v3929_v27  ;;  %v4558_v41 = vshrl.u32 %v1514_v55, 5 }
 0x307   :  { %v1410_v15 = vsel %vm1409_vm9, 1, %v3929_v27  ;;  %v1434_v21 = vadd.s32 %v1432_v29, %v1426_v9  ;;  %vm1435_vm12 = vc.u32 %v1433_v39, %v1429_v1  ;;  %v4561_v53 = vadd.s32 %v1433_v39, %v1429_v1 }
 0x308   :  { %v1412_v62 = vadd.s32 %v1410_v15, %v1404_v31  ;;  %vm1413_vm11 = vc.u32 %v1411_v60, %v1407_v54  ;;  %v1436_v63 = vsel %vm1435_vm12, 1, %v3929_v27  ;;  %v1519_v48 = vshll.u32 %v3939_v11, %v1516_v56  ;;  %v1210_v31 = vpop.f32.mrf.mxu2 }
 0x309   :  { %v1414_v7 = vsel %vm1413_vm11, 1, %v3929_v27  ;;  %v1438_v0 = vadd.s32 %v1436_v63, %v1434_v21  ;;  %v1520_v58 = vshrl.u32 %v3940_v38, %v1517_v30  ;;  %v1522_v50 = vshll.u32 %v3940_v38, %v1516_v56 }
 0x30a   :  { %v1416_v32 = vadd.s32 %v1414_v7, %v1412_v62  ;;  %v1523_v57 = vshrl.u32 %v3941_v28, %v1517_v30  ;;  %v1525_v5 = vshll.u32 %v3941_v28, %v1516_v56  ;;  %v1526_v55 = vshrl.u32 %v3942_v19, %v1517_v30 }
 0x30b   :  { %v1528_v8 = vshll.u32 %v3942_v19, %v1516_v56  ;;  %v1439_v10 = vadd.s32 %v1438_v0, %v1428_v25  ;;  %v4570_v47 = vor.u32 %v1520_v58, %v1519_v48  ;;  %v1529_v43 = vshrl.u32 %v6401_v12, %v1517_v30  ;;  %v1000_v48 = vpop.f32.mrf.mxu0 }
 0x30c   :  { %v1417_v6 = vadd.s32 %v1416_v32, %v1406_v36  ;;  %v4572_v35 = vor.u32 %v1523_v57, %v1522_v50  ;;  %v1527_v54 = vor.u32 %v1526_v55, %v1525_v5  ;;  %v1531_v44 = vshll.u32 %v6401_v12, %v1516_v56 }
 0x30d   :  { %v1532_v36 = vshrl.u32 %v6399_v20, %v1517_v30  ;;  %v1440_v60 = vadd.s32 %v1439_v10, %v1430_v33  ;;  %v1530_v1 = vor.u32 %v1529_v43, %v1528_v8  ;;  %v1211_v15 = vadd.f32 %v1210_v31, %v1098_v13 }
 0x30e   :  { %v4575_v9 = vadd.s32 %v1417_v6, %v1408_v52  ;;  %vm1534_vm14 = vcmp.lt.s32.totalorder %v4558_v41, 1  ;;  %v4582_v39 = vshll.u32 %v1510_v40, 8  ;;  %v1441_v52 = vmul.u32 %v4530_v34, %v4553_v46 }
 0x30f   :  { %v1533_v25 = vor.u32 %v1532_v36, %v1531_v44  ;;  %v1444_v62 = vadd.s32 1, %v1440_v60  ;;  %vm1537_vm15 = vcmp.lt.s32.totalorder %v4558_v41, 4  ;;  %v1542_v56 = vsel %vm1534_vm14, %v4570_v47, %v4572_v35  ;;  %v1293_v44 = vpop.f32.mrf.mxu3 }
 0x310   :  { %vm1443_vm13 = vc.u32 %v4575_v9, %v4561_v53  ;;  %vm1536_vm1 = vcmp.lt.s32.totalorder %v4558_v41, 3  ;;  %v1543_v13 = vsel %vm1537_vm15, %v1530_v1, 920167782  ;;  %v1546_v40 = vsel %vm1534_vm14, %v4572_v35, %v1527_v54 }
 0x311   :  { %v1547_v34 = vsel %vm1537_vm15, %v1533_v25, 1326507024  ;;  %v1445_v46 = vsel %vm1443_vm13, %v1444_v62, %v1440_v60  ;;  %vm1535_vm2 = vcmp.lt.s32.totalorder %v4558_v41, 2  ;;  %v1544_v33 = vsel %vm1536_vm1, %v1527_v54, %v1543_v13 }
 0x312   :  { %v1548_v29 = vsel %vm1536_vm1, %v1530_v1, %v1547_v34  ;;  %v1446_v7 = vadd.s32 %v1445_v46, %v1441_v52  ;;  %v1545_v21 = vsel %vm1535_vm2, %v1542_v56, %v1544_v33  ;;  %v1551_v63 = vand.u32 65535, %v4582_v39 }
 0x313   :  { %v1549_v32 = vsel %vm1535_vm2, %v1546_v40, %v1548_v29  ;;  %v1552_v0 = vshrl.u32 %v4582_v39, 16  ;;  %v1576_v57 = vshrl.u32 %v1545_v21, 16  ;;  %v1575_v5 = vand.u32 65535, %v1545_v21 }
 0x314   :  { %v1553_v58 = vand.u32 65535, %v1549_v32  ;;  %v1554_v50 = vshrl.u32 %v1549_v32, 16  ;;  %v1447_v6 = vadd.s32 536870912, %v1446_v7  ;;  %v4611_v31 = vadd.f32 %v1000_v48, %v4454_v42 }
 0x315   :  { %v1578_v43 = vmul.u32 %v1576_v57, %v1551_v63  ;;  %v1518_v36 = vshrl.u32 %v3939_v11, %v1517_v30  ;;  %v4614_v25 = vadd.f32 %v1293_v44, %v1211_v15  ;;  %v1579_v56 = vmul.u32 %v1575_v5, %v1552_v0 }
 0x316   :  { %v1556_v55 = vmul.u32 %v1554_v50, %v1551_v63  ;;  %v1557_v8 = vmul.u32 %v1553_v58, %v1552_v0  ;;  %v1448_v10 = vshrl.u32 %v1447_v6, 30  ;;  %v1555_v60 = vmul.u32 %v1553_v58, %v1551_v63 }
 0x317   :  { %v1558_v62 = vmul.u32 %v1554_v50, %v1552_v0  ;;  %v1581_v13 = vshll.u32 %v1578_v43, 16  ;;  %v1577_v46 = vmul.u32 %v1575_v5, %v1551_v63  ;;  %v1539_v42 = vsel %vm1537_vm15, %v1527_v54, 2102212464 }
 0x318   :  { %v1559_v1 = vshll.u32 %v1556_v55, 16  ;;  %v1449_v52 = vshll.u32 %v1448_v10, 30  ;;  %v1561_v40 = vshll.u32 %v1557_v8, 16  ;;  %v1560_v29 = vshrl.u32 %v1556_v55, 16 }
 0x319   :  { %v1580_v32 = vmul.u32 %v1576_v57, %v1552_v0  ;;  %vm1585_vm5 = vc.u32 %v1577_v46, %v1581_v13  ;;  %v1583_v58 = vshll.u32 %v1579_v56, 16  ;;  %v1587_v63 = vadd.s32 %v1581_v13, %v1577_v46 }
 0x31a   :  { %vm1563_vm3 = vc.u32 %v1555_v60, %v1559_v1  ;;  %v1565_v34 = vadd.s32 %v1559_v1, %v1555_v60  ;;  %v1450_v33 = vsub.s32 %v1446_v7, %v1449_v52  ;;  %v1586_v6 = vsel %vm1585_vm5, 1, %v3929_v27 }
 0x31b   :  { %v1564_v21 = vsel %vm1563_vm3, 1, %v3929_v27  ;;  %v1659_v7 = vand.u32 2139095040, %v4614_v25  ;;  %v1538_v5 = vsel %vm1534_vm14, %v1518_v36, %v4570_v47  ;;  %v6398_v0 = vand.u32 2147483647, %v4614_v25 }
 0x31c   :  { %v1566_v30 = vadd.s32 %v1564_v21, %v1558_v62  ;;  %vm1567_vm4 = vc.u32 %v1565_v34, %v1561_v40  ;;  %vm1451_vm6 = vcmp.lt.s32.totalorder %v1450_v33, 0  ;;  %v1452_v15 = vsub.s32 0, %v1450_v33 }
 0x31d   :  { %v1568_v48 = vsel %vm1567_vm4, 1, %v3929_v27  ;;  %v1588_v44 = vadd.s32 %v1586_v6, %v1580_v32  ;;  %vm1589_vm8 = vc.u32 %v1587_v63, %v1583_v58  ;;  %v1540_v60 = vsel %vm1536_vm1, %v4572_v35, %v1539_v42 }
 0x31e   :  { %v1570_v50 = vadd.s32 %v1568_v48, %v1566_v30  ;;  %v1453_v54 = vsel %vm1451_vm6, %v1452_v15, %v1450_v33  ;;  %v1562_v1 = vshrl.u32 %v1557_v8, 16  ;;  %v1590_v52 = vsel %vm1589_vm8, 1, %v3929_v27 }
 0x31f   :  { %v1454_v57 = vclz %v1453_v54  ;;  %v1660_v62 = vshrl.u32 %v1659_v7, 23  ;;  %v1472_v40 = vsub.s32 4, %v1448_v10  ;;  %v1582_v34 = vshrl.u32 %v1578_v43, 16 }
 0x320   :  { %v1571_v55 = vadd.s32 %v1570_v50, %v1560_v29  ;;  %v1592_v46 = vadd.s32 %v1590_v52, %v1588_v44  ;;  %vm4633_vm9 = vcmp.le.f32.partialorder %v1348_v3, 0.7853982  ;;  %v1663_v21 = vand.u32 8388607, %v6398_v0 }
 0x321   :  { %v3833_v13 = vadd.s32 4294967294, %v1454_v57  ;;  %v3838_v29 = vadd.s32 4294967169, %v1660_v62  ;;  %v1442_v35 = vadd.s32 %v4561_v53, %v4575_v9  ;;  %v1584_v8 = vshrl.u32 %v1579_v56, 16  ;;  %v1005_v53 = vpop.f32.mrf.mxu0 }
 0x322   :  { %v1572_v36 = vadd.s32 %v1571_v55, %v1562_v1  ;;  %v1593_v42 = vadd.s32 %v1592_v46, %v1582_v34  ;;  %v1541_v43 = vsel %vm1535_vm2, %v1538_v5, %v1540_v60  ;;  %v1591_v32 = vadd.s32 %v1587_v63, %v1583_v58 }
 0x323   :  { %vm3834_vm10 = vcmp.lt.s32.totalorder %v3833_v13, 0  ;;  %v1666_v3 = vadd.s32 1, %v3838_v29  ;;  %v1473_v50 = vsel %vm1350_vm7, %v1472_v40, %v1448_v10  ;;  %v1664_v54 = vor.u32 8388608, %v1663_v21  ;;  %v1103_v10 = vpop.f32.mrf.mxu1 }
 0x324   :  { %v1457_v30 = vsel %vm3834_vm10, 0, %v3833_v13  ;;  %v1594_v6 = vadd.s32 %v1593_v42, %v1584_v8  ;;  %vm1597_vm11 = vc.u32 %v1572_v36, %v1591_v32  ;;  %v1475_v41 = vsel %vm4633_vm9, 0, %v1473_v50 }
 0x325   :  { %v1458_v15 = vsub.s32 32, %v1457_v30  ;;  %v1462_v48 = vsub.s32 4294967266, %v1457_v30  ;;  %v1459_v7 = vshll.u32 %v1450_v33, %v1457_v30  ;;  %vm1667_vm12 = vcmp.gt.s32.totalorder %v1666_v3, 0  ;;  %v1214_v30 = vpop.f32.mrf.mxu2 }
 0x326   :  { %v1598_v57 = vadd.s32 1, %v1594_v6  ;;  %v1668_v55 = vsel %vm1667_vm12, %v1666_v3, 0  ;;  %v1595_v58 = vmul.u32 %v4582_v39, %v1541_v43  ;;  %v4649_v33 = vadd.f32 %v1005_v53, %v4459_v4 }
 0x327   :  { %v1460_v9 = vshrl.u32 %v1442_v35, %v1458_v15  ;;  %v1463_v56 = vadd.s32 127, %v1462_v48  ;;  %v1670_v63 = vand.u32 31, %v1668_v55  ;;  %v4651_v13 = vand.u32 3, %v1475_v41 }
 0x328   :  { %v1599_v60 = vsel %vm1597_vm11, %v1598_v57, %v1594_v6  ;;  %v4653_v40 = vshll.u32 %v1664_v54, 8  ;;  %v1104_v34 = vadd.f32 %v1103_v10, %v4611_v31  ;;  %v4661_v3 = vshrl.u32 %v1668_v55, 5 }
 0x329   :  { %v1461_v5 = vor.u32 %v1460_v9, %v1459_v7  ;;  %v1464_v44 = vshll.u32 %v1463_v56, 23  ;;  %v1600_v1 = vadd.s32 %v1599_v60, %v1595_v58  ;;  %v1671_v52 = vsub.s32 32, %v1670_v63 }
 0x32a   :  { %v1682_v4 = vshll.u32 %v3942_v19, %v1670_v63  ;;  %v1673_v15 = vshll.u32 %v3939_v11, %v1670_v63  ;;  %v1676_v31 = vshll.u32 %v3940_v38, %v1670_v63  ;;  %v1679_v50 = vshll.u32 %v3941_v28, %v1670_v63 }
 0x32b   :  { %v1465_v62 = vor.u32 4788187, %v1464_v44  ;;  %v1468_v46 = vcvt.s32.f32 %v1461_v5  ;;  %v1601_v29 = vadd.s32 536870912, %v1600_v1  ;;  %v1674_v39 = vshrl.u32 %v3940_v38, %v1671_v52 }
 0x32c   :  { %v1677_v21 = vshrl.u32 %v3941_v28, %v1671_v52  ;;  %v1680_v8 = vshrl.u32 %v3942_v19, %v1671_v52  ;;  %v1683_v42 = vshrl.u32 %v6401_v12, %v1671_v52  ;;  %v1686_v7 = vshrl.u32 %v6399_v20, %v1671_v52 }
 0x32d   :  { %v1466_v35 = vand.u32 2147483647, %v1465_v62  ;;  %v1602_v43 = vshrl.u32 %v1601_v29, 30  ;;  %v1675_v53 = vor.u32 %v1674_v39, %v1673_v15  ;;  %v1215_v56 = vadd.f32 %v1214_v30, %v1104_v34  ;;  %v1297_v62 = vpop.f32.mrf.mxu3 }
 0x32e   :  { %v1684_v6 = vor.u32 %v1683_v42, %v1682_v4  ;;  %v4667_v9 = vor.u32 %v1677_v21, %v1676_v31  ;;  %vm1504_vm13 = vcmp.lt.s32.totalorder %v4528_v61, 0  ;;  %v1596_v55 = vadd.s32 %v1591_v32, %v1572_v36 }
 0x32f   :  { %v1469_v48 = vmul.f32 %v1468_v46, %v1466_v35  ;;  %v1603_v54 = vshll.u32 %v1602_v43, 30  ;;  %v1681_v41 = vor.u32 %v1680_v8, %v1679_v50  ;;  %v1685_v58 = vshll.u32 %v6401_v12, %v1670_v63 }
 0x330   :  { %vm1688_vm14 = vcmp.lt.s32.totalorder %v4661_v3, 1  ;;  %vm1691_vm15 = vcmp.lt.s32.totalorder %v4661_v3, 4  ;;  %v1705_v44 = vand.u32 65535, %v4653_v40  ;;  %vm1690_vm1 = vcmp.lt.s32.totalorder %v4661_v3, 3 }
 0x331   :  { %v1470_v57 = vxor.u32 2147483648, %v1469_v48  ;;  %v4671_v5 = vsub.s32 %v1600_v1, %v1603_v54  ;;  %v1687_v10 = vor.u32 %v1686_v7, %v1685_v58  ;;  %v1697_v36 = vsel %vm1691_vm15, %v1684_v6, 920167782 }
 0x332   :  { %v1696_v1 = vsel %vm1688_vm14, %v1675_v53, %v4667_v9  ;;  %v1698_v46 = vsel %vm1690_vm1, %v1681_v41, %v1697_v36  ;;  %v1706_v29 = vshrl.u32 %v4653_v40, 16  ;;  %v4696_v47 = vadd.f32 %v1297_v62, %v1215_v56 }
 0x333   :  { %v1471_v60 = vsel %vm1350_vm7, %v1470_v57, %v1469_v48  ;;  %vm1605_vm2 = vcmp.lt.s32.totalorder %v4671_v5, 0  ;;  %v1606_v63 = vsub.s32 0, %v4671_v5  ;;  %v1626_v21 = vsub.s32 4, %v1602_v43 }
 0x334   :  { %v4684_v32 = vsel %vm4633_vm9, %v4522_v14, %v1471_v60  ;;  %vm1689_vm3 = vcmp.lt.s32.totalorder %v4661_v3, 2  ;;  %v1700_v35 = vsel %vm1688_vm14, %v4667_v9, %v1681_v41  ;;  %v1672_v15 = vshrl.u32 %v3939_v11, %v1671_v52 }
 0x335   :  { %v1476_v34 = vmul.f32 %v4684_v32, %v4684_v32  ;;  %v1607_v39 = vsel %vm1605_vm2, %v1606_v63, %v4671_v5  ;;  %v1699_v30 = vsel %vm1689_vm3, %v1696_v1, %v1698_v46  ;;  %v1701_v31 = vsel %vm1691_vm15, %v1687_v10, 1326507024 }
 0x336   :  { %v1608_v42 = vclz %v1607_v39  ;;  %v1729_v48 = vand.u32 65535, %v1699_v30  ;;  %v1730_v50 = vshrl.u32 %v1699_v30, 16  ;;  %v1702_v57 = vsel %vm1690_vm1, %v1684_v6, %v1701_v31 }
 0x337   :  { %v1477_v8 = vmul.f32 -0.001358992, %v1476_v34  ;;  %v1484_v4 = vmul.f32 -0.00019511016, %v1476_v34  ;;  %v4712_v58 = vsel %vm1504_vm13, %v1626_v21, %v1602_v43  ;;  %v4716_v60 = vsel %vm1688_vm14, %v1672_v15, %v1675_v53 }
 0x338   :  { %v3836_v56 = vadd.s32 4294967294, %v1608_v42  ;;  %v1703_v52 = vsel %vm1689_vm3, %v1700_v35, %v1702_v57  ;;  %v1813_v10 = vand.u32 2139095040, %v4696_v47  ;;  %v1693_v6 = vsel %vm1691_vm15, %v1681_v41, 2102212464 }
 0x339   :  { %v1478_v7 = vadd.f32 0.041655596, %v1477_v8  ;;  %v1485_v54 = vadd.f32 0.008332121, %v1484_v4  ;;  %v1707_v1 = vand.u32 65535, %v1703_v52  ;;  %v1708_v46 = vshrl.u32 %v1703_v52, 16 }
 0x33a   :  { %vm3837_vm4 = vcmp.lt.s32.totalorder %v3836_v56, 0  ;;  %v4723_v43 = vmul.u32 %v1730_v50, %v1705_v44  ;;  %v1731_v8 = vmul.u32 %v1729_v48, %v1705_v44  ;;  %vm1494_vm5 = vcmp.eq.s32.totalorder %v4651_v13, 0 }
 0x33b   :  { %v1479_v36 = vmul.f32 %v1478_v7, %v1476_v34  ;;  %v1486_v63 = vmul.f32 %v1485_v54, %v1476_v34  ;;  %v1611_v62 = vsel %vm3837_vm4, 0, %v3836_v56  ;;  %vm1497_vm6 = vcmp.eq.s32.totalorder %v4651_v13, 2 }
 0x33c   :  { %v1612_v53 = vsub.s32 32, %v1611_v62  ;;  %v1616_v35 = vsub.s32 4294967266, %v1611_v62  ;;  %v1710_v4 = vmul.u32 %v1708_v46, %v1705_v44  ;;  %v1711_v42 = vmul.u32 %v1707_v1, %v1706_v29 }
 0x33d   :  { %v1480_v39 = vadd.f32 -0.4999988, %v1479_v36  ;;  %v1487_v21 = vadd.f32 -0.16666654, %v1486_v63  ;;  %v4727_v30 = vmul.u32 %v1729_v48, %v1706_v29  ;;  %vm1493_vm7 = vcmp.lt.s32.totalorder %v4651_v13, 2 }
 0x33e   :  { %v1613_v41 = vshll.u32 %v4671_v5, %v1611_v62  ;;  %v1614_v7 = vshrl.u32 %v1596_v55, %v1612_v53  ;;  %vm1491_vm8 = vweird.f32 %v4522_v14  ;;  %v1617_v54 = vadd.s32 127, %v1616_v35 }
 0x33f   :  { %v1481_v15 = vmul.f32 %v1480_v39, %v1476_v34  ;;  %v1488_v31 = vmul.f32 %v1487_v21, %v1476_v34  ;;  %v1709_v56 = vmul.u32 %v1707_v1, %v1705_v44  ;;  %v1713_v57 = vshll.u32 %v1710_v4, 16 }
 0x340   :  { %v1735_v52 = vshll.u32 %v4723_v43, 16  ;;  %v1615_v0 = vor.u32 %v1614_v7, %v1613_v41  ;;  %v1712_v20 = vmul.u32 %v1708_v46, %v1706_v29  ;;  %v1618_v48 = vshll.u32 %v1617_v54, 23 }
 0x341   :  { %v1482_v36 = vadd.f32 1.0, %v1481_v15  ;;  %v1489_v63 = vadd.f32 1.0, %v1488_v31  ;;  %v1715_v12 = vshll.u32 %v1711_v42, 16  ;;  %vm1717_vm9 = vc.u32 %v1709_v56, %v1713_v57 }
 0x342   :  { %v1719_v34 = vadd.s32 %v1713_v57, %v1709_v56  ;;  %v1718_v55 = vsel %vm1717_vm9, 1, %v3929_v27  ;;  %v1734_v5 = vmul.u32 %v1730_v50, %v1706_v29  ;;  %v1619_v62 = vor.u32 4788187, %v1618_v48 }
 0x343   :  { %v1490_v39 = vmul.f32 %v1489_v63, %v4684_v32  ;;  %v1498_v21 = vxor.u32 2147483648, %v1482_v36  ;;  %v1714_v53 = vshrl.u32 %v1710_v4, 16  ;;  %v1720_v44 = vadd.s32 %v1718_v55, %v1712_v20 }
 0x344   :  { %vm1721_vm10 = vc.u32 %v1719_v34, %v1715_v12  ;;  %v1622_v35 = vcvt.s32.f32 %v1615_v0  ;;  %v1737_v46 = vshll.u32 %v4727_v30, 16  ;;  %v1620_v31 = vand.u32 2147483647, %v1619_v62 }
 0x345   :  { %v1495_v1 = vxor.u32 2147483648, %v1490_v39  ;;  %v1722_v15 = vsel %vm1721_vm10, 1, %v3929_v27  ;;  %vm1739_vm11 = vc.u32 %v1731_v8, %v1735_v52  ;;  %v1741_v7 = vadd.s32 %v1735_v52, %v1731_v8 }
 0x346   :  { %v1724_v41 = vadd.s32 %v1722_v15, %v1720_v44  ;;  %v1499_v29 = vsel %vm1497_vm6, %v1498_v21, %v1490_v39  ;;  %v1740_v50 = vsel %vm1739_vm11, 1, %v3929_v27  ;;  %v1814_v20 = vshrl.u32 %v1813_v10, 23 }
 0x347   :  { %v1496_v32 = vsel %vm1494_vm5, %v1482_v36, %v1495_v1  ;;  %v1623_v0 = vmul.f32 %v1622_v35, %v1620_v31  ;;  %v1742_v54 = vadd.s32 %v1740_v50, %v1734_v5  ;;  %v1694_v8 = vsel %vm1690_vm1, %v4667_v9, %v1693_v6 }
 0x348   :  { %v1500_v12 = vsel %vm1493_vm7, %v1496_v32, %v1499_v29  ;;  %v1725_v4 = vadd.s32 %v1724_v41, %v1714_v53  ;;  %vm1743_vm12 = vc.u32 %v1741_v7, %v1737_v46  ;;  %v3841_v57 = vadd.s32 4294967169, %v1814_v20  ;;  %v1109_v53 = vpop.f32.mrf.mxu1 }
 0x349   :  { %v1501_v56 = vsel %vm1491_vm8, nan, %v1500_v12  ;;  %v1624_v10 = vxor.u32 2147483648, %v1623_v0  ;;  %v1716_v13 = vshrl.u32 %v1711_v42, 16  ;;  %v1744_v52 = vsel %vm1743_vm12, 1, %v3929_v27 }
 0x34a   :  { %3812 = vst.msk [vmem:[%s6397_s7] sm:$0xff] %vm56_vm0, %v1501_v56  ;;  %v1810_v36 = vand.u32 2147483647, %v4696_v47  ;;  %vm4757_vm14 = vcmp.le.f32.partialorder %v1502_v59, 0.7853982  ;;  %v1736_v9 = vshrl.u32 %v4723_v43, 16  ;;  %v1746_v6 = vadd.s32 %v1744_v52, %v1742_v54 }
 0x34b   :  { %v1820_v63 = vadd.s32 1, %v3841_v57  ;;  %v1625_v48 = vsel %vm1504_vm13, %v1624_v10, %v1623_v0  ;;  %v1629_v42 = vsel %vm4757_vm14, 0, %v4712_v58  ;;  %v1695_v34 = vsel %vm1689_vm3, %v4716_v60, %v1694_v8 }
 0x34c   :  { %v4770_v39 = vadd.s32 %v1725_v4, %v1716_v13  ;;  %v1628_v59 = vsel %vm4757_vm14, %v4528_v61, %v1625_v48  ;;  %v1738_v43 = vshrl.u32 %v4727_v30, 16  ;;  %v1747_v21 = vadd.s32 %v1746_v6, %v1736_v9 }
 0x34d   :  { %vm1821_vm15 = vcmp.gt.s32.totalorder %v1820_v63, 0  ;;  %v1630_v55 = vmul.f32 %v1628_v59, %v1628_v59  ;;  %v4776_v5 = vadd.s32 %v1741_v7, %v1737_v46  ;;  %v1817_v58 = vand.u32 8388607, %v1810_v36 }
 0x34e   :  { %v1822_v62 = vsel %vm1821_vm15, %v1820_v63, 0  ;;  %v1748_v3 = vadd.s32 %v1747_v21, %v1738_v43  ;;  %v4783_v35 = vadd.f32 %v1109_v53, %v4649_v33  ;;  %v4785_v30 = vand.u32 3, %v1629_v42 }
 0x34f   :  { %v1824_v60 = vand.u32 31, %v1822_v62  ;;  %v1631_v44 = vmul.f32 -0.001358992, %v1630_v55  ;;  %v1638_v1 = vmul.f32 -0.00019511016, %v1630_v55  ;;  %vm1751_vm13 = vc.u32 %v4770_v39, %v4776_v5 }
 0x350   :  { %v1749_v15 = vmul.u32 %v4653_v40, %v1695_v34  ;;  %v1752_v46 = vadd.s32 1, %v1748_v3  ;;  %v1818_v32 = vor.u32 8388608, %v1817_v58  ;;  %v4790_v29 = vshrl.u32 %v1822_v62, 5 }
 0x351   :  { %v4788_v31 = vsub.s32 32, %v1824_v60  ;;  %v1632_v41 = vadd.f32 0.041655596, %v1631_v44  ;;  %v1639_v7 = vadd.f32 0.008332121, %v1638_v1  ;;  %v1827_v20 = vshll.u32 %v3939_v11, %v1824_v60 }
 0x352   :  { %v1753_v50 = vsel %vm1751_vm13, %v1752_v46, %v1748_v3  ;;  %v1830_v56 = vshll.u32 %v3940_v38, %v1824_v60  ;;  %v1833_v8 = vshll.u32 %v3941_v28, %v1824_v60  ;;  %v1836_v57 = vshll.u32 %v3942_v19, %v1824_v60 }
 0x353   :  { %v1828_v12 = vshrl.u32 %v3940_v38, %v4788_v31  ;;  %v1831_v33 = vshrl.u32 %v3941_v28, %v4788_v31  ;;  %v1633_v0 = vmul.f32 %v1632_v41, %v1630_v55  ;;  %v1640_v4 = vmul.f32 %v1639_v7, %v1630_v55 }
 0x354   :  { %v1754_v40 = vadd.s32 %v1753_v50, %v1749_v15  ;;  %v1834_v54 = vshrl.u32 %v3942_v19, %v4788_v31  ;;  %v6407_v10 = vmov 920167782   ;;  %v6408_v34 = vmov 1326507024  }
 0x355   :  { %v1837_v13 = vshrl.u32 %v6407_v10, %v4788_v31  ;;  %v1634_v52 = vadd.f32 -0.4999988, %v1633_v0  ;;  %v1641_v14 = vadd.f32 -0.16666654, %v1640_v4  ;;  %v4804_v6 = vor.u32 %v1828_v12, %v1827_v20  ;;  %v1218_v4 = vpop.f32.mrf.mxu2 }
 0x356   :  { %v1755_v9 = vadd.s32 536870912, %v1754_v40  ;;  %v4806_v63 = vor.u32 %v1831_v33, %v1830_v56  ;;  %v1839_v42 = vshll.u32 %v6407_v10, %v1824_v60  ;;  %v1840_v43 = vshrl.u32 %v6408_v34, %v4788_v31 }
 0x357   :  { %v1838_v48 = vor.u32 %v1837_v13, %v1836_v57  ;;  %v1635_v21 = vmul.f32 %v1634_v52, %v1630_v55  ;;  %v1642_v58 = vmul.f32 %v1641_v14, %v1630_v55  ;;  %v4813_v53 = vor.u32 %v1834_v54, %v1833_v8 }
 0x358   :  { %v4811_v62 = vshrl.u32 %v1755_v9, 30  ;;  %vm1645_vm1 = vweird.f32 %v4528_v61  ;;  %vm1647_vm2 = vcmp.lt.s32.totalorder %v4785_v30, 2  ;;  %v1841_v3 = vor.u32 %v1840_v43, %v1839_v42 }
 0x359   :  { %vm1842_vm3 = vcmp.lt.s32.totalorder %v4790_v29, 1  ;;  %v4818_v44 = vshll.u32 %v1818_v32, 8  ;;  %v1636_v1 = vadd.f32 1.0, %v1635_v21  ;;  %v1643_v60 = vadd.f32 1.0, %v1642_v58 }
 0x35a   :  { %v1757_v15 = vshll.u32 %v4811_v62, 30  ;;  %vm1845_vm4 = vcmp.lt.s32.totalorder %v4790_v29, 4  ;;  %vm1844_vm5 = vcmp.lt.s32.totalorder %v4790_v29, 3  ;;  %v1850_v55 = vsel %vm1842_vm3, %v4804_v6, %v4806_v63 }
 0x35b   :  { %v1851_v46 = vsel %vm1845_vm4, %v1838_v48, 920167782  ;;  %v1855_v41 = vsel %vm1845_vm4, %v1841_v3, 1326507024  ;;  %v1644_v7 = vmul.f32 %v1643_v60, %v1628_v59  ;;  %v1652_v32 = vxor.u32 2147483648, %v1636_v1 }
 0x35c   :  { %v1758_v50 = vsub.s32 %v1754_v40, %v1757_v15  ;;  %v1854_v20 = vsel %vm1842_vm3, %v4806_v63, %v4813_v53  ;;  %vm1648_vm6 = vcmp.eq.s32.totalorder %v4785_v30, 0  ;;  %vm1651_vm7 = vcmp.eq.s32.totalorder %v4785_v30, 2 }
 0x35d   :  { %v1852_v12 = vsel %vm1844_vm5, %v4813_v53, %v1851_v46  ;;  %v1856_v33 = vsel %vm1844_vm5, %v1838_v48, %v1855_v41  ;;  %v1649_v0 = vxor.u32 2147483648, %v1644_v7  ;;  %vm1843_vm9 = vcmp.lt.s32.totalorder %v4790_v29, 2  ;;  %v1301_v41 = vpop.f32.mrf.mxu3 }
 0x35e   :  { %vm1759_vm8 = vcmp.lt.s32.totalorder %v1758_v50, 0  ;;  %v1760_v59 = vsub.s32 0, %v1758_v50  ;;  %v1653_v40 = vsel %vm1651_vm7, %v1652_v32, %v1644_v7  ;;  %v1853_v54 = vsel %vm1843_vm9, %v1850_v55, %v1852_v12 }
 0x35f   :  { %v1857_v56 = vsel %vm1843_vm9, %v1854_v20, %v1856_v33  ;;  %v1859_v8 = vand.u32 65535, %v4818_v44  ;;  %v1650_v57 = vsel %vm1648_vm6, %v1636_v1, %v1649_v0  ;;  %v1860_v42 = vshrl.u32 %v4818_v44, 16 }
 0x360   :  { %v1761_v13 = vsel %vm1759_vm8, %v1760_v59, %v1758_v50  ;;  %v1861_v52 = vand.u32 65535, %v1857_v56  ;;  %v1862_v14 = vshrl.u32 %v1857_v56, 16  ;;  %v1654_v9 = vsel %vm1647_vm2, %v1650_v57, %v1653_v40 }
 0x361   :  { %v1762_v48 = vclz %v1761_v13  ;;  %v1219_v43 = vadd.f32 %v1218_v4, %v4783_v35  ;;  %v1655_v21 = vsel %vm1645_vm1, nan, %v1654_v9  ;;  %v1883_v60 = vand.u32 65535, %v1853_v54 }
 0x362   :  { %v1864_v58 = vmul.u32 %v1862_v14, %v1859_v8  ;;  %3813 = vst.msk [vmem:[%s6397_s7 + $0x8] sm:$0xff] %vm56_vm0, %v1655_v21  ;;  %v1865_v1 = vmul.u32 %v1861_v52, %v1860_v42  ;;  %v1750_v30 = vadd.s32 %v4776_v5, %v4770_v39  ;;  %v1863_v15 = vmul.u32 %v1861_v52, %v1859_v8 }
 0x363   :  { %v3839_v3 = vadd.s32 4294967294, %v1762_v48  ;;  %v1884_v46 = vshrl.u32 %v1853_v54, 16  ;;  %v1866_v35 = vmul.u32 %v1862_v14, %v1860_v42  ;;  %v4860_v7 = vadd.f32 %v1301_v41, %v1219_v43 }
 0x364   :  { %v1867_v55 = vshll.u32 %v1864_v58, 16  ;;  %v1869_v61 = vshll.u32 %v1865_v1, 16  ;;  %v1885_v4 = vmul.u32 %v1883_v60, %v1859_v8  ;;  %v1887_v5 = vmul.u32 %v1883_v60, %v1860_v42 }
 0x365   :  { %vm3840_vm10 = vcmp.lt.s32.totalorder %v3839_v3, 0  ;;  %v1886_v12 = vmul.u32 %v1884_v46, %v1859_v8  ;;  %v1868_v52 = vshrl.u32 %v1864_v58, 16  ;;  %v1888_v9 = vmul.u32 %v1884_v46, %v1860_v42 }
 0x366   :  { %v1765_v32 = vsel %vm3840_vm10, 0, %v3839_v3  ;;  %vm1871_vm11 = vc.u32 %v1863_v15, %v1867_v55  ;;  %v1873_v20 = vadd.s32 %v1867_v55, %v1863_v15  ;;  %v1891_v48 = vshll.u32 %v1887_v5, 16 }
 0x367   :  { %v1766_v33 = vsub.s32 32, %v1765_v32  ;;  %v1770_v0 = vsub.s32 4294967266, %v1765_v32  ;;  %v1872_v59 = vsel %vm1871_vm11, 1, %v3929_v27  ;;  %v1767_v40 = vshll.u32 %v1758_v50, %v1765_v32 }
 0x368   :  { %v1874_v39 = vadd.s32 %v1872_v59, %v1866_v35  ;;  %vm1875_vm12 = vc.u32 %v1873_v20, %v1869_v61  ;;  %v1889_v13 = vshll.u32 %v1886_v12, 16  ;;  %v1847_v60 = vsel %vm1845_vm4, %v4813_v53, 2102212464 }
 0x369   :  { %v1768_v54 = vshrl.u32 %v1750_v30, %v1766_v33  ;;  %v1771_v56 = vadd.s32 127, %v1770_v0  ;;  %v1876_v57 = vsel %vm1875_vm12, 1, %v3929_v27  ;;  %v1826_v58 = vshrl.u32 %v3939_v11, %v4788_v31 }
 0x36a   :  { %v1878_v14 = vadd.s32 %v1876_v57, %v1874_v39  ;;  %vm1893_vm14 = vc.u32 %v1885_v4, %v1889_v13  ;;  %v1895_v3 = vadd.s32 %v1889_v13, %v1885_v4  ;;  %v1870_v55 = vshrl.u32 %v1865_v1, 16 }
 0x36b   :  { %v1769_v43 = vor.u32 %v1768_v54, %v1767_v40  ;;  %v1772_v21 = vshll.u32 %v1771_v56, 23  ;;  %v1894_v8 = vsel %vm1893_vm14, 1, %v3929_v27  ;;  %v1967_v46 = vand.u32 2139095040, %v4860_v7 }
 0x36c   :  { %v1879_v15 = vadd.s32 %v1878_v14, %v1868_v52  ;;  %v1896_v30 = vadd.s32 %v1894_v8, %v1888_v9  ;;  %vm1897_vm15 = vc.u32 %v1895_v3, %v1891_v48  ;;  %v1890_v61 = vshrl.u32 %v1886_v12, 16 }
 0x36d   :  { %v1773_v50 = vor.u32 4788187, %v1772_v21  ;;  %v1898_v42 = vsel %vm1897_vm15, 1, %v3929_v27  ;;  %v1776_v35 = vcvt.s32.f32 %v1769_v43  ;;  %v1846_v20 = vsel %vm1842_vm3, %v1826_v58, %v4804_v6 }
 0x36e   :  { %v1900_v32 = vadd.s32 %v1898_v42, %v1896_v30  ;;  %v1848_v53 = vsel %vm1844_vm5, %v4806_v63, %v1847_v60  ;;  %v4878_v33 = vadd.s32 %v1879_v15, %v1870_v55  ;;  %v1968_v31 = vshrl.u32 %v1967_v46, 23 }
 0x36f   :  { %v1774_v41 = vand.u32 2147483647, %v1773_v50  ;;  %v1892_v0 = vshrl.u32 %v1887_v5, 16  ;;  %v1780_v4 = vsub.s32 4, %v4811_v62  ;;  %v4881_v40 = vadd.s32 %v1895_v3, %v1891_v48  ;;  %v1010_v5 = vpop.f32.mrf.mxu0 }
 0x370   :  { %v1901_v59 = vadd.s32 %v1900_v32, %v1890_v61  ;;  %v3844_v12 = vadd.s32 4294967169, %v1968_v31  ;;  %v1849_v54 = vsel %vm1843_vm9, %v1846_v20, %v1848_v53  ;;  %vm1658_vm13 = vcmp.lt.s32.totalorder %v4614_v25, 0 }
 0x371   :  { %v1777_v1 = vmul.f32 %v1776_v35, %v1774_v41  ;;  %vm1905_vm1 = vc.u32 %v4878_v33, %v4881_v40  ;;  %v1964_v63 = vand.u32 2147483647, %v4860_v7  ;;  %v6409_v57 = vand.u32 2147483647, %v4614_v25 }
 0x372   :  { %v1902_v6 = vadd.s32 %v1901_v59, %v1892_v0  ;;  %v1974_v56 = vadd.s32 1, %v3844_v12  ;;  %v1781_v29 = vsel %vm1658_vm13, %v1780_v4, %v4811_v62  ;;  %v1903_v48 = vmul.u32 %v4818_v44, %v1849_v54  ;;  %v1115_v44 = vpop.f32.mrf.mxu1 }
 0x373   :  { %v1778_v39 = vxor.u32 2147483648, %v1777_v1  ;;  %vm4891_vm2 = vcmp.le.f32.partialorder %v6409_v57, 0.7853982  ;;  %v1011_v15 = vadd.f32 %v1010_v5, %v4464_v23  ;;  %v1971_v50 = vand.u32 8388607, %v1964_v63 }
 0x374   :  { %v1906_v14 = vadd.s32 1, %v1902_v6  ;;  %vm1975_vm3 = vcmp.gt.s32.totalorder %v1974_v56, 0  ;;  %v1783_v62 = vsel %vm4891_vm2, 0, %v1781_v29  ;;  %vm1799_vm5 = vweird.f32 %v4614_v25 }
 0x375   :  { %v1779_v52 = vsel %vm1658_vm13, %v1778_v39, %v1777_v1  ;;  %v1976_v3 = vsel %vm1975_vm3, %v1974_v56, 0  ;;  %v1800_v35 = vand.u32 3, %v1783_v62  ;;  %v1972_v23 = vor.u32 8388608, %v1971_v50 }
 0x376   :  { %v1782_v9 = vsel %vm4891_vm2, %v4614_v25, %v1779_v52  ;;  %v1907_v21 = vsel %vm1905_vm1, %v1906_v14, %v1902_v6  ;;  %v1978_v60 = vand.u32 31, %v1976_v3  ;;  %v4909_v32 = vadd.f32 %v1115_v44, %v1011_v15 }
 0x377   :  { %v1784_v43 = vmul.f32 %v1782_v9, %v1782_v9  ;;  %v1908_v8 = vadd.s32 %v1907_v21, %v1903_v48  ;;  %v4916_v59 = vshrl.u32 %v1976_v3, 5  ;;  %vm1801_vm4 = vcmp.lt.s32.totalorder %v1800_v35, 2 }
 0x378   :  { %v4905_v42 = vsub.s32 32, %v1978_v60  ;;  %v1981_v4 = vshll.u32 %v3939_v11, %v1978_v60  ;;  %v1984_v6 = vshll.u32 %v3940_v38, %v1978_v60  ;;  %v1987_v56 = vshll.u32 %v3941_v28, %v1978_v60 }
 0x379   :  { %v1785_v30 = vmul.f32 -0.001358992, %v1784_v43  ;;  %v1792_v58 = vmul.f32 -0.00019511016, %v1784_v43  ;;  %v1909_v55 = vadd.s32 536870912, %v1908_v8  ;;  %v1990_v13 = vshll.u32 %v3942_v19, %v1978_v60 }
 0x37a   :  { %v1982_v31 = vshrl.u32 %v3940_v38, %v4905_v42  ;;  %v1985_v1 = vshrl.u32 %v3941_v28, %v4905_v42  ;;  %v1991_v12 = vshrl.u32 %v6407_v10, %v4905_v42  ;;  %v1988_v57 = vshrl.u32 %v3942_v19, %v4905_v42 }
 0x37b   :  { %v1786_v46 = vadd.f32 0.041655596, %v1785_v30  ;;  %v1793_v41 = vadd.f32 0.008332121, %v1792_v58  ;;  %v4907_v61 = vshrl.u32 %v1909_v55, 30  ;;  %v1994_v52 = vshrl.u32 %v6408_v34, %v4905_v42 }
 0x37c   :  { %v4930_v48 = vor.u32 %v1982_v31, %v1981_v4  ;;  %v4932_v21 = vor.u32 %v1985_v1, %v1984_v6  ;;  %v1992_v15 = vor.u32 %v1991_v12, %v1990_v13  ;;  %vm1802_vm7 = vcmp.eq.s32.totalorder %v1800_v35, 0 }
 0x37d   :  { %v1787_v20 = vmul.f32 %v1786_v46, %v1784_v43  ;;  %v1794_v53 = vmul.f32 %v1793_v41, %v1784_v43  ;;  %v1911_v0 = vshll.u32 %v4907_v61, 30  ;;  %vm1805_vm8 = vcmp.eq.s32.totalorder %v1800_v35, 2 }
 0x37e   :  { %v1989_v30 = vor.u32 %v1988_v57, %v1987_v56  ;;  %vm1996_vm9 = vcmp.lt.s32.totalorder %v4916_v59, 1  ;;  %vm1999_vm10 = vcmp.lt.s32.totalorder %v4916_v59, 4  ;;  %v1904_v41 = vadd.s32 %v4881_v40, %v4878_v33 }
 0x37f   :  { %v1788_v39 = vadd.f32 -0.4999988, %v1787_v20  ;;  %v1795_v54 = vadd.f32 -0.16666654, %v1794_v53  ;;  %v4923_v5 = vsub.s32 %v1908_v8, %v1911_v0  ;;  %v1993_v8 = vshll.u32 %v6407_v10, %v1978_v60 }
 0x380   :  { %v2004_v60 = vsel %vm1996_vm9, %v4930_v48, %v4932_v21  ;;  %v2005_v20 = vsel %vm1999_vm10, %v1992_v15, 920167782  ;;  %v4949_v53 = vshll.u32 %v1972_v23, 8  ;;  %vm1997_vm11 = vcmp.lt.s32.totalorder %v4916_v59, 2 }
 0x381   :  { %v1789_v14 = vmul.f32 %v1788_v39, %v1784_v43  ;;  %v1796_v29 = vmul.f32 %v1795_v54, %v1784_v43  ;;  %vm1913_vm6 = vcmp.lt.s32.totalorder %v4923_v5, 0  ;;  %v1914_v3 = vsub.s32 0, %v4923_v5 }
 0x382   :  { %v1995_v58 = vor.u32 %v1994_v52, %v1993_v8  ;;  %vm1998_vm12 = vcmp.lt.s32.totalorder %v4916_v59, 3  ;;  %v2008_v40 = vsel %vm1996_vm9, %v4932_v21, %v1989_v30  ;;  %v2014_v35 = vshrl.u32 %v4949_v53, 16 }
 0x383   :  { %v1790_v50 = vadd.f32 1.0, %v1789_v14  ;;  %v1797_v62 = vadd.f32 1.0, %v1796_v29  ;;  %v1915_v43 = vsel %vm1913_vm6, %v1914_v3, %v4923_v5  ;;  %v2006_v33 = vsel %vm1998_vm12, %v1989_v30, %v2005_v20 }
 0x384   :  { %v1916_v46 = vclz %v1915_v43  ;;  %v2009_v0 = vsel %vm1999_vm10, %v1995_v58, 1326507024  ;;  %v2007_v4 = vsel %vm1997_vm11, %v2004_v60, %v2006_v33  ;;  %v2013_v14 = vand.u32 65535, %v4949_v53 }
 0x385   :  { %v1798_v55 = vmul.f32 %v1797_v62, %v1782_v9  ;;  %v1806_v44 = vxor.u32 2147483648, %v1790_v50  ;;  %v2010_v12 = vsel %vm1998_vm12, %v1992_v15, %v2009_v0  ;;  %v2037_v56 = vand.u32 65535, %v2007_v4 }
 0x386   :  { %v3842_v1 = vadd.s32 4294967294, %v1916_v46  ;;  %v2011_v6 = vsel %vm1997_vm11, %v2008_v40, %v2010_v12  ;;  %v2038_v15 = vshrl.u32 %v2007_v4, 16  ;;  %v1980_v25 = vshrl.u32 %v3939_v11, %v4905_v42 }
 0x387   :  { %v1803_v31 = vxor.u32 2147483648, %v1798_v55  ;;  %v1807_v9 = vsel %vm1805_vm8, %v1806_v44, %v1798_v55  ;;  %v2015_v29 = vand.u32 65535, %v2011_v6  ;;  %v2016_v3 = vshrl.u32 %v2011_v6, 16 }
 0x388   :  { %vm3843_vm14 = vcmp.lt.s32.totalorder %v3842_v1, 0  ;;  %v1934_v43 = vsub.s32 4, %v4907_v61  ;;  %v2041_v44 = vmul.u32 %v2037_v56, %v2014_v35  ;;  %v2001_v20 = vsel %vm1999_vm10, %v1989_v30, 2102212464 }
 0x389   :  { %v1804_v23 = vsel %vm1802_vm7, %v1790_v50, %v1803_v31  ;;  %v1919_v54 = vsel %vm3843_vm14, 0, %v3842_v1  ;;  %v2018_v58 = vmul.u32 %v2016_v3, %v2013_v14  ;;  %v2019_v55 = vmul.u32 %v2015_v29, %v2014_v35 }
 0x38a   :  { %v1808_v39 = vsel %vm1801_vm4, %v1804_v23, %v1807_v9  ;;  %v1920_v13 = vsub.s32 32, %v1919_v54  ;;  %v1924_v52 = vsub.s32 4294967266, %v1919_v54  ;;  %v1921_v8 = vshll.u32 %v4923_v5, %v1919_v54  ;;  %v1222_v23 = vpop.f32.mrf.mxu2 }
 0x38b   :  { %v1809_v57 = vsel %vm1799_vm5, nan, %v1808_v39  ;;  %v2040_v31 = vmul.u32 %v2038_v15, %v2013_v14  ;;  %vm1812_vm15 = vcmp.lt.s32.totalorder %v4696_v47, 0  ;;  %v2017_v1 = vmul.u32 %v2015_v29, %v2013_v14  ;;  %v1305_v29 = vpop.f32.mrf.mxu3 }
 0x38c   :  { %3814 = vst.msk [vmem:[%s6397_s7 + $0x10] sm:$0xff] %vm56_vm0, %v1809_v57  ;;  %v1922_v50 = vshrl.u32 %v1904_v41, %v1920_v13  ;;  %v1925_v62 = vadd.s32 127, %v1924_v52  ;;  %v2020_v5 = vmul.u32 %v2016_v3, %v2014_v35  ;;  %v2021_v41 = vshll.u32 %v2018_v58, 16 }
 0x38d   :  { %v2039_v9 = vmul.u32 %v2037_v56, %v2013_v14  ;;  %v2023_v40 = vshll.u32 %v2019_v55, 16  ;;  %v2042_v42 = vmul.u32 %v2038_v15, %v2014_v35  ;;  %v2043_v0 = vshll.u32 %v2040_v31, 16 }
 0x38e   :  { %v1923_v46 = vor.u32 %v1922_v50, %v1921_v8  ;;  %v1926_v60 = vshll.u32 %v1925_v62, 23  ;;  %vm2025_vm13 = vc.u32 %v2017_v1, %v2021_v41  ;;  %v2027_v12 = vadd.s32 %v2021_v41, %v2017_v1 }
 0x38f   :  { %v2045_v39 = vshll.u32 %v2041_v44, 16  ;;  %v2026_v6 = vsel %vm2025_vm13, 1, %v3929_v27  ;;  %vm2047_vm1 = vc.u32 %v2039_v9, %v2043_v0  ;;  %v2049_v30 = vadd.s32 %v2043_v0, %v2039_v9 }
 0x390   :  { %v1927_v33 = vor.u32 4788187, %v1926_v60  ;;  %v1930_v4 = vcvt.s32.f32 %v1923_v46  ;;  %v2028_v57 = vadd.s32 %v2026_v6, %v2020_v5  ;;  %vm2029_vm2 = vc.u32 %v2027_v12, %v2023_v40 }
 0x391   :  { %v2048_v13 = vsel %vm2047_vm1, 1, %v3929_v27  ;;  %v1223_v56 = vadd.f32 %v1222_v23, %v4909_v32  ;;  %v2030_v14 = vsel %vm2029_vm2, 1, %v3929_v27  ;;  %vm2051_vm3 = vc.u32 %v2049_v30, %v2045_v39  ;;  %v1015_v32 = vpop.f32.mrf.mxu0 }
 0x392   :  { %v1928_v54 = vand.u32 2147483647, %v1927_v33  ;;  %v2050_v35 = vadd.s32 %v2048_v13, %v2042_v42  ;;  %v2022_v3 = vshrl.u32 %v2018_v58, 16  ;;  %v2032_v15 = vadd.s32 %v2030_v14, %v2028_v57 }
 0x393   :  { %v2052_v8 = vsel %vm2051_vm3, 1, %v3929_v27  ;;  %v4989_v50 = vadd.f32 %v1305_v29, %v1223_v56  ;;  %v2000_v46 = vsel %vm1996_vm9, %v1980_v25, %v4930_v48  ;;  %v2044_v60 = vshrl.u32 %v2040_v31, 16 }
 0x394   :  { %v1931_v52 = vmul.f32 %v1930_v4, %v1928_v54  ;;  %v2054_v1 = vadd.s32 %v2052_v8, %v2050_v35  ;;  %v2002_v5 = vsel %vm1998_vm12, %v4932_v21, %v2001_v20  ;;  %v2024_v41 = vshrl.u32 %v2019_v55, 16 }
 0x395   :  { %v2033_v9 = vadd.s32 %v2032_v15, %v2022_v3  ;;  %v2121_v58 = vand.u32 2139095040, %v4989_v50  ;;  %vm5000_vm4 = vcmp.le.f32.partialorder %v1810_v36, 0.7853982  ;;  %v2046_v25 = vshrl.u32 %v2041_v44, 16 }
 0x396   :  { %v1932_v62 = vxor.u32 2147483648, %v1931_v52  ;;  %v2055_v31 = vadd.s32 %v2054_v1, %v2044_v60  ;;  %v5011_v55 = vadd.s32 %v2049_v30, %v2045_v39  ;;  %v2003_v36 = vsel %vm1997_vm11, %v2000_v46, %v2002_v5  ;;  %v1121_v60 = vpop.f32.mrf.mxu1 }
 0x397   :  { %v5009_v21 = vadd.s32 %v2033_v9, %v2024_v41  ;;  %v2122_v20 = vshrl.u32 %v2121_v58, 23  ;;  %v1935_v23 = vsel %vm1812_vm15, %v1934_v43, %v4907_v61  ;;  %v2057_v39 = vmul.u32 %v4949_v53, %v2003_v36 }
 0x398   :  { %v1933_v48 = vsel %vm1812_vm15, %v1932_v62, %v1931_v52  ;;  %v2056_v0 = vadd.s32 %v2055_v31, %v2046_v25  ;;  %v2118_v6 = vand.u32 2147483647, %v4989_v50  ;;  %v1937_v59 = vsel %vm5000_vm4, 0, %v1935_v23 }
 0x399   :  { %v1936_v40 = vsel %vm5000_vm4, %v4696_v47, %v1933_v48  ;;  %vm2059_vm5 = vc.u32 %v5009_v21, %v5011_v55  ;;  %v3847_v44 = vadd.s32 4294967169, %v2122_v20  ;;  %v1016_v61 = vadd.f32 %v1015_v32, %v4469_v37  ;;  %v1020_v29 = vpop.f32.mrf.mxu0 }
 0x39a   :  { %v1938_v42 = vmul.f32 %v1936_v40, %v1936_v40  ;;  %v2060_v54 = vadd.s32 1, %v2056_v0  ;;  %v1954_v3 = vand.u32 3, %v1937_v59  ;;  %v2125_v53 = vand.u32 8388607, %v2118_v6 }
 0x39b   :  { %v2128_v30 = vadd.s32 1, %v3847_v44  ;;  %v5032_v41 = vadd.f32 %v1020_v29, %v4474_v51  ;;  %v5034_v9 = vadd.f32 %v1121_v60, %v1016_v61  ;;  %vm1953_vm7 = vweird.f32 %v4696_v47 }
 0x39c   :  { %v1939_v4 = vmul.f32 -0.001358992, %v1938_v42  ;;  %v1946_v12 = vmul.f32 -0.00019511016, %v1938_v42  ;;  %v2061_v56 = vsel %vm2059_vm5, %v2060_v54, %v2056_v0  ;;  %vm1955_vm8 = vcmp.lt.s32.totalorder %v1954_v3, 2 }
 0x39d   :  { %v2062_v52 = vadd.s32 %v2061_v56, %v2057_v39  ;;  %vm2129_vm6 = vcmp.gt.s32.totalorder %v2128_v30, 0  ;;  %vm1956_vm9 = vcmp.eq.s32.totalorder %v1954_v3, 0  ;;  %v2126_v33 = vor.u32 8388608, %v2125_v53 }
 0x39e   :  { %v1940_v57 = vadd.f32 0.041655596, %v1939_v4  ;;  %v1947_v13 = vadd.f32 0.008332121, %v1946_v12  ;;  %v2130_v35 = vsel %vm2129_vm6, %v2128_v30, 0  ;;  %vm1959_vm11 = vcmp.eq.s32.totalorder %v1954_v3, 2 }
 0x39f   :  { %v2063_v15 = vadd.s32 536870912, %v2062_v52  ;;  %v2132_v8 = vand.u32 31, %v2130_v35  ;;  %vm1966_vm12 = vcmp.lt.s32.totalorder %v4860_v7, 0  ;;  %v2058_v53 = vadd.s32 %v5011_v55, %v5009_v21 }
 0x3a0   :  { %v1941_v43 = vmul.f32 %v1940_v57, %v1938_v42  ;;  %v1948_v14 = vmul.f32 %v1947_v13, %v1938_v42  ;;  %vm5116_vm3 = vcmp.le.f32.partialorder %v1964_v63, 0.7853982 }
 0x3a1   :  { %v5027_v1 = vshrl.u32 %v2063_v15, 30  ;;  %v5029_v5 = vsub.s32 32, %v2132_v8  ;;  %v2135_v4 = vshll.u32 %v3939_v11, %v2132_v8  ;;  %v2138_v12 = vshll.u32 %v3940_v38, %v2132_v8 }
 0x3a2   :  { %v1942_v62 = vadd.f32 -0.4999988, %v1941_v43  ;;  %v1949_v46 = vadd.f32 -0.16666654, %v1948_v14  ;;  %v2141_v39 = vshll.u32 %v3941_v28, %v2132_v8  ;;  %v2144_v30 = vshll.u32 %v3942_v19, %v2132_v8 }
 0x3a3   :  { %v2065_v58 = vshll.u32 %v5027_v1, 30  ;;  %v2136_v31 = vshrl.u32 %v3940_v38, %v5029_v5  ;;  %v2139_v51 = vshrl.u32 %v3941_v28, %v5029_v5  ;;  %v2142_v36 = vshrl.u32 %v3942_v19, %v5029_v5 }
 0x3a4   :  { %v1943_v37 = vmul.f32 %v1942_v62, %v1938_v42  ;;  %v1950_v32 = vmul.f32 %v1949_v46, %v1938_v42  ;;  %v5044_v42 = vshrl.u32 %v2130_v35, 5  ;;  %v2145_v0 = vshrl.u32 %v6407_v10, %v5029_v5 }
 0x3a5   :  { %v5042_v20 = vsub.s32 %v2062_v52, %v2065_v58  ;;  %v5056_v57 = vor.u32 %v2136_v31, %v2135_v4  ;;  %v5058_v13 = vor.u32 %v2139_v51, %v2138_v12  ;;  %v2143_v52 = vor.u32 %v2142_v36, %v2141_v39 }
 0x3a6   :  { %v1944_v48 = vadd.f32 1.0, %v1943_v37  ;;  %v1951_v25 = vadd.f32 1.0, %v1950_v32  ;;  %v2146_v61 = vor.u32 %v2145_v0, %v2144_v30  ;;  %v2147_v35 = vshll.u32 %v6407_v10, %v2132_v8 }
 0x3a7   :  { %vm2067_vm10 = vcmp.lt.s32.totalorder %v5042_v20, 0  ;;  %v2068_v54 = vsub.s32 0, %v5042_v20  ;;  %v2148_v29 = vshrl.u32 %v6408_v34, %v5029_v5  ;;  %vm2150_vm14 = vcmp.lt.s32.totalorder %v5044_v42, 1 }
 0x3a8   :  { %v1952_v23 = vmul.f32 %v1951_v25, %v1936_v40  ;;  %v1960_v44 = vxor.u32 2147483648, %v1944_v48  ;;  %v5070_v62 = vshll.u32 %v2126_v33, 8  ;;  %vm2153_vm15 = vcmp.lt.s32.totalorder %v5044_v42, 4 }
 0x3a9   :  { %v2069_v56 = vsel %vm2067_vm10, %v2068_v54, %v5042_v20  ;;  %v2149_v37 = vor.u32 %v2148_v29, %v2147_v35  ;;  %vm2152_vm13 = vcmp.lt.s32.totalorder %v5044_v42, 3  ;;  %v2158_v21 = vsel %vm2150_vm14, %v5056_v57, %v5058_v13 }
 0x3aa   :  { %v1957_v59 = vxor.u32 2147483648, %v1952_v23  ;;  %v1961_v40 = vsel %vm1959_vm11, %v1960_v44, %v1952_v23  ;;  %v2070_v14 = vclz %v2069_v56  ;;  %v2159_v47 = vsel %vm2153_vm15, %v2146_v61, 920167782 }
 0x3ab   :  { %v2162_v55 = vsel %vm2150_vm14, %v5058_v13, %v2143_v52  ;;  %vm2151_vm2 = vcmp.lt.s32.totalorder %v5044_v42, 2  ;;  %v2160_v3 = vsel %vm2152_vm13, %v2143_v52, %v2159_v47  ;;  %v2163_v8 = vsel %vm2153_vm15, %v2149_v37, 1326507024 }
 0x3ac   :  { %v1958_v43 = vsel %vm1956_vm9, %v1944_v48, %v1957_v59  ;;  %v3845_v60 = vadd.s32 4294967294, %v2070_v14  ;;  %v2088_v58 = vsub.s32 4, %v5027_v1  ;;  %v2161_v33 = vsel %vm2151_vm2, %v2158_v21, %v2160_v3  ;;  %v1226_v59 = vpop.f32.mrf.mxu2 }
 0x3ad   :  { %v1962_v15 = vsel %vm1955_vm8, %v1958_v43, %v1961_v40  ;;  %v2164_v48 = vsel %vm2152_vm13, %v2146_v61, %v2163_v8  ;;  %v2167_v36 = vand.u32 65535, %v5070_v62  ;;  %v2168_v0 = vshrl.u32 %v5070_v62, 16 }
 0x3ae   :  { %v1963_v46 = vsel %vm1953_vm7, nan, %v1962_v15  ;;  %vm3846_vm1 = vcmp.lt.s32.totalorder %v3845_v60, 0  ;;  %v2165_v51 = vsel %vm2151_vm2, %v2162_v55, %v2164_v48  ;;  %v2192_v4 = vshrl.u32 %v2161_v33, 16  ;;  %v1309_v48 = vpop.f32.mrf.mxu3 }
 0x3af   :  { %3815 = vst.msk [vmem:[%s6397_s7 + $0x18] sm:$0xff] %vm56_vm0, %v1963_v46  ;;  %v2073_v32 = vsel %vm3846_vm1, 0, %v3845_v60  ;;  %v2169_v23 = vand.u32 65535, %v2165_v51  ;;  %v2170_v44 = vshrl.u32 %v2165_v51, 16  ;;  %v2191_v30 = vand.u32 65535, %v2161_v33 }
 0x3b0   :  { %v2074_v25 = vsub.s32 32, %v2073_v32  ;;  %v2078_v31 = vsub.s32 4294967266, %v2073_v32  ;;  %v2075_v12 = vshll.u32 %v5042_v20, %v2073_v32  ;;  %v5107_v40 = vsel %vm1966_vm12, %v2088_v58, %v5027_v1 }
 0x3b1   :  { %v2134_v56 = vshrl.u32 %v3939_v11, %v5029_v5  ;;  %v2172_v61 = vmul.u32 %v2170_v44, %v2167_v36  ;;  %v2173_v43 = vmul.u32 %v2169_v23, %v2168_v0  ;;  %v2155_v29 = vsel %vm2153_vm15, %v2143_v52, 2102212464 }
 0x3b2   :  { %v2076_v54 = vshrl.u32 %v2058_v53, %v2074_v25  ;;  %v2079_v39 = vadd.s32 127, %v2078_v31  ;;  %v2194_v20 = vmul.u32 %v2192_v4, %v2167_v36  ;;  %v2171_v15 = vmul.u32 %v2169_v23, %v2167_v36 }
 0x3b3   :  { %v2174_v53 = vmul.u32 %v2170_v44, %v2168_v0  ;;  %v2175_v46 = vshll.u32 %v2172_v61, 16  ;;  %v1227_v60 = vadd.f32 %v1226_v59, %v5034_v9  ;;  %v2177_v37 = vshll.u32 %v2173_v43, 16 }
 0x3b4   :  { %v2077_v14 = vor.u32 %v2076_v54, %v2075_v12  ;;  %v2080_v35 = vshll.u32 %v2079_v39, 23  ;;  %v2193_v21 = vmul.u32 %v2191_v30, %v2167_v36  ;;  %v2195_v47 = vmul.u32 %v2191_v30, %v2168_v0  ;;  %v1025_v54 = vpop.f32.mrf.mxu0 }
 0x3b5   :  { %vm2179_vm4 = vc.u32 %v2171_v15, %v2175_v46  ;;  %v2181_v3 = vadd.s32 %v2175_v46, %v2171_v15  ;;  %v2197_v52 = vshll.u32 %v2194_v20, 16  ;;  %v2196_v58 = vmul.u32 %v2192_v4, %v2168_v0 }
 0x3b6   :  { %v2081_v5 = vor.u32 4788187, %v2080_v35  ;;  %v2084_v55 = vcvt.s32.f32 %v2077_v14  ;;  %v2180_v32 = vsel %vm2179_vm4, 1, %v3929_v27  ;;  %v2199_v33 = vshll.u32 %v2195_v47, 16 }
 0x3b7   :  { %v2182_v9 = vadd.s32 %v2180_v32, %v2174_v53  ;;  %vm2183_vm5 = vc.u32 %v2181_v3, %v2177_v37  ;;  %vm2201_vm6 = vc.u32 %v2193_v21, %v2197_v52  ;;  %v2203_v63 = vadd.s32 %v2197_v52, %v2193_v21 }
 0x3b8   :  { %v2082_v8 = vand.u32 2147483647, %v2081_v5  ;;  %v2184_v31 = vsel %vm2183_vm5, 1, %v3929_v27  ;;  %v2202_v51 = vsel %vm2201_vm6, 1, %v3929_v27  ;;  %v5123_v36 = vadd.f32 %v1309_v48, %v1227_v60  ;;  %v1127_v5 = vpop.f32.mrf.mxu1 }
 0x3b9   :  { %v2176_v23 = vshrl.u32 %v2172_v61, 16  ;;  %v2186_v44 = vadd.s32 %v2184_v31, %v2182_v9  ;;  %v2204_v12 = vadd.s32 %v2202_v51, %v2196_v58  ;;  %vm2205_vm7 = vc.u32 %v2203_v63, %v2199_v33 }
 0x3ba   :  { %v2085_v25 = vmul.f32 %v2084_v55, %v2082_v8  ;;  %v2154_v0 = vsel %vm2150_vm14, %v2134_v56, %v5056_v57  ;;  %v2178_v4 = vshrl.u32 %v2173_v43, 16  ;;  %v2206_v30 = vsel %vm2205_vm7, 1, %v3929_v27  ;;  %v1230_v55 = vpop.f32.mrf.mxu2 }
 0x3bb   :  { %v2187_v59 = vadd.s32 %v2186_v44, %v2176_v23  ;;  %v2198_v14 = vshrl.u32 %v2194_v20, 16  ;;  %v2208_v35 = vadd.s32 %v2206_v30, %v2204_v12  ;;  %v2275_v15 = vand.u32 2139095040, %v5123_v36  ;;  %v1313_v12 = vpop.f32.mrf.mxu3 }
 0x3bc   :  { %v2086_v39 = vxor.u32 2147483648, %v2085_v25  ;;  %v2156_v53 = vsel %vm2152_vm13, %v5058_v13, %v2155_v29  ;;  %v2200_v46 = vshrl.u32 %v2195_v47, 16  ;;  %v2272_v60 = vand.u32 2147483647, %v5123_v36 }
 0x3bd   :  { %v2188_v56 = vadd.s32 %v2187_v59, %v2178_v4  ;;  %v2209_v43 = vadd.s32 %v2208_v35, %v2198_v14  ;;  %v2276_v20 = vshrl.u32 %v2275_v15, 23  ;;  %v2207_v21 = vadd.s32 %v2203_v63, %v2199_v33 }
 0x3be   :  { %v2087_v61 = vsel %vm1966_vm12, %v2086_v39, %v2085_v25  ;;  %v2157_v3 = vsel %vm2151_vm2, %v2154_v0, %v2156_v53  ;;  %v1128_v13 = vadd.f32 %v1127_v5, %v5032_v41  ;;  %v2091_v29 = vsel %vm5116_vm3, 0, %v5107_v40  ;;  %v1030_v41 = vpop.f32.mrf.mxu0 }
 0x3bf   :  { %v2090_v57 = vsel %vm5116_vm3, %v4860_v7, %v2087_v61  ;;  %v2210_v52 = vadd.s32 %v2209_v43, %v2200_v46  ;;  %v3850_v8 = vadd.s32 4294967169, %v2276_v20  ;;  %vm2213_vm8 = vc.u32 %v2188_v56, %v2207_v21 }
 0x3c0   :  { %v2092_v37 = vmul.f32 %v2090_v57, %v2090_v57  ;;  %v2279_v9 = vand.u32 8388607, %v2272_v60  ;;  %v1231_v63 = vadd.f32 %v1230_v55, %v1128_v13  ;;  %v2211_v25 = vmul.u32 %v5070_v62, %v2157_v3 }
 0x3c1   :  { %v2214_v58 = vadd.s32 1, %v2210_v52  ;;  %v2282_v33 = vadd.s32 1, %v3850_v8  ;;  %v2108_v31 = vand.u32 3, %v2091_v29  ;;  %v5151_v35 = vadd.f32 %v1025_v54, %v4479_v17 }
 0x3c2   :  { %v2093_v47 = vmul.f32 -0.001358992, %v2092_v37  ;;  %v2100_v32 = vmul.f32 -0.00019511016, %v2092_v37  ;;  %v2280_v39 = vor.u32 8388608, %v2279_v9  ;;  %v5148_v4 = vadd.f32 %v1313_v12, %v1231_v63 }
 0x3c3   :  { %v2215_v51 = vsel %vm2213_vm8, %v2214_v58, %v2210_v52  ;;  %vm2283_vm9 = vcmp.gt.s32.totalorder %v2282_v33, 0  ;;  %v5154_v62 = vadd.f32 %v1030_v41, %v4484_v2  ;;  %vm2109_vm10 = vcmp.lt.s32.totalorder %v2108_v31, 2 }
 0x3c4   :  { %v2094_v48 = vadd.f32 0.041655596, %v2093_v47  ;;  %v2101_v42 = vadd.f32 0.008332121, %v2100_v32  ;;  %v2216_v40 = vadd.s32 %v2215_v51, %v2211_v25  ;;  %v2284_v44 = vsel %vm2283_vm9, %v2282_v33, 0 }
 0x3c5   :  { %v2286_v0 = vand.u32 31, %v2284_v44  ;;  %vm2110_vm11 = vcmp.eq.s32.totalorder %v2108_v31, 0  ;;  %vm2107_vm12 = vweird.f32 %v4860_v7  ;;  %vm2113_vm14 = vcmp.eq.s32.totalorder %v2108_v31, 2 }
 0x3c6   :  { %v2095_v23 = vmul.f32 %v2094_v48, %v2092_v37  ;;  %v2102_v1 = vmul.f32 %v2101_v42, %v2092_v37  ;;  %v2217_v14 = vadd.s32 536870912, %v2216_v40  ;;  %v5161_v43 = vadd.s32 %v2207_v21, %v2188_v56 }
 0x3c7   :  { %v5156_v15 = vsub.s32 32, %v2286_v0  ;;  %v5163_v20 = vshll.u32 %v2280_v39, 8  ;;  %v2429_v17 = vand.u32 2139095040, %v5148_v4  ;;  %v5167_v55 = vshrl.u32 %v2284_v44, 5 }
 0x3c8   :  { %v2096_v30 = vadd.f32 -0.4999988, %v2095_v23  ;;  %v2103_v59 = vadd.f32 -0.16666654, %v2102_v1  ;;  %v5158_v46 = vshrl.u32 %v2217_v14, 30  ;;  %v2289_v29 = vshll.u32 %v3939_v11, %v2286_v0 }
 0x3c9   :  { %v2293_v3 = vshrl.u32 %v3941_v28, %v5156_v15  ;;  %v2296_v56 = vshrl.u32 %v3942_v19, %v5156_v15  ;;  %v2299_v21 = vshrl.u32 %v6407_v10, %v5156_v15  ;;  %v2292_v47 = vshll.u32 %v3940_v38, %v2286_v0 }
 0x3ca   :  { %v2097_v61 = vmul.f32 %v2096_v30, %v2092_v37  ;;  %v2104_v53 = vmul.f32 %v2103_v59, %v2092_v37  ;;  %v2219_v5 = vshll.u32 %v5158_v46, 30  ;;  %v2290_v37 = vshrl.u32 %v3940_v38, %v5156_v15 }
 0x3cb   :  { %v2295_v32 = vshll.u32 %v3941_v28, %v2286_v0  ;;  %v2298_v58 = vshll.u32 %v3942_v19, %v2286_v0  ;;  %v2302_v9 = vshrl.u32 %v6408_v34, %v5156_v15  ;;  %v2301_v48 = vshll.u32 %v6407_v10, %v2286_v0 }
 0x3cc   :  { %v2098_v54 = vadd.f32 1.0, %v2097_v61  ;;  %v2105_v2 = vadd.f32 1.0, %v2104_v53  ;;  %v2220_v13 = vsub.s32 %v2216_v40, %v2219_v5  ;;  %v2291_v42 = vor.u32 %v2290_v37, %v2289_v29 }
 0x3cd   :  { %v2297_v25 = vor.u32 %v2296_v56, %v2295_v32  ;;  %v2300_v51 = vor.u32 %v2299_v21, %v2298_v58  ;;  %v2303_v40 = vor.u32 %v2302_v9, %v2301_v48  ;;  %v2321_v39 = vand.u32 65535, %v5163_v20 }
 0x3ce   :  { %v2106_v52 = vmul.f32 %v2105_v2, %v2090_v57  ;;  %v2114_v8 = vxor.u32 2147483648, %v2098_v54  ;;  %vm2221_vm15 = vcmp.lt.s32.totalorder %v2220_v13, 0  ;;  %v2222_v63 = vsub.s32 0, %v2220_v13 }
 0x3cf   :  { %v5184_v57 = vor.u32 %v2293_v3, %v2292_v47  ;;  %v2426_v30 = vand.u32 2147483647, %v5148_v4  ;;  %vm2304_vm13 = vcmp.lt.s32.totalorder %v5167_v55, 1  ;;  %vm2307_vm1 = vcmp.lt.s32.totalorder %v5167_v55, 4 }
 0x3d0   :  { %v2111_v33 = vxor.u32 2147483648, %v2106_v52  ;;  %v2115_v23 = vsel %vm2113_vm14, %v2114_v8, %v2106_v52  ;;  %v2223_v1 = vsel %vm2221_vm15, %v2222_v63, %v2220_v13  ;;  %v2430_v59 = vshrl.u32 %v2429_v17, 23 }
 0x3d1   :  { %v2224_v12 = vclz %v2223_v1  ;;  %vm2306_vm2 = vcmp.lt.s32.totalorder %v5167_v55, 3  ;;  %v2312_v14 = vsel %vm2304_vm13, %v2291_v42, %v5184_v57  ;;  %v2313_v7 = vsel %vm2307_vm1, %v2300_v51, 920167782 }
 0x3d2   :  { %v2112_v41 = vsel %vm2110_vm11, %v2098_v54, %v2111_v33  ;;  %vm2305_vm3 = vcmp.lt.s32.totalorder %v5167_v55, 2  ;;  %v2314_v61 = vsel %vm2306_vm2, %v2297_v25, %v2313_v7  ;;  %v2316_v53 = vsel %vm2304_vm13, %v5184_v57, %v2297_v25 }
 0x3d3   :  { %v2116_v44 = vsel %vm2109_vm10, %v2112_v41, %v2115_v23  ;;  %v3848_v31 = vadd.s32 4294967294, %v2224_v12  ;;  %v2317_v17 = vsel %vm2307_vm1, %v2303_v40, 1326507024  ;;  %v2315_v54 = vsel %vm2305_vm3, %v2312_v14, %v2314_v61 }
 0x3d4   :  { %v2117_v0 = vsel %vm2107_vm12, nan, %v2116_v44  ;;  %v2318_v2 = vsel %vm2306_vm2, %v2300_v51, %v2317_v17  ;;  %v2322_v5 = vshrl.u32 %v5163_v20, 16  ;;  %v2345_v56 = vand.u32 65535, %v2315_v54 }
 0x3d5   :  { %3816 = vst.msk [vmem:[%s6397_s7 + $0x20] sm:$0xff] %vm56_vm0, %v2117_v0  ;;  %vm3849_vm4 = vcmp.lt.s32.totalorder %v3848_v31, 0  ;;  %v2319_v3 = vsel %vm2305_vm3, %v2316_v53, %v2318_v2  ;;  %v2346_v21 = vshrl.u32 %v2315_v54, 16  ;;  %v3853_v47 = vadd.s32 4294967169, %v2430_v59  ;;  %v1133_v59 = vpop.f32.mrf.mxu1 }
 0x3d6   :  { %v2227_v37 = vsel %vm3849_vm4, 0, %v3848_v31  ;;  %v2323_v29 = vand.u32 65535, %v2319_v3  ;;  %v2288_v58 = vshrl.u32 %v3939_v11, %v5156_v15  ;;  %v2324_v9 = vshrl.u32 %v2319_v3, 16 }
 0x3d7   :  { %v2228_v52 = vsub.s32 32, %v2227_v37  ;;  %v2232_v8 = vsub.s32 4294967266, %v2227_v37  ;;  %v2229_v32 = vshll.u32 %v2220_v13, %v2227_v37  ;;  %v2348_v33 = vmul.u32 %v2346_v21, %v2321_v39 }
 0x3d8   :  { %v2327_v51 = vmul.u32 %v2323_v29, %v2322_v5  ;;  %v2349_v41 = vmul.u32 %v2345_v56, %v2322_v5  ;;  %v2242_v23 = vsub.s32 4, %v5158_v46  ;;  %v2308_v1 = vsel %vm2304_vm13, %v2288_v58, %v2291_v42 }
 0x3d9   :  { %v2230_v63 = vshrl.u32 %v5161_v43, %v2228_v52  ;;  %v2233_v48 = vadd.s32 127, %v2232_v8  ;;  %v2326_v40 = vmul.u32 %v2324_v9, %v2321_v39  ;;  %v2351_v44 = vshll.u32 %v2348_v33, 16 }
 0x3da   :  { %v2309_v13 = vsel %vm2307_vm1, %v2297_v25, 2102212464  ;;  %v2347_v15 = vmul.u32 %v2345_v56, %v2321_v39  ;;  %vm2120_vm5 = vcmp.lt.s32.totalorder %v4989_v50, 0  ;;  %v2325_v43 = vmul.u32 %v2323_v29, %v2321_v39 }
 0x3db   :  { %v2231_v12 = vor.u32 %v2230_v63, %v2229_v32  ;;  %v2234_v0 = vshll.u32 %v2233_v48, 23  ;;  %v2328_v31 = vmul.u32 %v2324_v9, %v2322_v5  ;;  %v2329_v14 = vshll.u32 %v2326_v40, 16 }
 0x3dc   :  { %v2350_v7 = vmul.u32 %v2346_v21, %v2322_v5  ;;  %vm5231_vm6 = vcmp.le.f32.partialorder %v2118_v6, 0.7853982  ;;  %v2331_v53 = vshll.u32 %v2327_v51, 16  ;;  %v2353_v17 = vshll.u32 %v2349_v41, 16 }
 0x3dd   :  { %v2235_v42 = vor.u32 4788187, %v2234_v0  ;;  %vm2355_vm7 = vc.u32 %v2347_v15, %v2351_v44  ;;  %vm2333_vm8 = vc.u32 %v2325_v43, %v2329_v14  ;;  %v2335_v25 = vadd.s32 %v2329_v14, %v2325_v43 }
 0x3de   :  { %v2356_v54 = vsel %vm2355_vm7, 1, %v3929_v27  ;;  %v2357_v2 = vadd.s32 %v2351_v44, %v2347_v15  ;;  %v2238_v39 = vcvt.s32.f32 %v2231_v12  ;;  %v2334_v3 = vsel %vm2333_vm8, 1, %v3929_v27 }
 0x3df   :  { %v2236_v37 = vand.u32 2147483647, %v2235_v42  ;;  %v2358_v5 = vadd.s32 %v2356_v54, %v2350_v7  ;;  %v2310_v6 = vsel %vm2306_vm2, %v5184_v57, %v2309_v13  ;;  %v2336_v56 = vadd.s32 %v2334_v3, %v2328_v31 }
 0x3e0   :  { %vm2337_vm9 = vc.u32 %v2335_v25, %v2331_v53  ;;  %vm2359_vm10 = vc.u32 %v2357_v2, %v2353_v17  ;;  %v2436_v29 = vadd.s32 1, %v3853_v47  ;;  %v2330_v32 = vshrl.u32 %v2326_v40, 16 }
 0x3e1   :  { %v2239_v21 = vmul.f32 %v2238_v39, %v2236_v37  ;;  %v2338_v52 = vsel %vm2337_vm9, 1, %v3929_v27  ;;  %v2360_v8 = vsel %vm2359_vm10, 1, %v3929_v27  ;;  %v2352_v9 = vshrl.u32 %v2348_v33, 16 }
 0x3e2   :  { %v2340_v58 = vadd.s32 %v2338_v52, %v2336_v56  ;;  %v2362_v63 = vadd.s32 %v2360_v8, %v2358_v5  ;;  %v2332_v44 = vshrl.u32 %v2327_v51, 16  ;;  %v2433_v12 = vand.u32 8388607, %v2426_v30  ;;  %v1139_v51 = vpop.f32.mrf.mxu1 }
 0x3e3   :  { %v2240_v48 = vxor.u32 2147483648, %v2239_v21  ;;  %vm2437_vm11 = vcmp.gt.s32.totalorder %v2436_v29, 0  ;;  %v2354_v0 = vshrl.u32 %v2349_v41, 16  ;;  %v2243_v47 = vsel %vm2120_vm5, %v2242_v23, %v5158_v46 }
 0x3e4   :  { %v2341_v57 = vadd.s32 %v2340_v58, %v2330_v32  ;;  %v2363_v13 = vadd.s32 %v2362_v63, %v2352_v9  ;;  %v2438_v15 = vsel %vm2437_vm11, %v2436_v29, 0  ;;  %v2311_v33 = vsel %vm2305_vm3, %v2308_v1, %v2310_v6  ;;  %v1234_v9 = vpop.f32.mrf.mxu2 }
 0x3e5   :  { %v2241_v43 = vsel %vm2120_vm5, %v2240_v48, %v2239_v21  ;;  %v2440_v40 = vand.u32 31, %v2438_v15  ;;  %v5258_v14 = vadd.s32 %v2357_v2, %v2353_v17  ;;  %v1134_v46 = vadd.f32 %v1133_v59, %v5151_v35 }
 0x3e6   :  { %v5254_v31 = vsel %vm5231_vm6, %v4989_v50, %v2241_v43  ;;  %v5256_v41 = vadd.s32 %v2341_v57, %v2332_v44  ;;  %v2364_v7 = vadd.s32 %v2363_v13, %v2354_v0  ;;  %v5266_v55 = vadd.f32 %v1139_v51, %v5154_v62 }
 0x3e7   :  { %v2246_v42 = vmul.f32 %v5254_v31, %v5254_v31  ;;  %v5262_v53 = vsub.s32 32, %v2440_v40  ;;  %v2245_v23 = vsel %vm5231_vm6, 0, %v2243_v47  ;;  %v2365_v1 = vmul.u32 %v5163_v20, %v2311_v33 }
 0x3e8   :  { %vm2367_vm12 = vc.u32 %v5256_v41, %v5258_v14  ;;  %v2368_v17 = vadd.s32 1, %v2364_v7  ;;  %v2434_v2 = vor.u32 8388608, %v2433_v12  ;;  %v5273_v37 = vshrl.u32 %v2438_v15, 5 }
 0x3e9   :  { %v2247_v25 = vmul.f32 -0.001358992, %v2246_v42  ;;  %v2254_v54 = vmul.f32 -0.00019511016, %v2246_v42  ;;  %v2446_v35 = vshll.u32 %v3940_v38, %v2440_v40  ;;  %v2447_v62 = vshrl.u32 %v3941_v28, %v5262_v53 }
 0x3ea   :  { %v2369_v39 = vsel %vm2367_vm12, %v2368_v17, %v2364_v7  ;;  %v2450_v59 = vshrl.u32 %v3942_v19, %v5262_v53  ;;  %v2449_v5 = vshll.u32 %v3941_v28, %v2440_v40  ;;  %v2444_v6 = vshrl.u32 %v3940_v38, %v5262_v53 }
 0x3eb   :  { %v2248_v61 = vadd.f32 0.041655596, %v2247_v25  ;;  %v2255_v20 = vadd.f32 0.008332121, %v2254_v54  ;;  %v2370_v3 = vadd.s32 %v2369_v39, %v2365_v1  ;;  %v2452_v56 = vshll.u32 %v3942_v19, %v2440_v40 }
 0x3ec   :  { %v2453_v21 = vshrl.u32 %v6407_v10, %v5262_v53  ;;  %v2455_v52 = vshll.u32 %v6407_v10, %v2440_v40  ;;  %v2456_v58 = vshrl.u32 %v6408_v34, %v5262_v53  ;;  %v2443_v63 = vshll.u32 %v3939_v11, %v2440_v40 }
 0x3ed   :  { %v2249_v8 = vmul.f32 %v2248_v61, %v2246_v42  ;;  %v2256_v29 = vmul.f32 %v2255_v20, %v2246_v42  ;;  %v2371_v32 = vadd.s32 536870912, %v2370_v3  ;;  %v5290_v48 = vor.u32 %v2447_v62, %v2446_v35 }
 0x3ee   :  { %v2451_v44 = vor.u32 %v2450_v59, %v2449_v5  ;;  %v2454_v12 = vor.u32 %v2453_v21, %v2452_v56  ;;  %v2457_v15 = vor.u32 %v2456_v58, %v2455_v52  ;;  %v2262_v43 = vand.u32 3, %v2245_v23  ;;  %v1317_v52 = vpop.f32.mrf.mxu3 }
 0x3ef   :  { %v2250_v57 = vadd.f32 -0.4999988, %v2249_v8  ;;  %v2257_v0 = vadd.f32 -0.16666654, %v2256_v29  ;;  %v5292_v13 = vshrl.u32 %v2371_v32, 30  ;;  %v5294_v47 = vor.u32 %v2444_v6, %v2443_v63 }
 0x3f0   :  { %v5296_v33 = vshll.u32 %v2434_v2, 8  ;;  %v1235_v51 = vadd.f32 %v1234_v9, %v1134_v46  ;;  %vm2461_vm14 = vcmp.lt.s32.totalorder %v5273_v37, 4  ;;  %vm2261_vm15 = vweird.f32 %v4989_v50 }
 0x3f1   :  { %v2251_v7 = vmul.f32 %v2250_v57, %v2246_v42  ;;  %v2258_v1 = vmul.f32 %v2257_v0, %v2246_v42  ;;  %v2373_v17 = vshll.u32 %v5292_v13, 30  ;;  %vm2458_vm13 = vcmp.lt.s32.totalorder %v5273_v37, 1 }
 0x3f2   :  { %vm2460_vm1 = vcmp.lt.s32.totalorder %v5273_v37, 3  ;;  %v2467_v40 = vsel %vm2461_vm14, %v2454_v12, 920167782  ;;  %v2471_v23 = vsel %vm2461_vm14, %v2457_v15, 1326507024  ;;  %v2470_v42 = vsel %vm2458_vm13, %v5290_v48, %v2451_v44 }
 0x3f3   :  { %v2252_v25 = vadd.f32 1.0, %v2251_v7  ;;  %v2259_v46 = vadd.f32 1.0, %v2258_v1  ;;  %v2374_v54 = vsub.s32 %v2370_v3, %v2373_v17  ;;  %vm2459_vm2 = vcmp.lt.s32.totalorder %v5273_v37, 2 }
 0x3f4   :  { %v2466_v2 = vsel %vm2458_vm13, %v5294_v47, %v5290_v48  ;;  %v2468_v39 = vsel %vm2460_vm1, %v2451_v44, %v2467_v40  ;;  %v2472_v35 = vsel %vm2460_vm1, %v2454_v12, %v2471_v23  ;;  %vm2263_vm4 = vcmp.lt.s32.totalorder %v2262_v43, 2 }
 0x3f5   :  { %v2260_v62 = vmul.f32 %v2259_v46, %v5254_v31  ;;  %v2268_v59 = vxor.u32 2147483648, %v2252_v25  ;;  %vm2375_vm3 = vcmp.lt.s32.totalorder %v2374_v54, 0  ;;  %v2376_v61 = vsub.s32 0, %v2374_v54 }
 0x3f6   :  { %vm2264_vm5 = vcmp.eq.s32.totalorder %v2262_v43, 0  ;;  %v2473_v20 = vsel %vm2459_vm2, %v2470_v42, %v2472_v35  ;;  %v2476_v3 = vshrl.u32 %v5296_v33, 16  ;;  %v2469_v56 = vsel %vm2459_vm2, %v2466_v2, %v2468_v39 }
 0x3f7   :  { %v2265_v5 = vxor.u32 2147483648, %v2260_v62  ;;  %v2377_v6 = vsel %vm2375_vm3, %v2376_v61, %v2374_v54  ;;  %v2477_v21 = vand.u32 65535, %v2473_v20  ;;  %vm2267_vm6 = vcmp.eq.s32.totalorder %v2262_v43, 2 }
 0x3f8   :  { %v2378_v8 = vclz %v2377_v6  ;;  %v2475_v31 = vand.u32 65535, %v5296_v33  ;;  %v5326_v29 = vadd.f32 %v1317_v52, %v1235_v51  ;;  %v2269_v58 = vsel %vm2267_vm6, %v2268_v59, %v2260_v62 }
 0x3f9   :  { %v2266_v32 = vsel %vm2264_vm5, %v2252_v25, %v2265_v5  ;;  %v2478_v9 = vshrl.u32 %v2473_v20, 16  ;;  %v2481_v63 = vmul.u32 %v2477_v21, %v2476_v3  ;;  %v2499_v0 = vand.u32 65535, %v2469_v56 }
 0x3fa   :  { %v2270_v12 = vsel %vm2263_vm4, %v2266_v32, %v2269_v58  ;;  %v3851_v57 = vadd.s32 4294967294, %v2378_v8  ;;  %v2500_v15 = vshrl.u32 %v2469_v56, 16  ;;  %v2366_v1 = vadd.s32 %v5258_v14, %v5256_v41 }
 0x3fb   :  { %v2271_v7 = vsel %vm2261_vm15, nan, %v2270_v12  ;;  %v2442_v17 = vshrl.u32 %v3939_v11, %v5262_v53  ;;  %v2480_v51 = vmul.u32 %v2478_v9, %v2475_v31  ;;  %v2463_v43 = vsel %vm2461_vm14, %v2451_v44, 2102212464  ;;  %v1035_v12 = vpop.f32.mrf.mxu0 }
 0x3fc   :  { %3817 = vst.msk [vmem:[%s6397_s7 + $0x28] sm:$0xff] %vm56_vm0, %v2271_v7  ;;  %vm3852_vm7 = vcmp.lt.s32.totalorder %v3851_v57, 0  ;;  %v2479_v40 = vmul.u32 %v2477_v21, %v2475_v31  ;;  %v2502_v23 = vmul.u32 %v2500_v15, %v2475_v31  ;;  %v2482_v25 = vmul.u32 %v2478_v9, %v2476_v3 }
 0x3fd   :  { %v2381_v50 = vsel %vm3852_vm7, 0, %v3851_v57  ;;  %v2483_v46 = vshll.u32 %v2480_v51, 16  ;;  %v2485_v42 = vshll.u32 %v2481_v63, 16  ;;  %v2484_v2 = vshrl.u32 %v2480_v51, 16 }
 0x3fe   :  { %v2382_v41 = vsub.s32 32, %v2381_v50  ;;  %v2386_v14 = vsub.s32 4294967266, %v2381_v50  ;;  %v2501_v53 = vmul.u32 %v2499_v0, %v2475_v31  ;;  %v2503_v35 = vmul.u32 %v2499_v0, %v2476_v3 }
 0x3ff   :  { %vm2487_vm8 = vc.u32 %v2479_v40, %v2483_v46  ;;  %v2489_v39 = vadd.s32 %v2483_v46, %v2479_v40  ;;  %v2505_v62 = vshll.u32 %v2502_v23, 16  ;;  %v2383_v59 = vshll.u32 %v2374_v54, %v2381_v50 }
 0x400   :  { %v2384_v61 = vshrl.u32 %v2366_v1, %v2382_v41  ;;  %v2387_v20 = vadd.s32 127, %v2386_v14  ;;  %v2488_v5 = vsel %vm2487_vm8, 1, %v3929_v27  ;;  %v2504_v6 = vmul.u32 %v2500_v15, %v2476_v3  ;;  %v1238_v15 = vpop.f32.mrf.mxu2 }
 0x401   :  { %v2490_v44 = vadd.s32 %v2488_v5, %v2482_v25  ;;  %vm2491_vm9 = vc.u32 %v2489_v39, %v2485_v42  ;;  %vm2509_vm10 = vc.u32 %v2501_v53, %v2505_v62  ;;  %v2507_v32 = vshll.u32 %v2503_v35, 16 }
 0x402   :  { %v2385_v56 = vor.u32 %v2384_v61, %v2383_v59  ;;  %v2388_v21 = vshll.u32 %v2387_v20, 23  ;;  %v2492_v52 = vsel %vm2491_vm9, 1, %v3929_v27  ;;  %v2510_v8 = vsel %vm2509_vm10, 1, %v3929_v27  ;;  %v1321_v59 = vpop.f32.mrf.mxu3 }
 0x403   :  { %v2494_v31 = vadd.s32 %v2492_v52, %v2490_v44  ;;  %v2511_v58 = vadd.s32 %v2505_v62, %v2501_v53  ;;  %v2512_v9 = vadd.s32 %v2510_v8, %v2504_v6  ;;  %v2396_v57 = vsub.s32 4, %v5292_v13 }
 0x404   :  { %v2389_v54 = vor.u32 4788187, %v2388_v21  ;;  %v2462_v0 = vsel %vm2458_vm13, %v2442_v17, %v5294_v47  ;;  %v2464_v3 = vsel %vm2460_vm1, %v5290_v48, %v2463_v43  ;;  %v2486_v7 = vshrl.u32 %v2481_v63, 16 }
 0x405   :  { %v2495_v1 = vadd.s32 %v2494_v31, %v2484_v2  ;;  %vm2513_vm11 = vc.u32 %v2511_v58, %v2507_v32  ;;  %v2583_v51 = vand.u32 2139095040, %v5326_v29  ;;  %v2392_v50 = vcvt.s32.f32 %v2385_v56  ;;  %v1040_v56 = vpop.f32.mrf.mxu0 }
 0x406   :  { %v2390_v40 = vand.u32 2147483647, %v2389_v54  ;;  %v2506_v25 = vshrl.u32 %v2502_v23, 16  ;;  %v2514_v46 = vsel %vm2513_vm11, 1, %v3929_v27  ;;  %v2580_v41 = vand.u32 2147483647, %v5326_v29 }
 0x407   :  { %v2516_v42 = vadd.s32 %v2514_v46, %v2512_v9  ;;  %v2584_v14 = vshrl.u32 %v2583_v51, 23  ;;  %v1239_v47 = vadd.f32 %v1238_v15, %v5266_v55  ;;  %v2496_v53 = vadd.s32 %v2495_v1, %v2486_v7 }
 0x408   :  { %v2393_v17 = vmul.f32 %v2392_v50, %v2390_v40  ;;  %vm2274_vm12 = vcmp.lt.s32.totalorder %v5123_v36, 0  ;;  %v2508_v48 = vshrl.u32 %v2503_v35, 16  ;;  %v2465_v23 = vsel %vm2459_vm2, %v2462_v0, %v2464_v3  ;;  %v1145_v0 = vpop.f32.mrf.mxu1 }
 0x409   :  { %v2517_v63 = vadd.s32 %v2516_v42, %v2506_v25  ;;  %v3856_v43 = vadd.s32 4294967169, %v2584_v14  ;;  %v2397_v39 = vsel %vm2274_vm12, %v2396_v57, %v5292_v13  ;;  %v2515_v62 = vadd.s32 %v2511_v58, %v2507_v32 }
 0x40a   :  { %v2394_v2 = vxor.u32 2147483648, %v2393_v17  ;;  %v2587_v20 = vand.u32 8388607, %v2580_v41  ;;  %v5361_v5 = vadd.f32 %v1321_v59, %v1239_v47  ;;  %vm5365_vm14 = vcmp.le.f32.partialorder %v2272_v60, 0.7853982 }
 0x40b   :  { %v2518_v61 = vadd.s32 %v2517_v63, %v2508_v48  ;;  %v2590_v55 = vadd.s32 1, %v3856_v43  ;;  %vm2521_vm15 = vc.u32 %v2496_v53, %v2515_v62  ;;  %v1036_v37 = vadd.f32 %v1035_v12, %v4489_v22 }
 0x40c   :  { %v2395_v44 = vsel %vm2274_vm12, %v2394_v2, %v2393_v17  ;;  %v2399_v21 = vsel %vm5365_vm14, 0, %v2397_v39  ;;  %v2519_v52 = vmul.u32 %v5296_v33, %v2465_v23  ;;  %v2588_v32 = vor.u32 8388608, %v2587_v20 }
 0x40d   :  { %v5373_v13 = vsel %vm5365_vm14, %v5123_v36, %v2395_v44  ;;  %v2522_v6 = vadd.s32 1, %v2518_v61  ;;  %vm2591_vm13 = vcmp.gt.s32.totalorder %v2590_v55, 0  ;;  %v2734_v58 = vand.u32 2147483647, %v5361_v5 }
 0x40e   :  { %v2400_v60 = vmul.f32 %v5373_v13, %v5373_v13  ;;  %v2592_v8 = vsel %vm2591_vm13, %v2590_v55, 0  ;;  %v2737_v57 = vand.u32 2139095040, %v5361_v5  ;;  %v5383_v3 = vadd.f32 %v1040_v56, %v4494_v26 }
 0x40f   :  { %v2523_v31 = vsel %vm2521_vm15, %v2522_v6, %v2518_v61  ;;  %v2594_v22 = vand.u32 31, %v2592_v8  ;;  %v5387_v51 = vadd.f32 %v1145_v0, %v1036_v37  ;;  %v5389_v40 = vand.u32 3, %v2399_v21 }
 0x410   :  { %v2401_v9 = vmul.f32 -0.001358992, %v2400_v60  ;;  %v2408_v12 = vmul.f32 -0.00019511016, %v2400_v60  ;;  %v2524_v54 = vadd.s32 %v2523_v31, %v2519_v52  ;;  %v5391_v50 = vadd.s32 %v2515_v62, %v2496_v53 }
 0x411   :  { %v5385_v15 = vsub.s32 32, %v2594_v22  ;;  %v5393_v25 = vshll.u32 %v2588_v32, 8  ;;  %v5397_v46 = vand.u32 8388607, %v2734_v58  ;;  %v2738_v47 = vshrl.u32 %v2737_v57, 23 }
 0x412   :  { %v2402_v7 = vadd.f32 0.041655596, %v2401_v9  ;;  %v2409_v1 = vadd.f32 0.008332121, %v2408_v12  ;;  %v2525_v33 = vadd.s32 536870912, %v2524_v54  ;;  %v5401_v17 = vshrl.u32 %v2592_v8, 5 }
 0x413   :  { %v2598_v48 = vshrl.u32 %v3940_v38, %v5385_v15  ;;  %v2601_v53 = vshrl.u32 %v3941_v28, %v5385_v15  ;;  %v2607_v63 = vshrl.u32 %v6407_v10, %v5385_v15  ;;  %v2597_v23 = vshll.u32 %v3939_v11, %v2594_v22 }
 0x414   :  { %v2403_v42 = vmul.f32 %v2402_v7, %v2400_v60  ;;  %v2410_v26 = vmul.f32 %v2409_v1, %v2400_v60  ;;  %v5399_v14 = vshrl.u32 %v2525_v33, 30  ;;  %vm2418_vm1 = vcmp.eq.s32.totalorder %v5389_v40, 0 }
 0x415   :  { %vm2421_vm2 = vcmp.eq.s32.totalorder %v5389_v40, 2  ;;  %v2600_v62 = vshll.u32 %v3940_v38, %v2594_v22  ;;  %v2604_v59 = vshrl.u32 %v3942_v19, %v5385_v15  ;;  %v2606_v61 = vshll.u32 %v3942_v19, %v2594_v22 }
 0x416   :  { %v2404_v43 = vadd.f32 -0.4999988, %v2403_v42  ;;  %v2411_v2 = vadd.f32 -0.16666654, %v2410_v26  ;;  %v2527_v39 = vshll.u32 %v5399_v14, 30  ;;  %v2610_v20 = vshrl.u32 %v6408_v34, %v5385_v15 }
 0x417   :  { %vm2417_vm3 = vcmp.lt.s32.totalorder %v5389_v40, 2  ;;  %v2603_v37 = vshll.u32 %v3941_v28, %v2594_v22  ;;  %vm2415_vm4 = vweird.f32 %v5123_v36  ;;  %v5422_v6 = vor.u32 %v2598_v48, %v2597_v23 }
 0x418   :  { %v2405_v55 = vmul.f32 %v2404_v43, %v2400_v60  ;;  %v2412_v35 = vmul.f32 %v2411_v2, %v2400_v60  ;;  %v2528_v44 = vsub.s32 %v2524_v54, %v2527_v39  ;;  %v5424_v56 = vor.u32 %v2601_v53, %v2600_v62 }
 0x419   :  { %v2608_v21 = vor.u32 %v2607_v63, %v2606_v61  ;;  %v2609_v52 = vshll.u32 %v6407_v10, %v2594_v22  ;;  %vm2428_vm6 = vcmp.lt.s32.totalorder %v5148_v4, 0  ;;  %v2605_v60 = vor.u32 %v2604_v59, %v2603_v37 }
 0x41a   :  { %v2406_v8 = vadd.f32 1.0, %v2405_v55  ;;  %v2413_v31 = vadd.f32 1.0, %v2412_v35  ;;  %vm2529_vm5 = vcmp.lt.s32.totalorder %v2528_v44, 0  ;;  %v2530_v32 = vsub.s32 0, %v2528_v44 }
 0x41b   :  { %v2611_v9 = vor.u32 %v2610_v20, %v2609_v52  ;;  %v2629_v12 = vand.u32 65535, %v5393_v25  ;;  %v2630_v54 = vshrl.u32 %v5393_v25, 16  ;;  %vm2612_vm7 = vcmp.lt.s32.totalorder %v5401_v17, 1 }
 0x41c   :  { %v2414_v57 = vmul.f32 %v2413_v31, %v5373_v13  ;;  %v2422_v0 = vxor.u32 2147483648, %v2406_v8  ;;  %v2531_v7 = vsel %vm2529_vm5, %v2530_v32, %v2528_v44  ;;  %v2550_v22 = vsub.s32 4, %v5399_v14 }
 0x41d   :  { %v2532_v1 = vclz %v2531_v7  ;;  %vm2615_vm8 = vcmp.lt.s32.totalorder %v5401_v17, 4  ;;  %v2620_v33 = vsel %vm2612_vm7, %v5422_v6, %v5424_v56  ;;  %vm2613_vm9 = vcmp.lt.s32.totalorder %v5401_v17, 2 }
 0x41e   :  { %v2419_v42 = vxor.u32 2147483648, %v2414_v57  ;;  %vm2614_vm10 = vcmp.lt.s32.totalorder %v5401_v17, 3  ;;  %v2621_v13 = vsel %vm2615_vm8, %v2608_v21, 920167782  ;;  %v2624_v53 = vsel %vm2612_vm7, %v5424_v56, %v2605_v60 }
 0x41f   :  { %v3854_v26 = vadd.s32 4294967294, %v2532_v1  ;;  %v2622_v48 = vsel %vm2614_vm10, %v2605_v60, %v2621_v13  ;;  %v2625_v63 = vsel %vm2615_vm8, %v2611_v9, 1326507024  ;;  %v2423_v2 = vsel %vm2421_vm2, %v2422_v0, %v2414_v57 }
 0x420   :  { %v2420_v43 = vsel %vm2418_vm1, %v2406_v8, %v2419_v42  ;;  %v2623_v39 = vsel %vm2613_vm9, %v2620_v33, %v2622_v48  ;;  %v2626_v23 = vsel %vm2614_vm10, %v2608_v21, %v2625_v63  ;;  %v3859_v61 = vadd.s32 4294967169, %v2738_v47 }
 0x421   :  { %v2424_v62 = vsel %vm2417_vm3, %v2420_v43, %v2423_v2  ;;  %vm3855_vm11 = vcmp.lt.s32.totalorder %v3854_v26, 0  ;;  %v2627_v59 = vsel %vm2613_vm9, %v2624_v53, %v2626_v23  ;;  %v2653_v40 = vand.u32 65535, %v2623_v39 }
 0x422   :  { %v2425_v20 = vsel %vm2415_vm4, nan, %v2424_v62  ;;  %v2535_v55 = vsel %vm3855_vm11, 0, %v3854_v26  ;;  %v2631_v35 = vand.u32 65535, %v2627_v59  ;;  %v2632_v37 = vshrl.u32 %v2627_v59, 16 }
 0x423   :  { %3818 = vst.msk [vmem:[%s6397_s7 + $0x30] sm:$0xff] %vm56_vm0, %v2425_v20  ;;  %v2536_v21 = vsub.s32 32, %v2535_v55  ;;  %v2540_v52 = vsub.s32 4294967266, %v2535_v55  ;;  %v2654_v8 = vshrl.u32 %v2623_v39, 16  ;;  %v5470_v31 = vsel %vm2428_vm6, %v2550_v22, %v5399_v14 }
 0x424   :  { %v2596_v36 = vshrl.u32 %v3939_v11, %v5385_v15  ;;  %v2634_v47 = vmul.u32 %v2632_v37, %v2629_v12  ;;  %v2635_v32 = vmul.u32 %v2631_v35, %v2630_v54  ;;  %v2537_v9 = vshll.u32 %v2528_v44, %v2535_v55 }
 0x425   :  { %v2538_v57 = vshrl.u32 %v5391_v50, %v2536_v21  ;;  %v2541_v0 = vadd.s32 127, %v2540_v52  ;;  %v2656_v7 = vmul.u32 %v2654_v8, %v2629_v12  ;;  %v2617_v1 = vsel %vm2615_vm8, %v2605_v60, 2102212464 }
 0x426   :  { %v2633_v33 = vmul.u32 %v2631_v35, %v2629_v12  ;;  %v2636_v42 = vmul.u32 %v2632_v37, %v2630_v54  ;;  %v2637_v13 = vshll.u32 %v2634_v47, 16  ;;  %v2655_v14 = vmul.u32 %v2653_v40, %v2629_v12 }
 0x427   :  { %v2539_v26 = vor.u32 %v2538_v57, %v2537_v9  ;;  %v2542_v48 = vshll.u32 %v2541_v0, 23  ;;  %v2657_v22 = vmul.u32 %v2653_v40, %v2630_v54  ;;  %v2639_v53 = vshll.u32 %v2635_v32, 16 }
 0x428   :  { %vm2641_vm12 = vc.u32 %v2633_v33, %v2637_v13  ;;  %v2643_v15 = vadd.s32 %v2637_v13, %v2633_v33  ;;  %v2659_v63 = vshll.u32 %v2656_v7, 16  ;;  %v2658_v2 = vmul.u32 %v2654_v8, %v2630_v54 }
 0x429   :  { %v2543_v43 = vor.u32 4788187, %v2542_v48  ;;  %v2546_v44 = vcvt.s32.f32 %v2539_v26  ;;  %v2642_v50 = vsel %vm2641_vm12, 1, %v3929_v27  ;;  %v2661_v23 = vshll.u32 %v2657_v22, 16 }
 0x42a   :  { %v2644_v39 = vadd.s32 %v2642_v50, %v2636_v42  ;;  %vm2645_vm14 = vc.u32 %v2643_v15, %v2639_v53  ;;  %vm2663_vm15 = vc.u32 %v2655_v14, %v2659_v63  ;;  %v2665_v12 = vadd.s32 %v2659_v63, %v2655_v14 }
 0x42b   :  { %v2544_v60 = vand.u32 2147483647, %v2543_v43  ;;  %v2646_v62 = vsel %vm2645_vm14, 1, %v3929_v27  ;;  %v2664_v59 = vsel %vm2663_vm15, 1, %v3929_v27  ;;  %v2638_v20 = vshrl.u32 %v2634_v47, 16 }
 0x42c   :  { %v2648_v55 = vadd.s32 %v2646_v62, %v2644_v39  ;;  %v2666_v35 = vadd.s32 %v2664_v59, %v2658_v2  ;;  %v2744_v37 = vadd.s32 1, %v3859_v61  ;;  %v2616_v52 = vsel %vm2612_vm7, %v2596_v36, %v5422_v6 }
 0x42d   :  { %v2547_v21 = vmul.f32 %v2546_v44, %v2544_v60  ;;  %v2618_v54 = vsel %vm2614_vm10, %v5424_v56, %v2617_v1  ;;  %vm2667_vm13 = vc.u32 %v2665_v12, %v2661_v23  ;;  %v2640_v40 = vshrl.u32 %v2635_v32, 16 }
 0x42e   :  { %v2649_v8 = vadd.s32 %v2648_v55, %v2638_v20  ;;  %v2668_v9 = vsel %vm2667_vm13, 1, %v3929_v27  ;;  %vm2745_vm1 = vcmp.gt.s32.totalorder %v2744_v37, 0  ;;  %v2660_v47 = vshrl.u32 %v2656_v7, 16 }
 0x42f   :  { %v2548_v57 = vxor.u32 2147483648, %v2547_v21  ;;  %v2670_v0 = vadd.s32 %v2668_v9, %v2666_v35  ;;  %v2746_v33 = vsel %vm2745_vm1, %v2744_v37, 0  ;;  %vm5489_vm2 = vcmp.le.f32.partialorder %v2426_v30, 0.7853982 }
 0x430   :  { %v2619_v6 = vsel %vm2613_vm9, %v2616_v52, %v2618_v54  ;;  %v5495_v56 = vadd.s32 %v2649_v8, %v2640_v40  ;;  %v2748_v36 = vand.u32 31, %v2746_v33  ;;  %v2662_v1 = vshrl.u32 %v2657_v22, 16 }
 0x431   :  { %v2549_v32 = vsel %vm2428_vm6, %v2548_v57, %v2547_v21  ;;  %v2671_v42 = vadd.s32 %v2670_v0, %v2660_v47  ;;  %v2742_v7 = vor.u32 8388608, %v5397_v46  ;;  %v2553_v17 = vsel %vm5489_vm2, 0, %v5470_v31  ;;  %v1151_v21 = vpop.f32.mrf.mxu1 }
 0x432   :  { %v5503_v30 = vsel %vm5489_vm2, %v5148_v4, %v2549_v32  ;;  %v5508_v13 = vadd.s32 %v2665_v12, %v2661_v23  ;;  %v5510_v26 = vsub.s32 32, %v2748_v36  ;;  %v2673_v22 = vmul.u32 %v5393_v25, %v2619_v6 }
 0x433   :  { %v2554_v48 = vmul.f32 %v5503_v30, %v5503_v30  ;;  %v2672_v14 = vadd.s32 %v2671_v42, %v2662_v1  ;;  %v5515_v46 = vshrl.u32 %v2746_v33, 5  ;;  %v2751_v53 = vshll.u32 %v3939_v11, %v2748_v36 }
 0x434   :  { %vm2675_vm3 = vc.u32 %v5495_v56, %v5508_v13  ;;  %v2752_v31 = vshrl.u32 %v3940_v38, %v5510_v26  ;;  %v2755_v15 = vshrl.u32 %v3941_v28, %v5510_v26  ;;  %v2758_v50 = vshrl.u32 %v3942_v19, %v5510_v26 }
 0x435   :  { %v2555_v63 = vmul.f32 -0.001358992, %v2554_v48  ;;  %v2562_v43 = vmul.f32 -0.00019511016, %v2554_v48  ;;  %v2676_v44 = vadd.s32 1, %v2672_v14  ;;  %v2754_v25 = vshll.u32 %v3940_v38, %v2748_v36 }
 0x436   :  { %v2757_v2 = vshll.u32 %v3941_v28, %v2748_v36  ;;  %v2760_v39 = vshll.u32 %v3942_v19, %v2748_v36  ;;  %v2761_v23 = vshrl.u32 %v6407_v10, %v5510_v26  ;;  %v5531_v12 = vor.u32 %v2752_v31, %v2751_v53 }
 0x437   :  { %v2556_v60 = vadd.f32 0.041655596, %v2555_v63  ;;  %v2563_v62 = vadd.f32 0.008332121, %v2562_v43  ;;  %v2677_v59 = vsel %vm2675_vm3, %v2676_v44, %v2672_v14  ;;  %v5533_v55 = vor.u32 %v2755_v15, %v2754_v25  ;;  %v1242_v43 = vpop.f32.mrf.mxu2 }
 0x438   :  { %v2678_v20 = vadd.s32 %v2677_v59, %v2673_v22  ;;  %v2762_v35 = vor.u32 %v2761_v23, %v2760_v39  ;;  %v2764_v37 = vshrl.u32 %v6408_v34, %v5510_v26  ;;  %v2759_v40 = vor.u32 %v2758_v50, %v2757_v2 }
 0x439   :  { %v2557_v52 = vmul.f32 %v2556_v60, %v2554_v48  ;;  %v2564_v54 = vmul.f32 %v2563_v62, %v2554_v48  ;;  %v2763_v8 = vshll.u32 %v6407_v10, %v2748_v36  ;;  %v2570_v9 = vand.u32 3, %v2553_v17 }
 0x43a   :  { %v2679_v57 = vadd.s32 536870912, %v2678_v20  ;;  %vm2766_vm4 = vcmp.lt.s32.totalorder %v5515_v46, 1  ;;  %v5540_v47 = vadd.f32 %v1151_v21, %v5383_v3  ;;  %vm2769_vm5 = vcmp.lt.s32.totalorder %v5515_v46, 4 }
 0x43b   :  { %v2558_v0 = vadd.f32 -0.4999988, %v2557_v52  ;;  %v2565_v33 = vadd.f32 -0.16666654, %v2564_v54  ;;  %v2765_v61 = vor.u32 %v2764_v37, %v2763_v8  ;;  %vm2768_vm6 = vcmp.lt.s32.totalorder %v5515_v46, 3 }
 0x43c   :  { %v5543_v6 = vshrl.u32 %v2679_v57, 30  ;;  %v2774_v36 = vsel %vm2766_vm4, %v5531_v12, %v5533_v55  ;;  %v2775_v32 = vsel %vm2769_vm5, %v2762_v35, 920167782  ;;  %v5554_v17 = vshll.u32 %v2742_v7, 8 }
 0x43d   :  { %v2559_v1 = vmul.f32 %v2558_v0, %v2554_v48  ;;  %v2566_v3 = vmul.f32 %v2565_v33, %v2554_v48  ;;  %v2776_v42 = vsel %vm2768_vm6, %v2759_v40, %v2775_v32  ;;  %vm2569_vm7 = vweird.f32 %v5148_v4 }
 0x43e   :  { %vm2571_vm8 = vcmp.lt.s32.totalorder %v2570_v9, 2  ;;  %v2681_v14 = vshll.u32 %v5543_v6, 30  ;;  %vm2767_vm9 = vcmp.lt.s32.totalorder %v5515_v46, 2  ;;  %v2778_v22 = vsel %vm2766_vm4, %v5533_v55, %v2759_v40 }
 0x43f   :  { %v2560_v53 = vadd.f32 1.0, %v2559_v1  ;;  %v2567_v31 = vadd.f32 1.0, %v2566_v3  ;;  %v2777_v48 = vsel %vm2767_vm9, %v2774_v36, %v2776_v42  ;;  %v2779_v7 = vsel %vm2769_vm5, %v2765_v61, 1326507024 }
 0x440   :  { %vm2572_vm10 = vcmp.eq.s32.totalorder %v2570_v9, 0  ;;  %vm2575_vm11 = vcmp.eq.s32.totalorder %v2570_v9, 2  ;;  %v5566_v15 = vsub.s32 %v2678_v20, %v2681_v14  ;;  %v2780_v63 = vsel %vm2768_vm6, %v2762_v35, %v2779_v7  ;;  %v1325_v14 = vpop.f32.mrf.mxu3 }
 0x441   :  { %v2568_v44 = vmul.f32 %v2567_v31, %v5503_v30  ;;  %v2576_v50 = vxor.u32 2147483648, %v2560_v53  ;;  %v2781_v25 = vsel %vm2767_vm9, %v2778_v22, %v2780_v63  ;;  %v2783_v2 = vand.u32 65535, %v5554_v17 }
 0x442   :  { %vm2683_vm12 = vcmp.lt.s32.totalorder %v5566_v15, 0  ;;  %v2684_v39 = vsub.s32 0, %v5566_v15  ;;  %v2785_v23 = vand.u32 65535, %v2781_v25  ;;  %v2808_v60 = vshrl.u32 %v2777_v48, 16 }
 0x443   :  { %v2573_v62 = vxor.u32 2147483648, %v2568_v44  ;;  %v2784_v59 = vshrl.u32 %v5554_v17, 16  ;;  %v2786_v20 = vshrl.u32 %v2781_v25, 16  ;;  %v1243_v35 = vadd.f32 %v1242_v43, %v5387_v51 }
 0x444   :  { %v2674_v30 = vadd.s32 %v5508_v13, %v5495_v56  ;;  %v2685_v37 = vsel %vm2683_vm12, %v2684_v39, %v5566_v15  ;;  %v2750_v21 = vshrl.u32 %v3939_v11, %v5510_v26  ;;  %v2807_v52 = vand.u32 65535, %v2777_v48 }
 0x445   :  { %v2574_v54 = vsel %vm2572_vm10, %v2560_v53, %v2573_v62  ;;  %v2577_v8 = vsel %vm2575_vm11, %v2576_v50, %v2568_v44  ;;  %v2686_v57 = vclz %v2685_v37  ;;  %v2788_v0 = vmul.u32 %v2786_v20, %v2783_v2 }
 0x446   :  { %v2578_v33 = vsel %vm2571_vm8, %v2574_v54, %v2577_v8  ;;  %v2771_v51 = vsel %vm2769_vm5, %v2759_v40, 2102212464  ;;  %v2789_v61 = vmul.u32 %v2785_v23, %v2784_v59  ;;  %v2810_v36 = vmul.u32 %v2808_v60, %v2783_v2 }
 0x447   :  { %v2579_v56 = vsel %vm2569_vm7, nan, %v2578_v33  ;;  %v3857_v13 = vadd.s32 4294967294, %v2686_v57  ;;  %v2787_v32 = vmul.u32 %v2785_v23, %v2783_v2  ;;  %v2791_v26 = vshll.u32 %v2788_v0, 16 }
 0x448   :  { %3819 = vst.msk [vmem:[%s6397_s7 + $0x38] sm:$0xff] %vm56_vm0, %v2579_v56  ;;  %v2790_v1 = vmul.u32 %v2786_v20, %v2784_v59  ;;  %v2792_v3 = vshrl.u32 %v2788_v0, 16  ;;  %v2809_v9 = vmul.u32 %v2807_v52, %v2783_v2  ;;  %v2811_v42 = vmul.u32 %v2807_v52, %v2784_v59  ;;  %v1246_v20 = vpop.f32.mrf.mxu2 }
 0x449   :  { %vm3858_vm14 = vcmp.lt.s32.totalorder %v3857_v13, 0  ;;  %vm2795_vm15 = vc.u32 %v2787_v32, %v2791_v26  ;;  %v2797_v40 = vadd.s32 %v2791_v26, %v2787_v32  ;;  %v2813_v22 = vshll.u32 %v2810_v36, 16 }
 0x44a   :  { %v2689_v53 = vsel %vm3858_vm14, 0, %v3857_v13  ;;  %v2793_v4 = vshll.u32 %v2789_v61, 16  ;;  %v2796_v31 = vsel %vm2795_vm15, 1, %v3929_v27  ;;  %v2812_v48 = vmul.u32 %v2808_v60, %v2784_v59 }
 0x44b   :  { %v2690_v7 = vsub.s32 32, %v2689_v53  ;;  %v2694_v63 = vsub.s32 4294967266, %v2689_v53  ;;  %v2798_v43 = vadd.s32 %v2796_v31, %v2790_v1  ;;  %v2815_v44 = vshll.u32 %v2811_v42, 16 }
 0x44c   :  { %v2691_v50 = vshll.u32 %v5566_v15, %v2689_v53  ;;  %vm2799_vm13 = vc.u32 %v2797_v40, %v2793_v4  ;;  %vm2817_vm1 = vc.u32 %v2809_v9, %v2813_v22  ;;  %v2819_v25 = vadd.s32 %v2813_v22, %v2809_v9  ;;  %v1329_v9 = vpop.f32.mrf.mxu3 }
 0x44d   :  { %v2692_v2 = vshrl.u32 %v2674_v30, %v2690_v7  ;;  %v2695_v39 = vadd.s32 127, %v2694_v63  ;;  %v2800_v23 = vsel %vm2799_vm13, 1, %v3929_v27  ;;  %v2818_v62 = vsel %vm2817_vm1, 1, %v3929_v27 }
 0x44e   :  { %v2794_v37 = vshrl.u32 %v2789_v61, 16  ;;  %v2802_v52 = vadd.s32 %v2800_v23, %v2798_v43  ;;  %v2820_v54 = vadd.s32 %v2818_v62, %v2812_v48  ;;  %vm2821_vm2 = vc.u32 %v2819_v25, %v2815_v44 }
 0x44f   :  { %v2693_v60 = vor.u32 %v2692_v2, %v2691_v50  ;;  %v2696_v59 = vshll.u32 %v2695_v39, 23  ;;  %v2814_v8 = vshrl.u32 %v2810_v36, 16  ;;  %v2822_v57 = vsel %vm2821_vm2, 1, %v3929_v27 }
 0x450   :  { %v2803_v15 = vadd.s32 %v2802_v52, %v2792_v3  ;;  %v2824_v0 = vadd.s32 %v2822_v57, %v2820_v54  ;;  %v5599_v33 = vadd.f32 %v1325_v14, %v1243_v35  ;;  %v1247_v30 = vadd.f32 %v1246_v20, %v5540_v47  ;;  %v1045_v52 = vpop.f32.mrf.mxu0 }
 0x451   :  { %v2697_v56 = vor.u32 4788187, %v2696_v59  ;;  %v2770_v13 = vsel %vm2766_vm4, %v2750_v21, %v5531_v12  ;;  %v2772_v61 = vsel %vm2768_vm6, %v5533_v55, %v2771_v51  ;;  %v2816_v32 = vshrl.u32 %v2811_v42, 16 }
 0x452   :  { %v2804_v26 = vadd.s32 %v2803_v15, %v2794_v37  ;;  %v2823_v36 = vadd.s32 %v2819_v25, %v2815_v44  ;;  %v2825_v1 = vadd.s32 %v2824_v0, %v2814_v8  ;;  %v2888_v3 = vand.u32 2147483647, %v5599_v33 }
 0x453   :  { %v2698_v35 = vand.u32 2147483647, %v2697_v56  ;;  %v2700_v14 = vcvt.s32.f32 %v2693_v60  ;;  %v2891_v47 = vand.u32 2139095040, %v5599_v33  ;;  %v5610_v40 = vadd.f32 %v1329_v9, %v1247_v30 }
 0x454   :  { %v2773_v12 = vsel %vm2767_vm9, %v2770_v13, %v2772_v61  ;;  %v2826_v21 = vadd.s32 %v2825_v1, %v2816_v32  ;;  %v2704_v55 = vsub.s32 4, %v5543_v6  ;;  %vm2829_vm3 = vc.u32 %v2804_v26, %v2823_v36 }
 0x455   :  { %v2701_v22 = vmul.f32 %v2700_v14, %v2698_v35  ;;  %v2892_v51 = vshrl.u32 %v2891_v47, 23  ;;  %v2895_v53 = vand.u32 8388607, %v2888_v3  ;;  %v3045_v4 = vand.u32 2139095040, %v5610_v40 }
 0x456   :  { %v2830_v42 = vadd.s32 1, %v2826_v21  ;;  %v2827_v48 = vmul.u32 %v5554_v17, %v2773_v12  ;;  %vm5621_vm4 = vcmp.le.f32.partialorder %v2580_v41, 0.7853982  ;;  %vm2582_vm5 = vcmp.lt.s32.totalorder %v5326_v29, 0 }
 0x457   :  { %v2702_v31 = vxor.u32 2147483648, %v2701_v22  ;;  %v3862_v7 = vadd.s32 4294967169, %v2892_v51  ;;  %v2705_v44 = vsel %vm2582_vm5, %v2704_v55, %v5543_v6  ;;  %v2896_v17 = vor.u32 8388608, %v2895_v53 }
 0x458   :  { %v2831_v63 = vsel %vm2829_vm3, %v2830_v42, %v2826_v21  ;;  %v3046_v39 = vshrl.u32 %v3045_v4, 23  ;;  %v2707_v41 = vsel %vm5621_vm4, 0, %v2705_v44  ;;  %v3042_v37 = vand.u32 2147483647, %v5610_v40 }
 0x459   :  { %v2703_v43 = vsel %vm2582_vm5, %v2702_v31, %v2701_v22  ;;  %v2832_v50 = vadd.s32 %v2831_v63, %v2827_v48  ;;  %v2898_v25 = vadd.s32 1, %v3862_v7  ;;  %v5635_v8 = vshll.u32 %v2896_v17, 8 }
 0x45a   :  { %v2706_v2 = vsel %vm5621_vm4, %v5326_v29, %v2703_v43  ;;  %v3865_v57 = vadd.s32 4294967169, %v3046_v39  ;;  %v5637_v30 = vand.u32 3, %v2707_v41  ;;  %v5641_v13 = vadd.f32 %v1045_v52, %v4499_v45 }
 0x45b   :  { %v2708_v23 = vmul.f32 %v2706_v2, %v2706_v2  ;;  %v2833_v62 = vadd.s32 536870912, %v2832_v50  ;;  %vm2899_vm6 = vcmp.gt.s32.totalorder %v2898_v25, 0  ;;  %v2828_v61 = vadd.s32 %v2823_v36, %v2804_v26 }
 0x45c   :  { %v2900_v20 = vsel %vm2899_vm6, %v2898_v25, 0  ;;  %v5647_v14 = vand.u32 8388607, %v3042_v37  ;;  %v5652_v12 = vand.u32 65535, %v5635_v8  ;;  %v5655_v21 = vshrl.u32 %v5635_v8, 16 }
 0x45d   :  { %v2709_v54 = vmul.f32 -0.001358992, %v2708_v23  ;;  %v2716_v6 = vmul.f32 -0.00019511016, %v2708_v23  ;;  %v5633_v60 = vshrl.u32 %v2833_v62, 30  ;;  %v2902_v59 = vand.u32 31, %v2900_v20 }
 0x45e   :  { %v5649_v47 = vshrl.u32 %v2900_v20, 5  ;;  %v5657_v45 = vadd.s32 1, %v3865_v57  ;;  %vm2729_vm7 = vcmp.eq.s32.totalorder %v5637_v30, 2  ;;  %vm2726_vm9 = vcmp.eq.s32.totalorder %v5637_v30, 0 }
 0x45f   :  { %v2710_v15 = vadd.f32 0.041655596, %v2709_v54  ;;  %v2717_v0 = vadd.f32 0.008332121, %v2716_v6  ;;  %v2835_v56 = vshll.u32 %v5633_v60, 30  ;;  %v2903_v32 = vsub.s32 32, %v2902_v59 }
 0x460   :  { %v2858_v55 = vsub.s32 4, %v5633_v60  ;;  %v2905_v51 = vshll.u32 %v3939_v11, %v2902_v59  ;;  %vm2725_vm10 = vcmp.lt.s32.totalorder %v5637_v30, 2  ;;  %v2908_v7 = vshll.u32 %v3940_v38, %v2902_v59 }
 0x461   :  { %v2711_v1 = vmul.f32 %v2710_v15, %v2708_v23  ;;  %v2718_v9 = vmul.f32 %v2717_v0, %v2708_v23  ;;  %v5643_v35 = vsub.s32 %v2832_v50, %v2835_v56  ;;  %v2906_v42 = vshrl.u32 %v3940_v38, %v2903_v32 }
 0x462   :  { %v2909_v53 = vshrl.u32 %v3941_v28, %v2903_v32  ;;  %vm2723_vm11 = vweird.f32 %v5326_v29  ;;  %v2904_v63 = vshrl.u32 %v3939_v11, %v2903_v32  ;;  %v2911_v43 = vshll.u32 %v3941_v28, %v2902_v59 }
 0x463   :  { %v2712_v26 = vadd.f32 -0.4999988, %v2711_v1  ;;  %v2719_v36 = vadd.f32 -0.16666654, %v2718_v9  ;;  %vm2837_vm8 = vcmp.lt.s32.totalorder %v5643_v35, 0  ;;  %v2838_v22 = vsub.s32 0, %v5643_v35 }
 0x464   :  { %v2912_v44 = vshrl.u32 %v3942_v19, %v2903_v32  ;;  %v2914_v17 = vshll.u32 %v3942_v19, %v2902_v59  ;;  %v2915_v39 = vshrl.u32 %v6407_v10, %v2903_v32  ;;  %v2907_v62 = vor.u32 %v2906_v42, %v2905_v51 }
 0x465   :  { %v2713_v4 = vmul.f32 %v2712_v26, %v2708_v23  ;;  %v2720_v31 = vmul.f32 %v2719_v36, %v2708_v23  ;;  %v2839_v48 = vsel %vm2837_vm8, %v2838_v22, %v5643_v35  ;;  %v2910_v41 = vor.u32 %v2909_v53, %v2908_v7 }
 0x466   :  { %v2840_v46 = vclz %v2839_v48  ;;  %v2918_v20 = vshrl.u32 %v6408_v34, %v2903_v32  ;;  %v2916_v6 = vor.u32 %v2915_v39, %v2914_v17  ;;  %v2917_v57 = vshll.u32 %v6407_v10, %v2902_v59 }
 0x467   :  { %v2714_v50 = vadd.f32 1.0, %v2713_v4  ;;  %v2721_v25 = vadd.f32 1.0, %v2720_v31  ;;  %vm2736_vm12 = vcmp.lt.s32.totalorder %v5361_v5, 0  ;;  %v2913_v15 = vor.u32 %v2912_v44, %v2911_v43 }
 0x468   :  { %v3860_v23 = vadd.s32 4294967294, %v2840_v46  ;;  %vm2920_vm15 = vcmp.lt.s32.totalorder %v5649_v47, 1  ;;  %vm2921_vm13 = vcmp.lt.s32.totalorder %v5649_v47, 2  ;;  %v2919_v1 = vor.u32 %v2918_v20, %v2917_v57 }
 0x469   :  { %v2722_v52 = vmul.f32 %v2721_v25, %v2706_v2  ;;  %v2730_v54 = vxor.u32 2147483648, %v2714_v50  ;;  %vm2922_vm1 = vcmp.lt.s32.totalorder %v5649_v47, 3  ;;  %vm2923_vm2 = vcmp.lt.s32.totalorder %v5649_v47, 4 }
 0x46a   :  { %vm3861_vm14 = vcmp.lt.s32.totalorder %v3860_v23, 0  ;;  %v2928_v36 = vsel %vm2920_vm15, %v2907_v62, %v2910_v41  ;;  %v2929_v22 = vsel %vm2923_vm2, %v2916_v6, 920167782  ;;  %v2925_v4 = vsel %vm2923_vm2, %v2913_v15, 2102212464 }
 0x46b   :  { %v2727_v0 = vxor.u32 2147483648, %v2722_v52  ;;  %v2843_v56 = vsel %vm3861_vm14, 0, %v3860_v23  ;;  %v2731_v2 = vsel %vm2729_vm7, %v2730_v54, %v2722_v52  ;;  %v2930_v48 = vsel %vm2922_vm1, %v2913_v15, %v2929_v22 }
 0x46c   :  { %v2844_v32 = vsub.s32 32, %v2843_v56  ;;  %v2848_v9 = vsub.s32 4294967266, %v2843_v56  ;;  %v2845_v26 = vshll.u32 %v5643_v35, %v2843_v56  ;;  %v2932_v7 = vsel %vm2920_vm15, %v2910_v41, %v2913_v15 }
 0x46d   :  { %v2728_v59 = vsel %vm2726_vm9, %v2714_v50, %v2727_v0  ;;  %v2933_v35 = vsel %vm2923_vm2, %v2919_v1, 1326507024  ;;  %v2924_v43 = vsel %vm2920_vm15, %v2904_v63, %v2907_v62  ;;  %vm5712_vm3 = vcmp.le.f32.partialorder %v2734_v58, 0.7853982 }
 0x46e   :  { %v2732_v51 = vsel %vm2725_vm10, %v2728_v59, %v2731_v2  ;;  %v2846_v42 = vshrl.u32 %v2828_v61, %v2844_v32  ;;  %v2849_v53 = vadd.s32 127, %v2848_v9  ;;  %v2931_v61 = vsel %vm2921_vm13, %v2928_v36, %v2930_v48 }
 0x46f   :  { %v2733_v31 = vsel %vm2723_vm11, nan, %v2732_v51  ;;  %v2934_v29 = vsel %vm2922_vm1, %v2916_v6, %v2933_v35  ;;  %v2961_v50 = vand.u32 65535, %v2931_v61  ;;  %v2962_v25 = vshrl.u32 %v2931_v61, 16 }
 0x470   :  { %3820 = vst.msk [vmem:[%s6397_s7 + $0x40] sm:$0xff] %vm56_vm0, %v2733_v31  ;;  %v2847_v30 = vor.u32 %v2846_v42, %v2845_v26  ;;  %v2850_v46 = vshll.u32 %v2849_v53, 23  ;;  %v2935_v44 = vsel %vm2921_vm13, %v2932_v7, %v2934_v29  ;;  %v2926_v23 = vsel %vm2922_vm1, %v2910_v41, %v2925_v4  ;;  %v1050_v4 = vpop.f32.mrf.mxu0 }
 0x471   :  { %v2939_v20 = vand.u32 65535, %v2935_v44  ;;  %v2940_v52 = vshrl.u32 %v2935_v44, 16  ;;  %v5723_v63 = vsel %vm2736_vm12, %v2858_v55, %v5633_v60  ;;  %v2964_v62 = vmul.u32 %v2962_v25, %v5652_v12 }
 0x472   :  { %v2851_v39 = vor.u32 4788187, %v2850_v46  ;;  %v2965_v58 = vmul.u32 %v2961_v50, %v5655_v21  ;;  %vm3053_vm4 = vcmp.gt.s32.totalorder %v5657_v45, 0  ;;  %v2854_v6 = vcvt.s32.f32 %v2847_v30 }
 0x473   :  { %v2942_v57 = vmul.u32 %v2940_v52, %v5652_v12  ;;  %v2943_v41 = vmul.u32 %v2939_v20, %v5655_v21  ;;  %v5732_v15 = vsel %vm2921_vm13, %v2924_v43, %v2926_v23  ;;  %v2963_v0 = vmul.u32 %v2961_v50, %v5652_v12 }
 0x474   :  { %v2852_v54 = vand.u32 2147483647, %v2851_v39  ;;  %v2966_v60 = vmul.u32 %v2962_v25, %v5655_v21  ;;  %v2967_v55 = vshll.u32 %v2964_v62, 16  ;;  %v2941_v1 = vmul.u32 %v2939_v20, %v5652_v12 }
 0x475   :  { %v2944_v2 = vmul.u32 %v2940_v52, %v5655_v21  ;;  %v2945_v32 = vshll.u32 %v2942_v57, 16  ;;  %v2947_v9 = vshll.u32 %v2943_v41, 16  ;;  %v2969_v59 = vshll.u32 %v2965_v58, 16 }
 0x476   :  { %v2855_v56 = vmul.f32 %v2854_v6, %v2852_v54  ;;  %vm2971_vm5 = vc.u32 %v2963_v0, %v2967_v55  ;;  %v2973_v26 = vadd.s32 %v2967_v55, %v2963_v0  ;;  %v2968_v42 = vshrl.u32 %v2964_v62, 16 }
 0x477   :  { %vm2949_vm6 = vc.u32 %v2941_v1, %v2945_v32  ;;  %v2951_v47 = vadd.s32 %v2945_v32, %v2941_v1  ;;  %v2972_v22 = vsel %vm2971_vm5, 1, %v3929_v27  ;;  %v3054_v30 = vsel %vm3053_vm4, %v5657_v45, 0 }
 0x478   :  { %v2856_v36 = vxor.u32 2147483648, %v2855_v56  ;;  %v2950_v51 = vsel %vm2949_vm6, 1, %v3929_v27  ;;  %v2974_v53 = vadd.s32 %v2972_v22, %v2966_v60  ;;  %vm2975_vm7 = vc.u32 %v2973_v26, %v2969_v59 }
 0x479   :  { %v2952_v21 = vadd.s32 %v2950_v51, %v2944_v2  ;;  %vm2953_vm8 = vc.u32 %v2951_v47, %v2947_v9  ;;  %v2976_v31 = vsel %vm2975_vm7, 1, %v3929_v27  ;;  %v2946_v61 = vshrl.u32 %v2942_v57, 16  ;;  %v1157_v47 = vpop.f32.mrf.mxu1 }
 0x47a   :  { %v2857_v12 = vsel %vm2736_vm12, %v2856_v36, %v2855_v56  ;;  %v2954_v7 = vsel %vm2953_vm8, 1, %v3929_v27  ;;  %v2978_v35 = vadd.s32 %v2976_v31, %v2974_v53  ;;  %v3056_v43 = vand.u32 31, %v3054_v30 }
 0x47b   :  { %v2860_v48 = vsel %vm5712_vm3, %v5361_v5, %v2857_v12  ;;  %v2956_v29 = vadd.s32 %v2954_v7, %v2952_v21  ;;  %v5751_v44 = vadd.f32 %v1050_v4, %v4504_v18  ;;  %v2948_v50 = vshrl.u32 %v2943_v41, 16 }
 0x47c   :  { %v2862_v46 = vmul.f32 %v2860_v48, %v2860_v48  ;;  %v2970_v25 = vshrl.u32 %v2965_v58, 16  ;;  %v2979_v39 = vadd.s32 %v2978_v35, %v2968_v42  ;;  %v5753_v62 = vsub.s32 32, %v3056_v43 }
 0x47d   :  { %v2957_v52 = vadd.s32 %v2956_v29, %v2946_v61  ;;  %v2861_v54 = vsel %vm5712_vm3, 0, %v5723_v63  ;;  %v2981_v6 = vmul.u32 %v5635_v8, %v5732_v15  ;;  %v3050_v57 = vor.u32 8388608, %v5647_v14 }
 0x47e   :  { %v2863_v23 = vmul.f32 -0.001358992, %v2862_v46  ;;  %v2870_v20 = vmul.f32 -0.00019511016, %v2862_v46  ;;  %v2980_v45 = vadd.s32 %v2979_v39, %v2970_v25  ;;  %v5763_v58 = vadd.s32 %v2973_v26, %v2969_v59 }
 0x47f   :  { %v5761_v41 = vadd.s32 %v2957_v52, %v2948_v50  ;;  %v5765_v55 = vshrl.u32 %v3054_v30, 5  ;;  %v3059_v56 = vshll.u32 %v3939_v11, %v3056_v43  ;;  %v3060_v17 = vshrl.u32 %v3940_v38, %v5753_v62 }
 0x480   :  { %v2864_v18 = vadd.f32 0.041655596, %v2863_v23  ;;  %v2871_v0 = vadd.f32 0.008332121, %v2870_v20  ;;  %v2984_v60 = vadd.s32 1, %v2980_v45  ;;  %v3063_v8 = vshrl.u32 %v3941_v28, %v5753_v62 }
 0x481   :  { %vm2983_vm9 = vc.u32 %v5761_v41, %v5763_v58  ;;  %v3062_v15 = vshll.u32 %v3940_v38, %v3056_v43  ;;  %v3065_v2 = vshll.u32 %v3941_v28, %v3056_v43  ;;  %v3066_v32 = vshrl.u32 %v3942_v19, %v5753_v62 }
 0x482   :  { %v2865_v63 = vmul.f32 %v2864_v18, %v2862_v46  ;;  %v2872_v1 = vmul.f32 %v2871_v0, %v2862_v46  ;;  %v2985_v14 = vsel %vm2983_vm9, %v2984_v60, %v2980_v45  ;;  %v5778_v36 = vor.u32 %v3060_v17, %v3059_v56 }
 0x483   :  { %v2986_v26 = vadd.s32 %v2985_v14, %v2981_v6  ;;  %v3068_v22 = vshll.u32 %v3942_v19, %v3056_v43  ;;  %v3069_v51 = vshrl.u32 %v6407_v10, %v5753_v62  ;;  %v3071_v42 = vshll.u32 %v6407_v10, %v3056_v43 }
 0x484   :  { %v2866_v9 = vadd.f32 -0.4999988, %v2865_v63  ;;  %v2873_v59 = vadd.f32 -0.16666654, %v2872_v1  ;;  %v3072_v53 = vshrl.u32 %v6408_v34, %v5753_v62  ;;  %v5786_v31 = vor.u32 %v3063_v8, %v3062_v15  ;;  %v1163_v63 = vpop.f32.mrf.mxu1  ;;  %v1250_v15 = vpop.f32.mrf.mxu2 }
 0x485   :  { %v2987_v21 = vadd.s32 536870912, %v2986_v26  ;;  %v2878_v7 = vand.u32 3, %v2861_v54  ;;  %v3067_v35 = vor.u32 %v3066_v32, %v3065_v2  ;;  %v3070_v30 = vor.u32 %v3069_v51, %v3068_v22 }
 0x486   :  { %v2867_v4 = vmul.f32 %v2866_v9, %v2862_v46  ;;  %v2874_v12 = vmul.f32 %v2873_v59, %v2862_v46  ;;  %v3073_v61 = vor.u32 %v3072_v53, %v3071_v42  ;;  %vm3077_vm10 = vcmp.lt.s32.totalorder %v5765_v55, 4 }
 0x487   :  { %v5788_v25 = vshrl.u32 %v2987_v21, 30  ;;  %vm3074_vm11 = vcmp.lt.s32.totalorder %v5765_v55, 1  ;;  %vm3076_vm12 = vcmp.lt.s32.totalorder %v5765_v55, 3  ;;  %v3083_v46 = vsel %vm3077_vm10, %v3070_v30, 920167782 }
 0x488   :  { %v2868_v29 = vadd.f32 1.0, %v2867_v4  ;;  %v2875_v50 = vadd.f32 1.0, %v2874_v12  ;;  %v1158_v43 = vadd.f32 %v1157_v47, %v5641_v13  ;;  %v3082_v52 = vsel %vm3074_vm11, %v5778_v36, %v5786_v31 }
 0x489   :  { %v2989_v20 = vshll.u32 %v5788_v25, 30  ;;  %vm2879_vm14 = vcmp.lt.s32.totalorder %v2878_v7, 2  ;;  %v3084_v54 = vsel %vm3076_vm12, %v3067_v35, %v3083_v46  ;;  %v3087_v45 = vsel %vm3077_vm10, %v3073_v61, 1326507024 }
 0x48a   :  { %v2876_v39 = vmul.f32 %v2875_v50, %v2860_v48  ;;  %v2884_v23 = vxor.u32 2147483648, %v2868_v29  ;;  %v5805_v6 = vshll.u32 %v3050_v57, 8  ;;  %vm3075_vm15 = vcmp.lt.s32.totalorder %v5765_v55, 2 }
 0x48b   :  { %v5807_v13 = vsub.s32 %v2986_v26, %v2989_v20  ;;  %v3086_v48 = vsel %vm3074_vm11, %v5786_v31, %v3067_v35  ;;  %vm2880_vm13 = vcmp.eq.s32.totalorder %v2878_v7, 0  ;;  %vm2883_vm1 = vcmp.eq.s32.totalorder %v2878_v7, 2 }
 0x48c   :  { %v2881_v18 = vxor.u32 2147483648, %v2876_v39  ;;  %v3085_v0 = vsel %vm3075_vm15, %v3082_v52, %v3084_v54  ;;  %v3088_v60 = vsel %vm3076_vm12, %v3070_v30, %v3087_v45  ;;  %v2885_v57 = vsel %vm2883_vm1, %v2884_v23, %v2876_v39 }
 0x48d   :  { %vm2991_vm2 = vcmp.lt.s32.totalorder %v5807_v13, 0  ;;  %v2992_v17 = vsub.s32 0, %v5807_v13  ;;  %vm2877_vm3 = vweird.f32 %v5361_v5  ;;  %v3089_v8 = vsel %vm3075_vm15, %v3086_v48, %v3088_v60 }
 0x48e   :  { %v2882_v56 = vsel %vm2880_vm13, %v2868_v29, %v2881_v18  ;;  %v3115_v14 = vand.u32 65535, %v3085_v0  ;;  %v3092_v9 = vshrl.u32 %v5805_v6, 16  ;;  %v5826_v59 = vadd.f32 %v1163_v63, %v5751_v44 }
 0x48f   :  { %v2886_v1 = vsel %vm2879_vm14, %v2882_v56, %v2885_v57  ;;  %v2993_v32 = vsel %vm2991_vm2, %v2992_v17, %v5807_v13  ;;  %v3091_v26 = vand.u32 65535, %v5805_v6  ;;  %v3093_v47 = vand.u32 65535, %v3089_v8  ;;  %v1333_v56 = vpop.f32.mrf.mxu3 }
 0x490   :  { %v2887_v2 = vsel %vm2877_vm3, nan, %v2886_v1  ;;  %v2994_v5 = vclz %v2993_v32  ;;  %v3094_v22 = vshrl.u32 %v3089_v8, 16  ;;  %v3058_v51 = vshrl.u32 %v3939_v11, %v5753_v62 }
 0x491   :  { %3821 = vst.msk [vmem:[%s6397_s7 + $0x48] sm:$0xff] %vm56_vm0, %v2887_v2  ;;  %v3116_v42 = vshrl.u32 %v3085_v0, 16  ;;  %v5835_v53 = vmul.u32 %v3115_v14, %v3092_v9  ;;  %v1251_v4 = vadd.f32 %v1250_v15, %v1158_v43  ;;  %v2982_v44 = vadd.s32 %v5763_v58, %v5761_v41 }
 0x492   :  { %v3863_v12 = vadd.s32 4294967294, %v2994_v5  ;;  %v3096_v21 = vmul.u32 %v3094_v22, %v3091_v26  ;;  %v3097_v7 = vmul.u32 %v3093_v47, %v3092_v9  ;;  %v3078_v30 = vsel %vm3074_vm11, %v3058_v51, %v5778_v36  ;;  %v1055_v5 = vpop.f32.mrf.mxu0 }
 0x493   :  { %v3079_v61 = vsel %vm3077_vm10, %v3067_v35, 2102212464  ;;  %v3117_v29 = vmul.u32 %v3115_v14, %v3091_v26  ;;  %v3118_v50 = vmul.u32 %v3116_v42, %v3091_v26  ;;  %v3095_v62 = vmul.u32 %v3093_v47, %v3091_v26 }
 0x494   :  { %vm3864_vm4 = vcmp.lt.s32.totalorder %v3863_v12, 0  ;;  %v3098_v46 = vmul.u32 %v3094_v22, %v3092_v9  ;;  %v3099_v39 = vshll.u32 %v3096_v21, 16  ;;  %v3120_v23 = vmul.u32 %v3116_v42, %v3092_v9  ;;  %v1254_v9 = vpop.f32.mrf.mxu2 }
 0x495   :  { %v2997_v43 = vsel %vm3864_vm4, 0, %v3863_v12  ;;  %v3121_v20 = vshll.u32 %v3118_v50, 16  ;;  %v3123_v41 = vshll.u32 %v5835_v53, 16  ;;  %v3101_v54 = vshll.u32 %v3097_v7, 16 }
 0x496   :  { %v2998_v58 = vsub.s32 32, %v2997_v43  ;;  %v3002_v52 = vsub.s32 4294967266, %v2997_v43  ;;  %vm3103_vm5 = vc.u32 %v3095_v62, %v3099_v39  ;;  %v2999_v36 = vshll.u32 %v5807_v13, %v2997_v43 }
 0x497   :  { %v3104_v45 = vsel %vm3103_vm5, 1, %v3929_v27  ;;  %v3105_v35 = vadd.s32 %v3099_v39, %v3095_v62  ;;  %vm3125_vm6 = vc.u32 %v3117_v29, %v3121_v20  ;;  %v3127_v57 = vadd.s32 %v3121_v20, %v3117_v29 }
 0x498   :  { %v3000_v18 = vshrl.u32 %v2982_v44, %v2998_v58  ;;  %v3003_v48 = vadd.s32 127, %v3002_v52  ;;  %v3106_v0 = vadd.s32 %v3104_v45, %v3098_v46  ;;  %v3126_v60 = vsel %vm3125_vm6, 1, %v3929_v27 }
 0x499   :  { %vm3107_vm7 = vc.u32 %v3105_v35, %v3101_v54  ;;  %v3128_v17 = vadd.s32 %v3126_v60, %v3120_v23  ;;  %v5848_v63 = vadd.f32 %v1333_v56, %v1251_v4  ;;  %v3012_v14 = vsub.s32 4, %v5788_v25 }
 0x49a   :  { %v3001_v1 = vor.u32 %v3000_v18, %v2999_v36  ;;  %v3004_v8 = vshll.u32 %v3003_v48, 23  ;;  %v3108_v13 = vsel %vm3107_vm7, 1, %v3929_v27  ;;  %v3100_v15 = vshrl.u32 %v3096_v21, 16  ;;  %v1337_v36 = vpop.f32.mrf.mxu3  ;;  %v1060_v60 = vpop.f32.mrf.mxu0 }
 0x49b   :  { %v3110_v2 = vadd.s32 %v3108_v13, %v3106_v0  ;;  %vm3129_vm8 = vc.u32 %v3127_v57, %v3123_v41  ;;  %v3196_v32 = vand.u32 2147483647, %v5848_v63  ;;  %v3080_v47 = vsel %vm3076_vm12, %v5786_v31, %v3079_v61 }
 0x49c   :  { %v3005_v26 = vor.u32 4788187, %v3004_v8  ;;  %v3102_v22 = vshrl.u32 %v3097_v7, 16  ;;  %v3130_v51 = vsel %vm3129_vm8, 1, %v3929_v27  ;;  %v3122_v4 = vshrl.u32 %v3118_v50, 16 }
 0x49d   :  { %v3111_v42 = vadd.s32 %v3110_v2, %v3100_v15  ;;  %v3132_v44 = vadd.s32 %v3130_v51, %v3128_v17  ;;  %v3199_v12 = vand.u32 2139095040, %v5848_v63  ;;  %v3008_v29 = vcvt.s32.f32 %v3001_v1  ;;  %v3928_v7 = vld [vmem:[%s6396_s6] ss:$0 sm:$0xff] }
 0x49e   :  { %v3006_v21 = vand.u32 2147483647, %v3005_v26  ;;  %v3124_v62 = vshrl.u32 %v5835_v53, 16  ;;  %v1255_v46 = vadd.f32 %v1254_v9, %v5826_v59  ;;  %v3203_v31 = vand.u32 8388607, %v3196_v32 }
 0x49f   :  { %v3112_v39 = vadd.s32 %v3111_v42, %v3102_v22  ;;  %v3133_v43 = vadd.s32 %v3132_v44, %v3122_v4  ;;  %v3200_v23 = vshrl.u32 %v3199_v12, 23  ;;  %v869_v61 = vadd.f32 %v3928_v7, %v4516_v24 }
 0x4a0   :  { %v3009_v50 = vmul.f32 %v3008_v29, %v3006_v21  ;;  %v3131_v20 = vadd.s32 %v3127_v57, %v3123_v41  ;;  %vm2890_vm9 = vcmp.lt.s32.totalorder %v5599_v33, 0  ;;  %v3081_v53 = vsel %vm3075_vm15, %v3078_v30, %v3080_v47 }
 0x4a1   :  { %v3134_v59 = vadd.s32 %v3133_v43, %v3124_v62  ;;  %v3868_v58 = vadd.s32 4294967169, %v3200_v23  ;;  %v3013_v54 = vsel %vm2890_vm9, %v3012_v14, %v5788_v25  ;;  %v3204_v35 = vor.u32 8388608, %v3203_v31 }
 0x4a2   :  { %v3010_v52 = vxor.u32 2147483648, %v3009_v50  ;;  %vm3137_vm10 = vc.u32 %v3112_v39, %v3131_v20  ;;  %v5870_v48 = vadd.f32 %v1337_v36, %v1255_v46  ;;  %vm5874_vm11 = vcmp.le.f32.partialorder %v2888_v3, 0.7853982 }
 0x4a3   :  { %v3138_v45 = vadd.s32 1, %v3134_v59  ;;  %v3206_v18 = vadd.s32 1, %v3868_v58  ;;  %v3135_v30 = vmul.u32 %v5805_v6, %v3081_v53  ;;  %v960_v41 = vadd.f32 %v4514_v16, %v869_v61 }
 0x4a4   :  { %v3011_v55 = vsel %vm2890_vm9, %v3010_v52, %v3009_v50  ;;  %v3015_v56 = vsel %vm5874_vm11, 0, %v3013_v54  ;;  %v5889_v6 = vshll.u32 %v3204_v35, 8  ;;  %v3350_v16 = vand.u32 2147483647, %v5870_v48 }
 0x4a5   :  { %v5883_v25 = vsel %vm5874_vm11, %v5599_v33, %v3011_v55  ;;  %v3139_v0 = vsel %vm3137_vm10, %v3138_v45, %v3134_v59  ;;  %vm3207_vm12 = vcmp.gt.s32.totalorder %v3206_v18, 0  ;;  %v3353_v8 = vand.u32 2139095040, %v5870_v48 }
 0x4a6   :  { %v3016_v3 = vmul.f32 %v5883_v25, %v5883_v25  ;;  %v3140_v57 = vadd.s32 %v3139_v0, %v3135_v30  ;;  %v3208_v17 = vsel %vm3207_vm12, %v3206_v18, 0  ;;  %v5894_v2 = vadd.f32 %v1055_v5, %v4509_v49 }
 0x4a7   :  { %v3210_v1 = vand.u32 31, %v3208_v17  ;;  %v5896_v9 = vadd.f32 %v1060_v60, %v960_v41  ;;  %v5898_v26 = vand.u32 3, %v3015_v56  ;;  %v5900_v42 = vadd.s32 %v3131_v20, %v3112_v39 }
 0x4a8   :  { %v3017_v14 = vmul.f32 -0.001358992, %v3016_v3  ;;  %v3024_v13 = vmul.f32 -0.00019511016, %v3016_v3  ;;  %v3141_v15 = vadd.s32 536870912, %v3140_v57  ;;  %v5905_v44 = vand.u32 65535, %v5889_v6 }
 0x4a9   :  { %v3211_v47 = vsub.s32 32, %v3210_v1  ;;  %v5908_v12 = vshrl.u32 %v5889_v6, 16  ;;  %v3354_v21 = vshrl.u32 %v3353_v8, 23  ;;  %v5912_v49 = vand.u32 8388607, %v3350_v16 }
 0x4aa   :  { %v3018_v22 = vadd.f32 0.041655596, %v3017_v14  ;;  %v3025_v51 = vadd.f32 0.008332121, %v3024_v13  ;;  %v5902_v4 = vshrl.u32 %v3141_v15, 30  ;;  %v5915_v46 = vshrl.u32 %v3208_v17, 5 }
 0x4ab   :  { %v3213_v39 = vshll.u32 %v3939_v11, %v3210_v1  ;;  %v3214_v43 = vshrl.u32 %v3940_v38, %v3211_v47  ;;  %v3217_v23 = vshrl.u32 %v3941_v28, %v3211_v47  ;;  %v3223_v31 = vshrl.u32 %v6407_v10, %v3211_v47 }
 0x4ac   :  { %v3019_v5 = vmul.f32 %v3018_v22, %v3016_v3  ;;  %v3026_v29 = vmul.f32 %v3025_v51, %v3016_v3  ;;  %v3143_v62 = vshll.u32 %v5902_v4, 30  ;;  %vm3037_vm14 = vcmp.eq.s32.totalorder %v5898_v26, 2 }
 0x4ad   :  { %v3220_v20 = vshrl.u32 %v3942_v19, %v3211_v47  ;;  %vm3034_vm15 = vcmp.eq.s32.totalorder %v5898_v26, 0  ;;  %v3216_v53 = vshll.u32 %v3940_v38, %v3210_v1  ;;  %v3219_v59 = vshll.u32 %v3941_v28, %v3210_v1 }
 0x4ae   :  { %v3020_v7 = vadd.f32 -0.4999988, %v3019_v5  ;;  %v3027_v61 = vadd.f32 -0.16666654, %v3026_v29  ;;  %v5922_v50 = vsub.s32 %v3140_v57, %v3143_v62  ;;  %v3222_v58 = vshll.u32 %v3942_v19, %v3210_v1 }
 0x4af   :  { %v3226_v52 = vshrl.u32 %v6408_v34, %v3211_v47  ;;  %vm3033_vm13 = vcmp.lt.s32.totalorder %v5898_v26, 2  ;;  %vm3031_vm2 = vweird.f32 %v5599_v33  ;;  %v3215_v35 = vor.u32 %v3214_v43, %v3213_v39 }
 0x4b0   :  { %v3021_v54 = vmul.f32 %v3020_v7, %v3016_v3  ;;  %v3028_v36 = vmul.f32 %v3027_v61, %v3016_v3  ;;  %vm3145_vm1 = vcmp.lt.s32.totalorder %v5922_v50, 0  ;;  %v3146_v45 = vsub.s32 0, %v5922_v50 }
 0x4b1   :  { %v3218_v18 = vor.u32 %v3217_v23, %v3216_v53  ;;  %v3224_v24 = vor.u32 %v3223_v31, %v3222_v58  ;;  %v3225_v55 = vshll.u32 %v6407_v10, %v3210_v1  ;;  %v3221_v60 = vor.u32 %v3220_v20, %v3219_v59 }
 0x4b2   :  { %v3022_v30 = vadd.f32 1.0, %v3021_v54  ;;  %v3029_v41 = vadd.f32 1.0, %v3028_v36  ;;  %v3147_v0 = vsel %vm3145_vm1, %v3146_v45, %v5922_v50  ;;  %v3212_v3 = vshrl.u32 %v3939_v11, %v3211_v47 }
 0x4b3   :  { %v3148_v56 = vclz %v3147_v0  ;;  %v3227_v57 = vor.u32 %v3226_v52, %v3225_v55  ;;  %v3871_v17 = vadd.s32 4294967169, %v3354_v21  ;;  %vm3044_vm3 = vcmp.lt.s32.totalorder %v5610_v40, 0 }
 0x4b4   :  { %v3030_v8 = vmul.f32 %v3029_v41, %v5883_v25  ;;  %v3038_v14 = vxor.u32 2147483648, %v3022_v30  ;;  %vm3228_vm4 = vcmp.lt.s32.totalorder %v5915_v46, 1  ;;  %vm3231_vm5 = vcmp.lt.s32.totalorder %v5915_v46, 4 }
 0x4b5   :  { %v3866_v1 = vadd.s32 4294967294, %v3148_v56  ;;  %vm3230_vm6 = vcmp.lt.s32.totalorder %v5915_v46, 3  ;;  %v3236_v13 = vsel %vm3228_vm4, %v3215_v35, %v3218_v18  ;;  %v3237_v15 = vsel %vm3231_vm5, %v3224_v24, 920167782 }
 0x4b6   :  { %v3035_v47 = vxor.u32 2147483648, %v3030_v8  ;;  %v3166_v22 = vsub.s32 4, %v5902_v4  ;;  %vm3229_vm7 = vcmp.lt.s32.totalorder %v5915_v46, 2  ;;  %v3238_v25 = vsel %vm3230_vm6, %v3221_v60, %v3237_v15 }
 0x4b7   :  { %v3039_v51 = vsel %vm3037_vm14, %v3038_v14, %v3030_v8  ;;  %vm3867_vm8 = vcmp.lt.s32.totalorder %v3866_v1, 0  ;;  %v3239_v21 = vsel %vm3229_vm7, %v3236_v13, %v3238_v25  ;;  %v3240_v5 = vsel %vm3228_vm4, %v3218_v18, %v3221_v60 }
 0x4b8   :  { %v3036_v29 = vsel %vm3034_vm15, %v3022_v30, %v3035_v47  ;;  %v3151_v62 = vsel %vm3867_vm8, 0, %v3866_v1  ;;  %v3241_v39 = vsel %vm3231_vm5, %v3227_v57, 1326507024  ;;  %v3269_v43 = vand.u32 65535, %v3239_v21 }
 0x4b9   :  { %v3040_v23 = vsel %vm3033_vm13, %v3036_v29, %v3039_v51  ;;  %v3152_v31 = vsub.s32 32, %v3151_v62  ;;  %v3156_v7 = vsub.s32 4294967266, %v3151_v62  ;;  %v3233_v61 = vsel %vm3231_vm5, %v3221_v60, 2102212464  ;;  %v1169_v60 = vpop.f32.mrf.mxu1 }
 0x4ba   :  { %v3041_v20 = vsel %vm3031_vm2, nan, %v3040_v23  ;;  %v3153_v53 = vshll.u32 %v5922_v50, %v3151_v62  ;;  %v3242_v59 = vsel %vm3230_vm6, %v3224_v24, %v3241_v39  ;;  %v3270_v58 = vshrl.u32 %v3239_v21, 16 }
 0x4bb   :  { %3822 = vst.msk [vmem:[%s6397_s7 + $0x50] sm:$0xff] %vm56_vm0, %v3041_v20  ;;  %v3154_v26 = vshrl.u32 %v5900_v42, %v3152_v31  ;;  %v3157_v52 = vadd.s32 127, %v3156_v7  ;;  %v3243_v54 = vsel %vm3229_vm7, %v3240_v5, %v3242_v59  ;;  %v5977_v33 = vmul.u32 %v3269_v43, %v5908_v12 }
 0x4bc   :  { %v3247_v36 = vand.u32 65535, %v3243_v54  ;;  %v3248_v50 = vshrl.u32 %v3243_v54, 16  ;;  %v3272_v45 = vmul.u32 %v3270_v58, %v5905_v44  ;;  %v3360_v24 = vadd.s32 1, %v3871_v17 }
 0x4bd   :  { %vm5982_vm9 = vcmp.le.f32.partialorder %v3042_v37, 0.7853982  ;;  %v3155_v30 = vor.u32 %v3154_v26, %v3153_v53  ;;  %v3158_v42 = vshll.u32 %v3157_v52, 23  ;;  %v3167_v41 = vsel %vm3044_vm3, %v3166_v22, %v5902_v4 }
 0x4be   :  { %v3232_v0 = vsel %vm3228_vm4, %v3212_v3, %v3215_v35  ;;  %v3234_v56 = vsel %vm3230_vm6, %v3218_v18, %v3233_v61  ;;  %v3250_v57 = vmul.u32 %v3248_v50, %v5905_v44  ;;  %v3251_v37 = vmul.u32 %v3247_v36, %v5908_v12 }
 0x4bf   :  { %v3271_v17 = vmul.u32 %v3269_v43, %v5905_v44  ;;  %v3159_v8 = vor.u32 4788187, %v3158_v42  ;;  %v3274_v14 = vmul.u32 %v3270_v58, %v5908_v12  ;;  %v3275_v1 = vshll.u32 %v3272_v45, 16 }
 0x4c0   :  { %v3277_v13 = vshll.u32 %v5977_v33, 16  ;;  %v3162_v4 = vcvt.s32.f32 %v3155_v30  ;;  %v3249_v15 = vmul.u32 %v3247_v36, %v5905_v44  ;;  %v3252_v35 = vmul.u32 %v3248_v50, %v5908_v12 }
 0x4c1   :  { %v3253_v3 = vshll.u32 %v3250_v57, 16  ;;  %v3160_v47 = vand.u32 2147483647, %v3159_v8  ;;  %v3255_v18 = vshll.u32 %v3251_v37, 16  ;;  %vm3279_vm10 = vc.u32 %v3271_v17, %v3275_v1  ;;  %v1175_v54 = vpop.f32.mrf.mxu1 }
 0x4c2   :  { %v3281_v22 = vadd.s32 %v3275_v1, %v3271_v17  ;;  %v3280_v51 = vsel %vm3279_vm10, 1, %v3929_v27  ;;  %vm3361_vm12 = vcmp.gt.s32.totalorder %v3360_v24, 0  ;;  %v3276_v44 = vshrl.u32 %v3272_v45, 16 }
 0x4c3   :  { %vm3257_vm11 = vc.u32 %v3249_v15, %v3253_v3  ;;  %v3259_v25 = vadd.s32 %v3253_v3, %v3249_v15  ;;  %v3163_v21 = vmul.f32 %v3162_v4, %v3160_v47  ;;  %v3282_v29 = vadd.s32 %v3280_v51, %v3274_v14 }
 0x4c4   :  { %v3258_v5 = vsel %vm3257_vm11, 1, %v3929_v27  ;;  %vm3283_vm14 = vc.u32 %v3281_v22, %v3277_v13  ;;  %v3362_v31 = vsel %vm3361_vm12, %v3360_v24, 0  ;;  %v3169_v7 = vsel %vm5982_vm9, 0, %v3167_v41 }
 0x4c5   :  { %v3260_v62 = vadd.s32 %v3258_v5, %v3252_v35  ;;  %vm3261_vm15 = vc.u32 %v3259_v25, %v3255_v18  ;;  %v3284_v12 = vsel %vm3283_vm14, 1, %v3929_v27  ;;  %v3164_v39 = vxor.u32 2147483648, %v3163_v21 }
 0x4c6   :  { %v3262_v43 = vsel %vm3261_vm15, 1, %v3929_v27  ;;  %v3286_v23 = vadd.s32 %v3284_v12, %v3282_v29  ;;  %v3254_v61 = vshrl.u32 %v3250_v57, 16  ;;  %v3364_v53 = vand.u32 31, %v3362_v31 }
 0x4c7   :  { %v3264_v20 = vadd.s32 %v3262_v43, %v3260_v62  ;;  %v3165_v59 = vsel %vm3044_vm3, %v3164_v39, %v3163_v21  ;;  %v3235_v58 = vsel %vm3229_vm7, %v3232_v0, %v3234_v56  ;;  %v3278_v26 = vshrl.u32 %v5977_v33, 16 }
 0x4c8   :  { %v3287_v52 = vadd.s32 %v3286_v23, %v3276_v44  ;;  %v3168_v36 = vsel %vm5982_vm9, %v5610_v40, %v3165_v59  ;;  %v3256_v50 = vshrl.u32 %v3251_v37, 16  ;;  %v6014_v24 = vsub.s32 32, %v3364_v53 }
 0x4c9   :  { %v3265_v45 = vadd.s32 %v3264_v20, %v3254_v61  ;;  %v3170_v30 = vmul.f32 %v3168_v36, %v3168_v36  ;;  %v6017_v41 = vadd.f32 %v1169_v60, %v5894_v2  ;;  %v6020_v46 = vadd.f32 %v1175_v54, %v5896_v9 }
 0x4ca   :  { %v3288_v42 = vadd.s32 %v3287_v52, %v3278_v26  ;;  %v6022_v0 = vand.u32 3, %v3169_v7  ;;  %v6026_v56 = vadd.s32 %v3281_v22, %v3277_v13  ;;  %v3358_v55 = vor.u32 8388608, %v5912_v49 }
 0x4cb   :  { %v6024_v33 = vadd.s32 %v3265_v45, %v3256_v50  ;;  %v3171_v57 = vmul.f32 -0.001358992, %v3170_v30  ;;  %v3178_v37 = vmul.f32 -0.00019511016, %v3170_v30  ;;  %v3289_v17 = vmul.u32 %v5889_v6, %v3235_v58 }
 0x4cc   :  { %v3292_v8 = vadd.s32 1, %v3288_v42  ;;  %v6032_v2 = vshrl.u32 %v3362_v31, 5  ;;  %v3370_v9 = vshll.u32 %v3940_v38, %v3364_v53  ;;  %v3371_v60 = vshrl.u32 %v3941_v28, %v6014_v24 }
 0x4cd   :  { %vm3291_vm13 = vc.u32 %v6024_v33, %v6026_v56  ;;  %v3172_v14 = vadd.f32 0.041655596, %v3171_v57  ;;  %v3179_v1 = vadd.f32 0.008332121, %v3178_v37  ;;  %v3374_v49 = vshrl.u32 %v3942_v19, %v6014_v24 }
 0x4ce   :  { %v3293_v13 = vsel %vm3291_vm13, %v3292_v8, %v3288_v42  ;;  %v3368_v6 = vshrl.u32 %v3940_v38, %v6014_v24  ;;  %v3376_v15 = vshll.u32 %v3942_v19, %v3364_v53  ;;  %v3377_v35 = vshrl.u32 %v6407_v10, %v6014_v24 }
 0x4cf   :  { %v3294_v4 = vadd.s32 %v3293_v13, %v3289_v17  ;;  %v3173_v3 = vmul.f32 %v3172_v14, %v3170_v30  ;;  %v3180_v47 = vmul.f32 %v3179_v1, %v3170_v30  ;;  %v3373_v18 = vshll.u32 %v3941_v28, %v3364_v53 }
 0x4d0   :  { %v3380_v22 = vshrl.u32 %v6408_v34, %v6014_v24  ;;  %v3367_v51 = vshll.u32 %v3939_v11, %v3364_v53  ;;  %v3378_v21 = vor.u32 %v3377_v35, %v3376_v15  ;;  %v3379_v5 = vshll.u32 %v6407_v10, %v3364_v53 }
 0x4d1   :  { %v3295_v25 = vadd.s32 536870912, %v3294_v4  ;;  %v3174_v29 = vadd.f32 -0.4999988, %v3173_v3  ;;  %v3181_v62 = vadd.f32 -0.16666654, %v3180_v47  ;;  %v3372_v44 = vor.u32 %v3371_v60, %v3370_v9 }
 0x4d2   :  { %v3375_v12 = vor.u32 %v3374_v49, %v3373_v18  ;;  %v3369_v43 = vor.u32 %v3368_v6, %v3367_v51  ;;  %v3381_v23 = vor.u32 %v3380_v22, %v3379_v5  ;;  %vm3385_vm1 = vcmp.lt.s32.totalorder %v6032_v2, 4  ;;  %v1258_v49 = vpop.f32.mrf.mxu2 }
 0x4d3   :  { %v6049_v39 = vshrl.u32 %v3295_v25, 30  ;;  %v3175_v31 = vmul.f32 %v3174_v29, %v3170_v30  ;;  %v3182_v7 = vmul.f32 %v3181_v62, %v3170_v30  ;;  %vm3187_vm2 = vcmp.lt.s32.totalorder %v6022_v0, 2  ;;  %v1341_v62 = vpop.f32.mrf.mxu3 }
 0x4d4   :  { %v3391_v61 = vsel %vm3385_vm1, %v3378_v21, 920167782  ;;  %vm3185_vm3 = vweird.f32 %v5610_v40  ;;  %vm3188_vm4 = vcmp.eq.s32.totalorder %v6022_v0, 0  ;;  %vm3382_vm5 = vcmp.lt.s32.totalorder %v6032_v2, 1 }
 0x4d5   :  { %v3297_v20 = vshll.u32 %v6049_v39, 30  ;;  %v6059_v53 = vshll.u32 %v3358_v55, 8  ;;  %v3176_v59 = vadd.f32 1.0, %v3175_v31  ;;  %v3183_v58 = vadd.f32 1.0, %v3182_v7 }
 0x4d6   :  { %vm3384_vm6 = vcmp.lt.s32.totalorder %v6032_v2, 3  ;;  %v3394_v26 = vsel %vm3382_vm5, %v3372_v44, %v3375_v12  ;;  %v3390_v54 = vsel %vm3382_vm5, %v3369_v43, %v3372_v44  ;;  %v3395_v45 = vsel %vm3385_vm1, %v3381_v23, 1326507024 }
 0x4d7   :  { %v6064_v52 = vsub.s32 %v3294_v4, %v3297_v20  ;;  %v3392_v50 = vsel %vm3384_vm6, %v3375_v12, %v3391_v61  ;;  %v3184_v30 = vmul.f32 %v3183_v58, %v3168_v36  ;;  %v3192_v42 = vxor.u32 2147483648, %v3176_v59 }
 0x4d8   :  { %vm3383_vm7 = vcmp.lt.s32.totalorder %v6032_v2, 2  ;;  %v3396_v55 = vsel %vm3384_vm6, %v3378_v21, %v3395_v45  ;;  %vm3191_vm8 = vcmp.eq.s32.totalorder %v6022_v0, 2  ;;  %v3366_v8 = vshrl.u32 %v3939_v11, %v6014_v24 }
 0x4d9   :  { %vm3299_vm9 = vcmp.lt.s32.totalorder %v6064_v52, 0  ;;  %v3300_v57 = vsub.s32 0, %v6064_v52  ;;  %v3397_v37 = vsel %vm3383_vm7, %v3394_v26, %v3396_v55  ;;  %v3189_v17 = vxor.u32 2147483648, %v3184_v30 }
 0x4da   :  { %v3393_v36 = vsel %vm3383_vm7, %v3390_v54, %v3392_v50  ;;  %v3401_v9 = vand.u32 65535, %v3397_v37  ;;  %v3387_v14 = vsel %vm3385_vm1, %v3375_v12, 2102212464  ;;  %v3399_v1 = vand.u32 65535, %v6059_v53 }
 0x4db   :  { %v3301_v60 = vsel %vm3299_vm9, %v3300_v57, %v6064_v52  ;;  %v3400_v13 = vshrl.u32 %v6059_v53, 16  ;;  %v3190_v4 = vsel %vm3188_vm4, %v3176_v59, %v3189_v17  ;;  %v3193_v6 = vsel %vm3191_vm8, %v3192_v42, %v3184_v30  ;;  %v1262_v57 = vpop.f32.mrf.mxu2 }
 0x4dc   :  { %v3302_v15 = vclz %v3301_v60  ;;  %v3402_v24 = vshrl.u32 %v3397_v37, 16  ;;  %v3194_v35 = vsel %vm3187_vm2, %v3190_v4, %v3193_v6  ;;  %v3423_v47 = vand.u32 65535, %v3393_v36 }
 0x4dd   :  { %v3405_v3 = vmul.u32 %v3401_v9, %v3400_v13  ;;  %v3424_v18 = vshrl.u32 %v3393_v36, 16  ;;  %v3195_v22 = vsel %vm3185_vm3, nan, %v3194_v35  ;;  %v1259_v21 = vadd.f32 %v1258_v49, %v6017_v41  ;;  %v1345_v35 = vpop.f32.mrf.mxu3 }
 0x4de   :  { %v3869_v25 = vadd.s32 4294967294, %v3302_v15  ;;  %v3404_v51 = vmul.u32 %v3402_v24, %v3399_v1  ;;  %3823 = vst.msk [vmem:[%s6397_s7 + $0x58] sm:$0xff] %vm56_vm0, %v3195_v22  ;;  %v3290_v5 = vadd.s32 %v6026_v56, %v6024_v33  ;;  %v3386_v0 = vsel %vm3382_vm5, %v3366_v8, %v3369_v43 }
 0x4df   :  { %v3388_v29 = vsel %vm3384_vm6, %v3372_v44, %v3387_v14  ;;  %v3426_v40 = vmul.u32 %v3424_v18, %v3399_v1  ;;  %v3403_v12 = vmul.u32 %v3401_v9, %v3399_v1  ;;  %v3406_v23 = vmul.u32 %v3402_v24, %v3400_v13 }
 0x4e0   :  { %vm3870_vm10 = vcmp.lt.s32.totalorder %v3869_v25, 0  ;;  %v3407_v41 = vshll.u32 %v3404_v51, 16  ;;  %v3409_v7 = vshll.u32 %v3405_v3, 16  ;;  %v3427_v61 = vmul.u32 %v3423_v47, %v3400_v13 }
 0x4e1   :  { %v3305_v31 = vsel %vm3870_vm10, 0, %v3869_v25  ;;  %v3429_v20 = vshll.u32 %v3426_v40, 16  ;;  %v3425_v33 = vmul.u32 %v3423_v47, %v3399_v1  ;;  %v3428_v44 = vmul.u32 %v3424_v18, %v3400_v13 }
 0x4e2   :  { %v3306_v59 = vsub.s32 32, %v3305_v31  ;;  %v3310_v58 = vsub.s32 4294967266, %v3305_v31  ;;  %vm3411_vm11 = vc.u32 %v3403_v12, %v3407_v41  ;;  %v3307_v56 = vshll.u32 %v6064_v52, %v3305_v31 }
 0x4e3   :  { %v3412_v43 = vsel %vm3411_vm11, 1, %v3929_v27  ;;  %v3413_v26 = vadd.s32 %v3407_v41, %v3403_v12  ;;  %vm3433_vm12 = vc.u32 %v3425_v33, %v3429_v20  ;;  %v3431_v30 = vshll.u32 %v3427_v61, 16 }
 0x4e4   :  { %v3308_v54 = vshrl.u32 %v3290_v5, %v3306_v59  ;;  %v3311_v50 = vadd.s32 127, %v3310_v58  ;;  %v3414_v45 = vadd.s32 %v3412_v43, %v3406_v23  ;;  %v3434_v42 = vsel %vm3433_vm12, 1, %v3929_v27 }
 0x4e5   :  { %vm3415_vm14 = vc.u32 %v3413_v26, %v3409_v7  ;;  %v3435_v55 = vadd.s32 %v3429_v20, %v3425_v33  ;;  %v3436_v36 = vadd.s32 %v3434_v42, %v3428_v44  ;;  %v3408_v52 = vshrl.u32 %v3404_v51, 16 }
 0x4e6   :  { %v3309_v37 = vor.u32 %v3308_v54, %v3307_v56  ;;  %v3312_v17 = vshll.u32 %v3311_v50, 23  ;;  %v3416_v8 = vsel %vm3415_vm14, 1, %v3929_v27  ;;  %v6110_v60 = vadd.f32 %v1341_v62, %v1259_v21 }
 0x4e7   :  { %v3418_v9 = vadd.s32 %v3416_v8, %v3414_v45  ;;  %vm3437_vm15 = vc.u32 %v3435_v55, %v3431_v30  ;;  %v3410_v1 = vshrl.u32 %v3405_v3, 16  ;;  %v1263_v49 = vadd.f32 %v1262_v57, %v6020_v46 }
 0x4e8   :  { %v3313_v14 = vor.u32 4788187, %v3312_v17  ;;  %v3438_v13 = vsel %vm3437_vm15, 1, %v3929_v27  ;;  %v3430_v6 = vshrl.u32 %v3426_v40, 16  ;;  %v3504_v24 = vand.u32 2147483647, %v6110_v60 }
 0x4e9   :  { %v3419_v4 = vadd.s32 %v3418_v9, %v3408_v52  ;;  %v3440_v15 = vadd.s32 %v3438_v13, %v3436_v36  ;;  %v3316_v18 = vcvt.s32.f32 %v3309_v37  ;;  %v3507_v22 = vand.u32 2139095040, %v6110_v60 }
 0x4ea   :  { %v3314_v47 = vand.u32 2147483647, %v3313_v14  ;;  %v6116_v25 = vadd.f32 %v1345_v35, %v1263_v49  ;;  %v3320_v51 = vsub.s32 4, %v6049_v39  ;;  %v3432_v3 = vshrl.u32 %v3427_v61, 16 }
 0x4eb   :  { %v3420_v21 = vadd.s32 %v3419_v4, %v3410_v1  ;;  %v3441_v5 = vadd.s32 %v3440_v15, %v3430_v6  ;;  %v3439_v12 = vadd.s32 %v3435_v55, %v3431_v30  ;;  %v3508_v46 = vshrl.u32 %v3507_v22, 23 }
 0x4ec   :  { %v3317_v62 = vmul.f32 %v3316_v18, %v3314_v47  ;;  %vm3198_vm13 = vcmp.lt.s32.totalorder %v5848_v63, 0  ;;  %v3389_v40 = vsel %vm3383_vm7, %v3386_v0, %v3388_v29  ;;  %v3511_v41 = vand.u32 8388607, %v3504_v24 }
 0x4ed   :  { %v3442_v23 = vadd.s32 %v3441_v5, %v3432_v3  ;;  %vm3445_vm1 = vc.u32 %v3420_v21, %v3439_v12  ;;  %v3874_v7 = vadd.s32 4294967169, %v3508_v46  ;;  %v3661_v20 = vand.u32 2139095040, %v6116_v25 }
 0x4ee   :  { %v3318_v31 = vxor.u32 2147483648, %v3317_v62  ;;  %v3321_v61 = vsel %vm3198_vm13, %v3320_v51, %v6049_v39  ;;  %vm6128_vm2 = vcmp.le.f32.partialorder %v3196_v32, 0.7853982  ;;  %v3443_v0 = vmul.u32 %v6059_v53, %v3389_v40 }
 0x4ef   :  { %v3446_v59 = vadd.s32 1, %v3442_v23  ;;  %v3514_v29 = vadd.s32 1, %v3874_v7  ;;  %v3512_v43 = vor.u32 8388608, %v3511_v41  ;;  %v3662_v26 = vshrl.u32 %v3661_v20, 23 }
 0x4f0   :  { %v3319_v2 = vsel %vm3198_vm13, %v3318_v31, %v3317_v62  ;;  %v3323_v39 = vsel %vm6128_vm2, 0, %v3321_v61  ;;  %vm3352_vm4 = vcmp.lt.s32.totalorder %v5870_v48, 0  ;;  %v3658_v13 = vand.u32 2147483647, %v6116_v25 }
 0x4f1   :  { %v3322_v33 = vsel %vm6128_vm2, %v5848_v63, %v3319_v2  ;;  %v3447_v56 = vsel %vm3445_vm1, %v3446_v59, %v3442_v23  ;;  %vm3515_vm3 = vcmp.gt.s32.totalorder %v3514_v29, 0  ;;  %v6138_v42 = vand.u32 3, %v3323_v39 }
 0x4f2   :  { %v3324_v44 = vmul.f32 %v3322_v33, %v3322_v33  ;;  %v3448_v54 = vadd.s32 %v3447_v56, %v3443_v0  ;;  %v3516_v32 = vsel %vm3515_vm3, %v3514_v29, 0  ;;  %v6140_v55 = vshll.u32 %v3512_v43, 8 }
 0x4f3   :  { %v3518_v53 = vand.u32 31, %v3516_v32  ;;  %v3877_v57 = vadd.s32 4294967169, %v3662_v26  ;;  %v6142_v36 = vshrl.u32 %v3516_v32, 5  ;;  %v6146_v49 = vadd.s32 %v3439_v12, %v3420_v21 }
 0x4f4   :  { %v3325_v50 = vmul.f32 -0.001358992, %v3324_v44  ;;  %v3332_v45 = vmul.f32 -0.00019511016, %v3324_v44  ;;  %v3449_v30 = vadd.s32 536870912, %v3448_v54  ;;  %v6149_v4 = vand.u32 65535, %v6140_v55 }
 0x4f5   :  { %v3519_v52 = vsub.s32 32, %v3518_v53  ;;  %v6152_v6 = vshrl.u32 %v6140_v55, 16  ;;  %v6154_v15 = vadd.s32 1, %v3877_v57  ;;  %vm3345_vm5 = vcmp.eq.s32.totalorder %v6138_v42, 2 }
 0x4f6   :  { %v3326_v37 = vadd.f32 0.041655596, %v3325_v50  ;;  %v3333_v17 = vadd.f32 0.008332121, %v3332_v45  ;;  %v3450_v8 = vshrl.u32 %v3449_v30, 30  ;;  %v3521_v22 = vshll.u32 %v3939_v11, %v3518_v53 }
 0x4f7   :  { %vm3536_vm6 = vcmp.lt.s32.totalorder %v6142_v36, 1  ;;  %vm3342_vm7 = vcmp.eq.s32.totalorder %v6138_v42, 0  ;;  %v3522_v51 = vshrl.u32 %v3940_v38, %v3519_v52  ;;  %v3524_v21 = vshll.u32 %v3940_v38, %v3518_v53 }
 0x4f8   :  { %v3327_v9 = vmul.f32 %v3326_v37, %v3324_v44  ;;  %v3334_v14 = vmul.f32 %v3333_v17, %v3324_v44  ;;  %v3451_v1 = vshll.u32 %v3450_v8, 30  ;;  %v3525_v3 = vshrl.u32 %v3941_v28, %v3519_v52 }
 0x4f9   :  { %v3528_v5 = vshrl.u32 %v3942_v19, %v3519_v52  ;;  %vm3341_vm8 = vcmp.lt.s32.totalorder %v6138_v42, 2  ;;  %vm3339_vm10 = vweird.f32 %v5848_v63  ;;  %v3474_v40 = vsub.s32 4, %v3450_v8 }
 0x4fa   :  { %v3328_v35 = vadd.f32 -0.4999988, %v3327_v9  ;;  %v3335_v47 = vadd.f32 -0.16666654, %v3334_v14  ;;  %v6157_v18 = vsub.s32 %v3448_v54, %v3451_v1  ;;  %v3527_v23 = vshll.u32 %v3941_v28, %v3518_v53 }
 0x4fb   :  { %v3530_v41 = vshll.u32 %v3942_v19, %v3518_v53  ;;  %v3531_v31 = vshrl.u32 %v6407_v10, %v3519_v52  ;;  %v3534_v59 = vshrl.u32 %v6408_v34, %v3519_v52  ;;  %v3523_v2 = vor.u32 %v3522_v51, %v3521_v22 }
 0x4fc   :  { %v3329_v62 = vmul.f32 %v3328_v35, %v3324_v44  ;;  %v3336_v12 = vmul.f32 %v3335_v47, %v3324_v44  ;;  %vm3453_vm9 = vcmp.lt.s32.totalorder %v6157_v18, 0  ;;  %v3454_v46 = vsub.s32 0, %v6157_v18 }
 0x4fd   :  { %v3526_v0 = vor.u32 %v3525_v3, %v3524_v21  ;;  %v3533_v29 = vshll.u32 %v6407_v10, %v3518_v53  ;;  %v3529_v26 = vor.u32 %v3528_v5, %v3527_v23  ;;  %v3532_v39 = vor.u32 %v3531_v31, %v3530_v41 }
 0x4fe   :  { %v3330_v7 = vadd.f32 1.0, %v3329_v62  ;;  %v3337_v20 = vadd.f32 1.0, %v3336_v12  ;;  %v3455_v61 = vsel %vm3453_vm9, %v3454_v46, %v6157_v18  ;;  %vm6178_vm11 = vcmp.le.f32.partialorder %v3350_v16, 0.7853982 }
 0x4ff   :  { %v3456_v58 = vclz %v3455_v61  ;;  %v6184_v32 = vsel %vm3352_vm4, %v3474_v40, %v3450_v8  ;;  %v3520_v50 = vshrl.u32 %v3939_v11, %v3519_v52  ;;  %v3535_v45 = vor.u32 %v3534_v59, %v3533_v29 }
 0x500   :  { %v3338_v56 = vmul.f32 %v3337_v20, %v3322_v33  ;;  %v3346_v43 = vxor.u32 2147483648, %v3330_v7  ;;  %vm3537_vm12 = vcmp.lt.s32.totalorder %v6142_v36, 2  ;;  %vm3538_vm14 = vcmp.lt.s32.totalorder %v6142_v36, 3 }
 0x501   :  { %v3872_v54 = vadd.s32 4294967294, %v3456_v58  ;;  %vm3539_vm15 = vcmp.lt.s32.totalorder %v6142_v36, 4  ;;  %v3544_v33 = vsel %vm3536_vm6, %v3523_v2, %v3526_v0  ;;  %v3548_v22 = vsel %vm3536_vm6, %v3526_v0, %v3529_v26 }
 0x502   :  { %v3343_v30 = vxor.u32 2147483648, %v3338_v56  ;;  %v3347_v16 = vsel %vm3345_vm5, %v3346_v43, %v3338_v56  ;;  %v3545_v53 = vsel %vm3539_vm15, %v3532_v39, 920167782  ;;  %v3541_v17 = vsel %vm3539_vm15, %v3529_v26, 2102212464 }
 0x503   :  { %vm3873_vm13 = vcmp.lt.s32.totalorder %v3872_v54, 0  ;;  %v3546_v8 = vsel %vm3538_vm14, %v3529_v26, %v3545_v53  ;;  %v3549_v51 = vsel %vm3539_vm15, %v3535_v45, 1326507024  ;;  %v3540_v3 = vsel %vm3536_vm6, %v3520_v50, %v3523_v2 }
 0x504   :  { %v3344_v57 = vsel %vm3342_vm7, %v3330_v7, %v3343_v30  ;;  %v3459_v37 = vsel %vm3873_vm13, 0, %v3872_v54  ;;  %v3547_v47 = vsel %vm3537_vm12, %v3544_v33, %v3546_v8  ;;  %v3550_v63 = vsel %vm3538_vm14, %v3532_v39, %v3549_v51 }
 0x505   :  { %v3348_v52 = vsel %vm3341_vm8, %v3344_v57, %v3347_v16  ;;  %v3460_v9 = vsub.s32 32, %v3459_v37  ;;  %v3461_v14 = vshll.u32 %v6157_v18, %v3459_v37  ;;  %v3464_v1 = vsub.s32 4294967266, %v3459_v37 }
 0x506   :  { %v3349_v35 = vsel %vm3339_vm10, nan, %v3348_v52  ;;  %v3577_v21 = vand.u32 65535, %v3547_v47  ;;  %v3542_v5 = vsel %vm3538_vm14, %v3526_v0, %v3541_v17  ;;  %v3551_v62 = vsel %vm3537_vm12, %v3548_v22, %v3550_v63 }
 0x507   :  { %3824 = vst.msk [vmem:[%s6397_s7 + $0x60] sm:$0xff] %vm56_vm0, %v3349_v35  ;;  %v3462_v42 = vshrl.u32 %v6146_v49, %v3460_v9  ;;  %v3465_v18 = vadd.s32 127, %v3464_v1  ;;  %v3578_v12 = vshrl.u32 %v3547_v47, 16  ;;  %v3555_v23 = vand.u32 65535, %v3551_v62 }
 0x508   :  { %v3556_v41 = vshrl.u32 %v3551_v62, 16  ;;  %v3477_v49 = vsel %vm6178_vm11, 0, %v6184_v32  ;;  %v3581_v7 = vmul.u32 %v3577_v21, %v6152_v6  ;;  %v6233_v20 = vand.u32 8388607, %v3658_v13 }
 0x509   :  { %v3463_v46 = vor.u32 %v3462_v42, %v3461_v14  ;;  %v3466_v40 = vshll.u32 %v3465_v18, 23  ;;  %v3580_v31 = vmul.u32 %v3578_v12, %v6149_v4  ;;  %v6237_v59 = vsel %vm3537_vm12, %v3540_v3, %v3542_v5 }
 0x50a   :  { %v3558_v58 = vmul.u32 %v3556_v41, %v6149_v4  ;;  %vm3669_vm1 = vcmp.gt.s32.totalorder %v6154_v15, 0  ;;  %v3559_v2 = vmul.u32 %v3555_v23, %v6152_v6  ;;  %v3579_v0 = vmul.u32 %v3577_v21, %v6149_v4 }
 0x50b   :  { %v3467_v61 = vor.u32 4788187, %v3466_v40  ;;  %v3582_v29 = vmul.u32 %v3578_v12, %v6152_v6  ;;  %v3583_v56 = vshll.u32 %v3580_v31, 16  ;;  %v3470_v26 = vcvt.s32.f32 %v3463_v46 }
 0x50c   :  { %v3557_v39 = vmul.u32 %v3555_v23, %v6149_v4  ;;  %v3561_v54 = vshll.u32 %v3558_v58, 16  ;;  %v3560_v36 = vmul.u32 %v3556_v41, %v6152_v6  ;;  %v3563_v50 = vshll.u32 %v3559_v2, 16 }
 0x50d   :  { %v3468_v43 = vand.u32 2147483647, %v3467_v61  ;;  %v3585_v45 = vshll.u32 %v3581_v7, 16  ;;  %vm3587_vm2 = vc.u32 %v3579_v0, %v3583_v56  ;;  %v3589_v57 = vadd.s32 %v3583_v56, %v3579_v0 }
 0x50e   :  { %vm3565_vm3 = vc.u32 %v3557_v39, %v3561_v54  ;;  %v3567_v16 = vadd.s32 %v3561_v54, %v3557_v39  ;;  %v3588_v33 = vsel %vm3587_vm2, 1, %v3929_v27  ;;  %v3670_v17 = vsel %vm3669_vm1, %v6154_v15, 0 }
 0x50f   :  { %v3471_v30 = vmul.f32 %v3470_v26, %v3468_v43  ;;  %v3566_v53 = vsel %vm3565_vm3, 1, %v3929_v27  ;;  %v3590_v37 = vadd.s32 %v3588_v33, %v3582_v29  ;;  %v3597_v6 = vmul.u32 %v6140_v55, %v6237_v59 }
 0x510   :  { %v3568_v8 = vadd.s32 %v3566_v53, %v3560_v36  ;;  %vm3569_vm5 = vc.u32 %v3567_v16, %v3563_v50  ;;  %v3584_v9 = vshrl.u32 %v3580_v31, 16  ;;  %vm3591_vm6 = vc.u32 %v3589_v57, %v3585_v45 }
 0x511   :  { %v3472_v4 = vxor.u32 2147483648, %v3471_v30  ;;  %v3570_v52 = vsel %vm3569_vm5, 1, %v3929_v27  ;;  %v3672_v14 = vand.u32 31, %v3670_v17  ;;  %v3562_v35 = vshrl.u32 %v3558_v58, 16 }
 0x512   :  { %v3572_v47 = vadd.s32 %v3570_v52, %v3568_v8  ;;  %v3592_v22 = vsel %vm3591_vm6, 1, %v3929_v27  ;;  %v3564_v51 = vshrl.u32 %v3559_v2, 16  ;;  %v3586_v21 = vshrl.u32 %v3581_v7, 16 }
 0x513   :  { %v3473_v1 = vsel %vm3352_vm4, %v3472_v4, %v3471_v30  ;;  %v3594_v42 = vadd.s32 %v3592_v22, %v3590_v37  ;;  %v6260_v18 = vsub.s32 32, %v3672_v14  ;;  %v6262_v3 = vshrl.u32 %v3670_v17, 5 }
 0x514   :  { %v3476_v15 = vsel %vm6178_vm11, %v5870_v48, %v3473_v1  ;;  %v3573_v63 = vadd.s32 %v3572_v47, %v3562_v35  ;;  %v6264_v5 = vadd.s32 %v3589_v57, %v3585_v45  ;;  %v3675_v31 = vshll.u32 %v3939_v11, %v3672_v14 }
 0x515   :  { %v3478_v55 = vmul.f32 %v3476_v15, %v3476_v15  ;;  %v3595_v62 = vadd.s32 %v3594_v42, %v3584_v9  ;;  %v3676_v12 = vshrl.u32 %v3940_v38, %v6260_v18  ;;  %v3679_v46 = vshrl.u32 %v3941_v28, %v6260_v18 }
 0x516   :  { %v6270_v41 = vadd.s32 %v3573_v63, %v3564_v51  ;;  %v3678_v7 = vshll.u32 %v3940_v38, %v3672_v14  ;;  %v3681_v59 = vshll.u32 %v3941_v28, %v3672_v14  ;;  %v3682_v58 = vshrl.u32 %v3942_v19, %v6260_v18 }
 0x517   :  { %v3479_v40 = vmul.f32 -0.001358992, %v3478_v55  ;;  %v3486_v23 = vmul.f32 -0.00019511016, %v3478_v55  ;;  %v3596_v61 = vadd.s32 %v3595_v62, %v3586_v21  ;;  %v6279_v29 = vor.u32 %v3676_v12, %v3675_v31 }
 0x518   :  { %vm3599_vm4 = vc.u32 %v6270_v41, %v6264_v5  ;;  %v6281_v43 = vor.u32 %v3679_v46, %v3678_v7  ;;  %v3684_v26 = vshll.u32 %v3942_v19, %v3672_v14  ;;  %v3685_v38 = vshrl.u32 %v6407_v10, %v6260_v18 }
 0x519   :  { %v3480_v2 = vadd.f32 0.041655596, %v3479_v40  ;;  %v3487_v0 = vadd.f32 0.008332121, %v3486_v23  ;;  %v3600_v56 = vadd.s32 1, %v3596_v61  ;;  %v3687_v54 = vshll.u32 %v6407_v10, %v3672_v14 }
 0x51a   :  { %v3688_v36 = vshrl.u32 %v6408_v34, %v6260_v18  ;;  %v6289_v45 = vor.u32 %v3682_v58, %v3681_v59  ;;  %v3686_v30 = vor.u32 %v3685_v38, %v3684_v26  ;;  %vm3693_vm7 = vcmp.lt.s32.totalorder %v6262_v3, 4 }
 0x51b   :  { %v3481_v39 = vmul.f32 %v3480_v2, %v3478_v55  ;;  %v3488_v28 = vmul.f32 %v3487_v0, %v3478_v55  ;;  %v3601_v50 = vsel %vm3599_vm4, %v3600_v56, %v3596_v61  ;;  %v3666_v57 = vor.u32 8388608, %v6233_v20 }
 0x51c   :  { %v3602_v53 = vadd.s32 %v3601_v50, %v3597_v6  ;;  %v3689_v19 = vor.u32 %v3688_v36, %v3687_v54  ;;  %vm3690_vm8 = vcmp.lt.s32.totalorder %v6262_v3, 1  ;;  %vm3692_vm9 = vcmp.lt.s32.totalorder %v6262_v3, 3 }
 0x51d   :  { %v3482_v16 = vadd.f32 -0.4999988, %v3481_v39  ;;  %v3489_v33 = vadd.f32 -0.16666654, %v3488_v28  ;;  %v3699_v10 = vsel %vm3693_vm7, %v3686_v30, 920167782  ;;  %v3698_v4 = vsel %vm3690_vm8, %v6279_v29, %v6281_v43 }
 0x51e   :  { %v3603_v17 = vadd.s32 536870912, %v3602_v53  ;;  %v3494_v20 = vand.u32 3, %v3477_v49  ;;  %vm3691_vm10 = vcmp.lt.s32.totalorder %v6262_v3, 2  ;;  %v3700_v8 = vsel %vm3692_vm9, %v6289_v45, %v3699_v10 }
 0x51f   :  { %v3483_v34 = vmul.f32 %v3482_v16, %v3478_v55  ;;  %v3490_v37 = vmul.f32 %v3489_v33, %v3478_v55  ;;  %v3703_v6 = vsel %vm3693_vm7, %v3689_v19, 1326507024  ;;  %v3702_v44 = vsel %vm3690_vm8, %v6281_v43, %v6289_v45 }
 0x520   :  { %v6311_v14 = vshrl.u32 %v3603_v17, 30  ;;  %v3701_v32 = vsel %vm3691_vm10, %v3698_v4, %v3700_v8  ;;  %v3704_v49 = vsel %vm3692_vm9, %v3686_v30, %v3703_v6  ;;  %v6321_v1 = vshll.u32 %v3666_v57, 8 }
 0x521   :  { %v3484_v52 = vadd.f32 1.0, %v3483_v34  ;;  %v3491_v9 = vadd.f32 1.0, %v3490_v37  ;;  %vm3495_vm11 = vcmp.lt.s32.totalorder %v3494_v20, 2  ;;  %vm3496_vm12 = vcmp.eq.s32.totalorder %v3494_v20, 0 }
 0x522   :  { %v3605_v22 = vshll.u32 %v6311_v14, 30  ;;  %v3705_v51 = vsel %vm3691_vm10, %v3702_v44, %v3704_v49  ;;  %vm3499_vm14 = vcmp.eq.s32.totalorder %v3494_v20, 2  ;;  %v3732_v63 = vshrl.u32 %v3701_v32, 16 }
 0x523   :  { %v3492_v35 = vmul.f32 %v3491_v9, %v3476_v15  ;;  %v3500_v47 = vxor.u32 2147483648, %v3484_v52  ;;  %v3707_v21 = vand.u32 65535, %v6321_v1  ;;  %v3708_v62 = vshrl.u32 %v6321_v1, 16 }
 0x524   :  { %v3606_v55 = vsub.s32 %v3602_v53, %v3605_v22  ;;  %v3709_v12 = vand.u32 65535, %v3705_v51  ;;  %v3710_v46 = vshrl.u32 %v3705_v51, 16  ;;  %vm3493_vm13 = vweird.f32 %v5870_v48 }
 0x525   :  { %v3497_v42 = vxor.u32 2147483648, %v3492_v35  ;;  %v3501_v15 = vsel %vm3499_vm14, %v3500_v47, %v3492_v35  ;;  %v3731_v2 = vand.u32 65535, %v3701_v32  ;;  %v3734_v39 = vmul.u32 %v3732_v63, %v3707_v21 }
 0x526   :  { %vm3607_vm15 = vcmp.lt.s32.totalorder %v3606_v55, 0  ;;  %v3608_v23 = vsub.s32 0, %v3606_v55  ;;  %v3712_v61 = vmul.u32 %v3710_v46, %v3707_v21  ;;  %v3713_v7 = vmul.u32 %v3709_v12, %v3708_v62 }
 0x527   :  { %v3498_v40 = vsel %vm3496_vm12, %v3484_v52, %v3497_v42  ;;  %v3711_v56 = vmul.u32 %v3709_v12, %v3707_v21  ;;  %v3714_v38 = vmul.u32 %v3710_v46, %v3708_v62  ;;  %v3733_v50 = vmul.u32 %v3731_v2, %v3707_v21 }
 0x528   :  { %v3502_v31 = vsel %vm3495_vm11, %v3498_v40, %v3501_v15  ;;  %v3609_v58 = vsel %vm3607_vm15, %v3608_v23, %v3606_v55  ;;  %v3715_v26 = vshll.u32 %v3712_v61, 16  ;;  %v3717_v54 = vshll.u32 %v3713_v7, 16 }
 0x529   :  { %v3503_v59 = vsel %vm3493_vm13, nan, %v3502_v31  ;;  %v3610_v0 = vclz %v3609_v58  ;;  %v3735_v30 = vmul.u32 %v3731_v2, %v3708_v62  ;;  %v3737_v16 = vshll.u32 %v3734_v39, 16 }
 0x52a   :  { %3825 = vst.msk [vmem:[%s6397_s7 + $0x68] sm:$0xff] %vm56_vm0, %v3503_v59  ;;  %vm3719_vm1 = vc.u32 %v3711_v56, %v3715_v26  ;;  %v3721_v48 = vadd.s32 %v3715_v26, %v3711_v56  ;;  %v3598_v33 = vadd.s32 %v6264_v5, %v6270_v41  ;;  %v3716_v57 = vshrl.u32 %v3712_v61, 16 }
 0x52b   :  { %v3875_v28 = vadd.s32 4294967294, %v3610_v0  ;;  %v3720_v36 = vsel %vm3719_vm1, 1, %v3929_v27  ;;  %vm3741_vm5 = vc.u32 %v3733_v50, %v3737_v16  ;;  %v3736_v4 = vmul.u32 %v3732_v63, %v3708_v62 }
 0x52c   :  { %v3722_v53 = vadd.s32 %v3720_v36, %v3714_v38  ;;  %vm3723_vm3 = vc.u32 %v3721_v48, %v3717_v54  ;;  %v3739_v8 = vshll.u32 %v3735_v30, 16  ;;  %v3742_v6 = vsel %vm3741_vm5, 1, %v3929_v27 }
 0x52d   :  { %vm3876_vm2 = vcmp.lt.s32.totalorder %v3875_v28, 0  ;;  %v3724_v10 = vsel %vm3723_vm3, 1, %v3929_v27  ;;  %v3743_v52 = vadd.s32 %v3737_v16, %v3733_v50  ;;  %v3744_v41 = vadd.s32 %v3742_v6, %v3736_v4 }
 0x52e   :  { %v3613_v19 = vsel %vm3876_vm2, 0, %v3875_v28  ;;  %v3726_v17 = vadd.s32 %v3724_v10, %v3722_v53  ;;  %v3674_v32 = vshrl.u32 %v3939_v11, %v6260_v18  ;;  %v3695_v49 = vsel %vm3693_vm7, %v6289_v45, 2102212464 }
 0x52f   :  { %v3614_v34 = vsub.s32 32, %v3613_v19  ;;  %v3618_v37 = vsub.s32 4294967266, %v3613_v19  ;;  %v3615_v20 = vshll.u32 %v3606_v55, %v3613_v19  ;;  %vm3745_vm6 = vc.u32 %v3743_v52, %v3739_v8 }
 0x530   :  { %v3727_v5 = vadd.s32 %v3726_v17, %v3716_v57  ;;  %v3718_v22 = vshrl.u32 %v3713_v7, 16  ;;  %v3746_v51 = vsel %vm3745_vm6, 1, %v3929_v27  ;;  %v3738_v42 = vshrl.u32 %v3734_v39, 16 }
 0x531   :  { %v3616_v9 = vshrl.u32 %v3598_v33, %v3614_v34  ;;  %v3619_v44 = vadd.s32 127, %v3618_v37  ;;  %v3748_v55 = vadd.s32 %v3746_v51, %v3744_v41  ;;  %v3694_v21 = vsel %vm3690_vm8, %v3674_v32, %v6279_v29 }
 0x532   :  { %v3696_v11 = vsel %vm3692_vm9, %v6281_v43, %v3695_v49  ;;  %v3728_v18 = vadd.s32 %v3727_v5, %v3718_v22  ;;  %v3740_v62 = vshrl.u32 %v3735_v30, 16  ;;  %v3747_v40 = vadd.s32 %v3743_v52, %v3739_v8 }
 0x533   :  { %v3617_v35 = vor.u32 %v3616_v9, %v3615_v20  ;;  %v3620_v47 = vshll.u32 %v3619_v44, 23  ;;  %v3749_v45 = vadd.s32 %v3748_v55, %v3738_v42  ;;  %v3697_v27 = vsel %vm3691_vm10, %v3694_v21, %v3696_v11 }
 0x534   :  { %vm3753_vm4 = vc.u32 %v3728_v18, %v3747_v40  ;;  %v3751_v29 = vmul.u32 %v6321_v1, %v3697_v27  ;;  %vm3506_vm7 = vcmp.lt.s32.totalorder %v6110_v60, 0  ;;  %vm6357_vm8 = vcmp.le.f32.partialorder %v3504_v24, 0.7853982 }
 0x535   :  { %v3621_v63 = vor.u32 4788187, %v3620_v47  ;;  %v3624_v46 = vcvt.s32.f32 %v3617_v35  ;;  %v3750_v15 = vadd.s32 %v3749_v45, %v3740_v62  ;;  %v3628_v56 = vsub.s32 4, %v6311_v14 }
 0x536   :  { %v3752_v9 = vadd.s32 %v3747_v40, %v3728_v18  ;;  %vm3647_vm14 = vweird.f32 %v6110_v60  ;;  %vm3660_vm13 = vcmp.lt.s32.totalorder %v6116_v25, 0  ;;  %vm6376_vm1 = vcmp.le.f32.partialorder %v3658_v13, 0.7853982 }
 0x537   :  { %v3622_v12 = vand.u32 2147483647, %v3621_v63  ;;  %v3754_v31 = vadd.s32 1, %v3750_v15  ;;  %v3629_v24 = vsel %vm3506_vm7, %v3628_v56, %v6311_v14  ;;  %vm3801_vm6 = vweird.f32 %v6116_v25 }
 0x538   :  { %v3631_v53 = vsel %vm6357_vm8, 0, %v3629_v24 }
 0x539   :  { %v3625_v23 = vmul.f32 %v3624_v46, %v3622_v12  ;;  %v3755_v7 = vsel %vm3753_vm4, %v3754_v31, %v3750_v15  ;;  %v3648_v4 = vand.u32 3, %v3631_v53 }
 0x53a   :  { %v3756_v58 = vadd.s32 %v3755_v7, %v3751_v29 }
 0x53b   :  { %v3626_v61 = vxor.u32 2147483648, %v3625_v23  ;;  %vm3650_vm11 = vcmp.eq.s32.totalorder %v3648_v4, 0  ;;  %vm3653_vm12 = vcmp.eq.s32.totalorder %v3648_v4, 2  ;;  %vm3649_vm15 = vcmp.lt.s32.totalorder %v3648_v4, 2 }
 0x53c   :  { %v3757_v0 = vadd.s32 536870912, %v3756_v58 }
 0x53d   :  { %v3627_v59 = vsel %vm3506_vm7, %v3626_v61, %v3625_v23 }
 0x53e   :  { %v3630_v3 = vsel %vm6357_vm8, %v6110_v60, %v3627_v59  ;;  %v3758_v38 = vshrl.u32 %v3757_v0, 30 }
 0x53f   :  { %v3632_v2 = vmul.f32 %v3630_v3, %v3630_v3 }
 0x540   :  { %v3759_v54 = vshll.u32 %v3758_v38, 30  ;;  %v3782_v15 = vsub.s32 4, %v3758_v38 }
 0x541   :  { %v3633_v1 = vmul.f32 -0.001358992, %v3632_v2  ;;  %v3640_v26 = vmul.f32 -0.00019511016, %v3632_v2 }
 0x542   :  { %v3760_v50 = vsub.s32 %v3756_v58, %v3759_v54  ;;  %v3783_v7 = vsel %vm3660_vm13, %v3782_v15, %v3758_v38 }
 0x543   :  { %v3634_v39 = vadd.f32 0.041655596, %v3633_v1  ;;  %v3641_v28 = vadd.f32 0.008332121, %v3640_v26  ;;  %v3785_v13 = vsel %vm6376_vm1, 0, %v3783_v7 }
 0x544   :  { %vm3761_vm9 = vcmp.lt.s32.totalorder %v3760_v50, 0  ;;  %v3762_v33 = vsub.s32 0, %v3760_v50  ;;  %v3802_v56 = vand.u32 3, %v3785_v13 }
 0x545   :  { %v3635_v48 = vmul.f32 %v3634_v39, %v3632_v2  ;;  %v3642_v36 = vmul.f32 %v3641_v28, %v3632_v2 }
 0x546   :  { %v3763_v10 = vsel %vm3761_vm9, %v3762_v33, %v3760_v50  ;;  %vm3804_vm2 = vcmp.eq.s32.totalorder %v3802_v56, 0  ;;  %vm3807_vm3 = vcmp.eq.s32.totalorder %v3802_v56, 2  ;;  %vm3803_vm5 = vcmp.lt.s32.totalorder %v3802_v56, 2 }
 0x547   :  { %v3636_v30 = vadd.f32 -0.4999988, %v3635_v48  ;;  %v3643_v16 = vadd.f32 -0.16666654, %v3642_v36  ;;  %v3764_v34 = vclz %v3763_v10 }
 0x549   :  { %v3637_v19 = vmul.f32 %v3636_v30, %v3632_v2  ;;  %v3644_v57 = vmul.f32 %v3643_v16, %v3632_v2  ;;  %v3878_v20 = vadd.s32 4294967294, %v3764_v34 }
 0x54b   :  { %v3638_v37 = vadd.f32 1.0, %v3637_v19  ;;  %v3645_v17 = vadd.f32 1.0, %v3644_v57  ;;  %vm3879_vm10 = vcmp.lt.s32.totalorder %v3878_v20, 0 }
 0x54c   :  { %v3767_v52 = vsel %vm3879_vm10, 0, %v3878_v20 }
 0x54d   :  { %v3646_v8 = vmul.f32 %v3645_v17, %v3630_v3  ;;  %v3654_v14 = vxor.u32 2147483648, %v3638_v37  ;;  %v3768_v44 = vsub.s32 32, %v3767_v52  ;;  %v3772_v5 = vsub.s32 4294967266, %v3767_v52 }
 0x54e   :  { %v3769_v35 = vshll.u32 %v3760_v50, %v3767_v52 }
 0x54f   :  { %v3651_v6 = vxor.u32 2147483648, %v3646_v8  ;;  %v3655_v32 = vsel %vm3653_vm12, %v3654_v14, %v3646_v8  ;;  %v3770_v47 = vshrl.u32 %v3752_v9, %v3768_v44  ;;  %v3773_v22 = vadd.s32 127, %v3772_v5 }
 0x551   :  { %v3652_v41 = vsel %vm3650_vm11, %v3638_v37, %v3651_v6  ;;  %v3771_v42 = vor.u32 %v3770_v47, %v3769_v35  ;;  %v3774_v55 = vshll.u32 %v3773_v22, 23 }
 0x552   :  { %v3656_v49 = vsel %vm3649_vm15, %v3652_v41, %v3655_v32 }
 0x553   :  { %v3657_v51 = vsel %vm3647_vm14, nan, %v3656_v49  ;;  %v3775_v63 = vor.u32 4788187, %v3774_v55  ;;  %v3778_v11 = vcvt.s32.f32 %v3771_v42 }
 0x554   :  { %3826 = vst.msk [vmem:[%s6397_s7 + $0x70] sm:$0xff] %vm56_vm0, %v3657_v51 }
 0x555   :  { %v3776_v21 = vand.u32 2147483647, %v3775_v63 }
 0x557   :  { %v3779_v18 = vmul.f32 %v3778_v11, %v3776_v21 }
 0x559   :  { %v3780_v60 = vxor.u32 2147483648, %v3779_v18 }
 0x55b   :  { %v3781_v45 = vsel %vm3660_vm13, %v3780_v60, %v3779_v18 }
 0x55c   :  { %v3784_v12 = vsel %vm6376_vm1, %v6116_v25, %v3781_v45 }
 0x55d   :  { %v3786_v46 = vmul.f32 %v3784_v12, %v3784_v12 }
 0x55f   :  { %v3787_v40 = vmul.f32 -0.001358992, %v3786_v46  ;;  %v3794_v27 = vmul.f32 -0.00019511016, %v3786_v46 }
 0x561   :  { %v3788_v23 = vadd.f32 0.041655596, %v3787_v40  ;;  %v3795_v31 = vadd.f32 0.008332121, %v3794_v27 }
 0x563   :  { %v3789_v61 = vmul.f32 %v3788_v23, %v3786_v46  ;;  %v3796_v29 = vmul.f32 %v3795_v31, %v3786_v46 }
 0x565   :  { %v3790_v43 = vadd.f32 -0.4999988, %v3789_v61  ;;  %v3797_v59 = vadd.f32 -0.16666654, %v3796_v29 }
 0x567   :  { %v3791_v58 = vmul.f32 %v3790_v43, %v3786_v46  ;;  %v3798_v3 = vmul.f32 %v3797_v59, %v3786_v46 }
 0x569   :  { %v3792_v2 = vadd.f32 1.0, %v3791_v58  ;;  %v3799_v0 = vadd.f32 1.0, %v3798_v3 }
 0x56b   :  { %v3800_v1 = vmul.f32 %v3799_v0, %v3784_v12  ;;  %v3808_v26 = vxor.u32 2147483648, %v3792_v2 }
 0x56d   :  { %v3805_v39 = vxor.u32 2147483648, %v3800_v1  ;;  %v3809_v54 = vsel %vm3807_vm3, %v3808_v26, %v3800_v1 }
 0x56f   :  { %v3806_v28 = vsel %vm3804_vm2, %v3792_v2, %v3805_v39 }
 0x570   :  { %v3810_v38 = vsel %vm3803_vm5, %v3806_v28, %v3809_v54 }
 0x571   :  { %v3811_v24 = vsel %vm3801_vm6, nan, %v3810_v38 }
 0x572   :  { %3827 = vst.msk [vmem:[%s6397_s7 + $0x78] sm:$0xff] %vm56_vm0, %v3811_v24 }

</bundles_post_ra>
